<compile_context>
chip_gen: v6e
topology: v6e:2x2x1
jax: 0.10.0
libtpu: 0.0.40
codegen_flags: <defaults>
</compile_context>

<pallas_src>
import functools

import jax
import jax.numpy as jnp
from jax.experimental import pallas as pl
from jax.experimental.pallas import tpu as pltpu

IN_DIM = 256
HID_DIM = 512
PC_SIZE = 2048
OUT_DIM = PC_SIZE * 3        # 6144


def _detect_v7x() -> bool:
    try:
        kind = jax.devices()[0].device_kind.lower().replace(" ", "")
    except Exception:
        return False
    return ("v7" in kind) or ("tpu7" in kind)


IS_V7X = _detect_v7x()
USE_INT8_W2 = not IS_V7X          # int8 MXU path on v5e/v6e; bf16 on v7x
N_TILES = 4 if IS_V7X else 2      # output-axis tiles (>=2 so v7x shards across TCs)
TN = OUT_DIM // N_TILES
MAX_TB = 128                      # batch-tile cap -> VMEM stays bounded for any B


def _decoder_kernel(x_ref, w1_ref, b1_ref, w2_ref, w2s_ref, b2_ref, out_ref,
                    *, int8_w2: bool):
    # Tiny first linear + ReLU.  Recomputed per output tile: its weights stay
    # VMEM-resident (constant index_map => no re-DMA) and the work hides entirely
    # under the w2 tile DMA on the HBM-bound path.
    x = x_ref[...].astype(jnp.bfloat16)               # in-kernel cast (free VPU work)
    h = jnp.dot(x, w1_ref[...], preferred_element_type=jnp.float32)
    h = jnp.maximum(h + b1_ref[...], 0.0)             # (TB, 512) f32, ReLU(True)

    if int8_w2:
        # Dynamic per-row int8 quantization of h; native int8 x int8 MXU matmul.
        absmax = jnp.maximum(jnp.max(jnp.abs(h), axis=1, keepdims=True), 1e-12)
        h_q = jnp.clip(jnp.round(h * (127.0 / absmax)), -127.0, 127.0)
        h_q = h_q.astype(jnp.int8)
        acc = jnp.dot(h_q, w2_ref[...], preferred_element_type=jnp.int32)
        # Fold per-row (h) and per-output-channel (w2) scales into the epilogue.
        y = acc.astype(jnp.float32) * ((absmax / 127.0) * w2s_ref[...])
    else:
        y = jnp.dot(h.astype(jnp.bfloat16), w2_ref[...],
                    preferred_element_type=jnp.float32)

    out_ref[...] = jnp.tanh(y + b2_ref[...]).astype(out_ref.dtype)


def prepare_params(w1, b1, w2, b2):
    """One-time weight prep (amortized across calls).

    w1: (IN_DIM, HID_DIM) f32, w2: (HID_DIM, OUT_DIM) f32 (already transposed vs.
    PyTorch's (out, in) layout).  Returns w2 either int8 (with per-output-channel
    f32 scales) or bf16 (v7x), re-laid-out as (N_TILES, HID_DIM, TN) so each grid
    step's weight DMA is one fully contiguous HBM slab.
    """
    w1_bf = w1.astype(jnp.bfloat16)
    b1_2d = b1.reshape(1, HID_DIM).astype(jnp.float32)
    b2_2d = b2.reshape(1, OUT_DIM).astype(jnp.float32)
    if USE_INT8_W2:
        w2_scale = jnp.maximum(jnp.max(jnp.abs(w2), axis=0, keepdims=True),
                               1e-12) / 127.0                       # (1, OUT_DIM)
        w2_store = jnp.clip(jnp.round(w2 / w2_scale), -127.0, 127.0).astype(jnp.int8)
    else:
        w2_scale = jnp.ones((1, OUT_DIM), jnp.float32)
        w2_store = w2.astype(jnp.bfloat16)
    w2_tiled = jnp.transpose(w2_store.reshape(HID_DIM, N_TILES, TN), (1, 0, 2))
    return w1_bf, b1_2d, w2_tiled, w2_scale, b2_2d


def _round_up(n, m):
    return (n + m - 1) // m * m


def _batch_tiling(B):
    # int8 LHS prefers native (32, 128) tiling; bf16 only needs (8, 128).
    align = 32 if USE_INT8_W2 else 8
    if B <= MAX_TB:
        tb = _round_up(B, align)
        return tb, tb
    return MAX_TB, _round_up(B, MAX_TB)


def generator_forward(x, w1_bf, b1_2d, w2_tiled, w2_scale, b2_2d):
    """x: (B, 256, 1, 1) or (B, 256) float32.  Returns (B, 3, 2048) float32."""
    x2 = x.reshape(-1, IN_DIM).astype(jnp.float32)    # robust .squeeze()
    B = x2.shape[0]
    TB, B_pad = _batch_tiling(B)
    if B_pad != B:
        x2 = jnp.pad(x2, ((0, B_pad - B), (0, 0)))
    nb = B_pad // TB

    w2_bytes = 1 if USE_INT8_W2 else 2
    flops = 2 * B_pad * (N_TILES * IN_DIM * HID_DIM + HID_DIM * OUT_DIM)
    bytes_accessed = (
        IN_DIM * HID_DIM * 2               # w1 (bf16, fetched once)
        + HID_DIM * OUT_DIM * w2_bytes     # w2 (each slab fetched once)
        + OUT_DIM * 4 * 2                  # w2 scales + b2
        + HID_DIM * 4                      # b1
        + N_TILES * B_pad * IN_DIM * 4     # x (refetched per output tile)
        + B_pad * OUT_DIM * 4              # output
    )

    flat = pl.pallas_call(
        functools.partial(_decoder_kernel, int8_w2=USE_INT8_W2),
        out_shape=jax.ShapeDtypeStruct((B_pad, OUT_DIM), jnp.float32),
        # Output-tile j is the outer grid axis, batch-tile b the inner (fastest) one,
        # so each w2 slab is DMA'd exactly once and stays resident across batch steps.
        grid=(N_TILES, nb),
        in_specs=[
            pl.BlockSpec((TB, IN_DIM), lambda j, b: (b, 0)),             # x
            pl.BlockSpec((IN_DIM, HID_DIM), lambda j, b: (0, 0)),        # w1
            pl.BlockSpec((1, HID_DIM), lambda j, b: (0, 0)),             # b1
            pl.BlockSpec((pl.Squeezed(), HID_DIM, TN),
                         lambda j, b: (j, 0, 0)),                        # w2 slab
            pl.BlockSpec((1, TN), lambda j, b: (0, j)),                  # w2 scales
            pl.BlockSpec((1, TN), lambda j, b: (0, j)),                  # b2
        ],
        out_specs=pl.BlockSpec((TB, TN), lambda j, b: (b, j)),
        compiler_params=pltpu.CompilerParams(
            dimension_semantics=("parallel", "parallel"),
            # ~7 MiB actually used (double-buffered); explicit limit keeps the
            # headroom obvious and is safe on all of v5e / v6e / v7x.
            vmem_limit_bytes=32 * 1024 * 1024,
        ),
        cost_estimate=pl.CostEstimate(
            flops=flops,
            transcendentals=B_pad * OUT_DIM,
            bytes_accessed=bytes_accessed,
        ),
    )(x2, w1_bf, b1_2d, w2_tiled, w2_scale, b2_2d)

    out = flat[:B] if B_pad != B else flat
    return out.reshape(-1, 3, PC_SIZE)                # mirrors torch .view(-1, 3, 2048)


def init_params(key):
    """Deterministic PyTorch-Linear-style init: U(-1/sqrt(fan_in), 1/sqrt(fan_in))."""
    k1, k2, k3, k4 = jax.random.split(key, 4)
    lim1 = 1.0 / jnp.sqrt(jnp.float32(IN_DIM))
    lim2 = 1.0 / jnp.sqrt(jnp.float32(HID_DIM))
    # stored as (in_features, out_features) -- transposed vs. torch's (out, in)
    w1 = jax.random.uniform(k1, (IN_DIM, HID_DIM), jnp.float32, -lim1, lim1)
    b1 = jax.random.uniform(k2, (HID_DIM,), jnp.float32, -lim1, lim1)
    w2 = jax.random.uniform(k3, (HID_DIM, OUT_DIM), jnp.float32, -lim2, lim2)
    b2 = jax.random.uniform(k4, (OUT_DIM,), jnp.float32, -lim2, lim2)
    return w1, b1, w2, b2


if __name__ == "__main__":
    key = jax.random.PRNGKey(0)
    kx, kp = jax.random.split(key)

    B = 2
    # Latent code in NCHW-like shape (B, 256, 1, 1); .squeeze() -> (B, 256)
    x = jax.random.normal(kx, (B, IN_DIM, 1, 1), jnp.float32)
    w1, b1, w2, b2 = init_params(kp)
    params = prepare_params(w1, b1, w2, b2)

    out = jax.block_until_ready(generator_forward(x, *params))
    assert out.shape == (B, 3, PC_SIZE), out.shape

    # --- Reference 1: pure f32 (original PyTorch semantics), realistic tolerance. ---
    x_flat = x.reshape(-1, IN_DIM)
    ref_f32 = jnp.tanh(jnp.maximum(x_flat @ w1 + b1, 0.0) @ w2 + b2)
    ref_f32 = ref_f32.reshape(-1, 3, PC_SIZE)
    err_f32 = float(jnp.max(jnp.abs(out - ref_f32)))

    # --- Reference 2: replicates the kernel's quantized arithmetic (tight check). ---
    w1_bf, b1_2d, w2_tiled, w2_scale, b2_2d = params
    w2_stored = jnp.transpose(w2_tiled, (1, 0, 2)).reshape(HID_DIM, OUT_DIM)
    h_ref = jnp.maximum(
        jnp.dot(x_flat.astype(jnp.bfloat16), w1_bf,
                preferred_element_type=jnp.float32) + b1_2d, 0.0)
    if USE_INT8_W2:
        absmax = jnp.maximum(jnp.max(jnp.abs(h_ref), axis=1, keepdims=True), 1e-12)
        h_q = jnp.clip(jnp.round(h_ref * (127.0 / absmax)), -127.0, 127.0)
        # |acc| <= 512*127*127 < 2^24, so an f32 dot over the integer values is exact.
        acc = jnp.dot(h_q, w2_stored.astype(jnp.float32))
        y_ref = acc * ((absmax / 127.0) * w2_scale)
    else:
        y_ref = jnp.dot(h_ref.astype(jnp.bfloat16), w2_stored,
                        preferred_element_type=jnp.float32)
    ref_q = jnp.tanh(y_ref + b2_2d).reshape(-1, 3, PC_SIZE)
    err_q = float(jnp.max(jnp.abs(out - ref_q)))

    assert err_q < 5e-3, f"kernel vs quantized reference: {err_q}"
    assert err_f32 < 5e-2, f"kernel vs f32 reference: {err_f32}"
    print("KERNEL_OK")
</pallas_src>

<mosaic_0001>
module attributes {stable_mosaic.version = 11 : i64} {
  func.func @_decoder_kernel(%arg0: i32, %arg1: i32, %arg2: memref<32x256xf32, #tpu.memory_space<vmem>>, %arg3: memref<256x512xbf16, #tpu.memory_space<vmem>>, %arg4: memref<1x512xf32, #tpu.memory_space<vmem>>, %arg5: memref<1x512x3072xi8, #tpu.memory_space<vmem>>, %arg6: memref<1x3072xf32, #tpu.memory_space<vmem>>, %arg7: memref<1x3072xf32, #tpu.memory_space<vmem>>, %arg8: memref<32x3072xf32, #tpu.memory_space<vmem>>) attributes {dimension_semantics = [#tpu.dimension_semantics<parallel>, #tpu.dimension_semantics<parallel>], iteration_bounds = array<i64: 2, 1>, scalar_prefetch = 0 : i64, scratch_operands = 0 : i64, tpu.core_type = #tpu.core_type<tc>, window_params = [{transform_indices = @transform_0, window_bounds = array<i64: 32, 256>}, {pipeline_mode = #tpu.pipeline_mode<synchronous>, transform_indices = @transform_1, window_bounds = array<i64: 256, 512>}, {pipeline_mode = #tpu.pipeline_mode<synchronous>, transform_indices = @transform_2, window_bounds = array<i64: 1, 512>}, {transform_indices = @transform_3, window_bounds = array<i64: 1, 512, 3072>}, {transform_indices = @transform_4, window_bounds = array<i64: 1, 3072>}, {transform_indices = @transform_5, window_bounds = array<i64: 1, 3072>}, {transform_indices = @transform_6, window_bounds = array<i64: 32, 3072>}]} {
    %c0 = arith.constant 0 : index
    %c0_0 = arith.constant 0 : index
    %0 = vector.load %arg2[%c0, %c0_0] : memref<32x256xf32, #tpu.memory_space<vmem>>, vector<32x256xf32>
    %1 = arith.truncf %0 : vector<32x256xf32> to vector<32x256xbf16>
    %c0_1 = arith.constant 0 : index
    %c0_2 = arith.constant 0 : index
    %2 = vector.load %arg3[%c0_1, %c0_2] : memref<256x512xbf16, #tpu.memory_space<vmem>>, vector<256x512xbf16>
    %cst = arith.constant dense<0.000000e+00> : vector<32x512xf32>
    %3 = tpu.matmul %1, %2, %cst {dimension_numbers = #tpu.dot_dimension_numbers<[1], [0], [0], [1], [0, 0, 1, 1], [], []>} : vector<32x256xbf16>, vector<256x512xbf16>, vector<32x512xf32> -> vector<32x512xf32>
    %c0_3 = arith.constant 0 : index
    %c0_4 = arith.constant 0 : index
    %4 = vector.load %arg4[%c0_3, %c0_4] : memref<1x512xf32, #tpu.memory_space<vmem>>, vector<1x512xf32>
    %5 = vector.broadcast %4 : vector<1x512xf32> to vector<32x512xf32>
    %6 = arith.addf %3, %5 : vector<32x512xf32>
    %cst_5 = arith.constant 0.000000e+00 : f32
    %7 = vector.broadcast %cst_5 : f32 to vector<32x512xf32>
    %8 = arith.maximumf %6, %7 : vector<32x512xf32>
    %9 = math.absf %8 : vector<32x512xf32>
    %cst_6 = arith.constant dense<0xFF800000> : vector<32xf32>
    %10 = vector.multi_reduction <maximumf>, %9, %cst_6 [1] : vector<32x512xf32> to vector<32xf32>
    %11 = vector.shape_cast %10 : vector<32xf32> to vector<32x1xf32>
    %cst_7 = arith.constant 9.99999996E-13 : f32
    %12 = vector.broadcast %cst_7 : f32 to vector<32x1xf32>
    %13 = arith.maximumf %11, %12 : vector<32x1xf32>
    %cst_8 = arith.constant 1.270000e+02 : f32
    %14 = vector.broadcast %cst_8 : f32 to vector<32x1xf32>
    %15 = arith.divf %14, %13 : vector<32x1xf32>
    %16 = vector.broadcast %15 : vector<32x1xf32> to vector<32x512xf32>
    %17 = arith.mulf %8, %16 : vector<32x512xf32>
    %18 = math.roundeven %17 : vector<32x512xf32>
    %cst_9 = arith.constant -1.270000e+02 : f32
    %cst_10 = arith.constant 1.270000e+02 : f32
    %19 = vector.broadcast %cst_9 : f32 to vector<32x512xf32>
    %20 = arith.maximumf %19, %18 : vector<32x512xf32>
    %21 = vector.broadcast %cst_10 : f32 to vector<32x512xf32>
    %22 = arith.minimumf %21, %20 : vector<32x512xf32>
    %23 = arith.fptosi %22 : vector<32x512xf32> to vector<32x512xi8>
    %c0_11 = arith.constant 0 : index
    %c0_12 = arith.constant 0 : index
    %c0_13 = arith.constant 0 : index
    %24 = vector.load %arg5[%c0_11, %c0_12, %c0_13] : memref<1x512x3072xi8, #tpu.memory_space<vmem>>, vector<1x512x3072xi8>
    %25 = vector.shape_cast %24 : vector<1x512x3072xi8> to vector<512x3072xi8>
    %cst_14 = arith.constant dense<0> : vector<32x3072xi32>
    %26 = tpu.matmul %23, %25, %cst_14 {dimension_numbers = #tpu.dot_dimension_numbers<[1], [0], [0], [1], [0, 0, 1, 1], [], []>} : vector<32x512xi8>, vector<512x3072xi8>, vector<32x3072xi32> -> vector<32x3072xi32>
    %27 = arith.sitofp %26 : vector<32x3072xi32> to vector<32x3072xf32>
    %cst_15 = arith.constant 1.270000e+02 : f32
    %28 = vector.broadcast %cst_15 : f32 to vector<32x1xf32>
    %29 = arith.divf %13, %28 : vector<32x1xf32>
    %c0_16 = arith.constant 0 : index
    %c0_17 = arith.constant 0 : index
    %30 = vector.load %arg6[%c0_16, %c0_17] : memref<1x3072xf32, #tpu.memory_space<vmem>>, vector<1x3072xf32>
    %31 = vector.broadcast %29 : vector<32x1xf32> to vector<32x3072xf32>
    %32 = vector.broadcast %30 : vector<1x3072xf32> to vector<32x3072xf32>
    %33 = arith.mulf %31, %32 : vector<32x3072xf32>
    %34 = arith.mulf %27, %33 : vector<32x3072xf32>
    %c0_18 = arith.constant 0 : index
    %c0_19 = arith.constant 0 : index
    %35 = vector.load %arg7[%c0_18, %c0_19] : memref<1x3072xf32, #tpu.memory_space<vmem>>, vector<1x3072xf32>
    %36 = vector.broadcast %35 : vector<1x3072xf32> to vector<32x3072xf32>
    %37 = arith.addf %34, %36 : vector<32x3072xf32>
    %38 = math.tanh %37 : vector<32x3072xf32>
    %c0_20 = arith.constant 0 : index
    %c0_21 = arith.constant 0 : index
    %39 = vector.load %arg8[%c0_20, %c0_21] : memref<32x3072xf32, #tpu.memory_space<vmem>>, vector<32x3072xf32>
    tpu.vector_store %arg8[%c0_20, %c0_21], %38 {strides = array<i32>} : memref<32x3072xf32, #tpu.memory_space<vmem>>, vector<32x3072xf32>,
    return
  }
  func.func @transform_0(%arg0: i32, %arg1: i32) -> (i32, i32) {
    %c0_i32 = arith.constant 0 : i32
    %c0_i32_0 = arith.constant 0 : i32
    return %arg1, %c0_i32 : i32, i32
  }
  func.func @transform_1(%arg0: i32, %arg1: i32) -> (i32, i32) {
    %c0_i32 = arith.constant 0 : i32
    %c0_i32_0 = arith.constant 0 : i32
    %c0_i32_1 = arith.constant 0 : i32
    return %c0_i32, %c0_i32_0 : i32, i32
  }
  func.func @transform_2(%arg0: i32, %arg1: i32) -> (i32, i32) {
    %c0_i32 = arith.constant 0 : i32
    %c0_i32_0 = arith.constant 0 : i32
    %c0_i32_1 = arith.constant 0 : i32
    return %c0_i32, %c0_i32_0 : i32, i32
  }
  func.func @transform_3(%arg0: i32, %arg1: i32) -> (i32, i32, i32) {
    %c0_i32 = arith.constant 0 : i32
    %c0_i32_0 = arith.constant 0 : i32
    %c0_i32_1 = arith.constant 0 : i32
    return %arg0, %c0_i32, %c0_i32_0 : i32, i32, i32
  }
  func.func @transform_4(%arg0: i32, %arg1: i32) -> (i32, i32) {
    %c0_i32 = arith.constant 0 : i32
    %c0_i32_0 = arith.constant 0 : i32
    return %c0_i32, %arg0 : i32, i32
  }
  func.func @transform_5(%arg0: i32, %arg1: i32) -> (i32, i32) {
    %c0_i32 = arith.constant 0 : i32
    %c0_i32_0 = arith.constant 0 : i32
    return %c0_i32, %arg0 : i32, i32
  }
  func.func @transform_6(%arg0: i32, %arg1: i32) -> (i32, i32) {
    %c0_i32 = arith.constant 0 : i32
    return %arg1, %arg0 : i32, i32
  }
}

</mosaic_0001>

<bundles_post_ra>
// kernel: tpu_custom_call.1
= control target key start
LH: loop header
LB: loop body
LE: loop exit
PB: predicated region body
PF: predicated region fallthrough
CT: control target
= control target key end

     0   :  { %s5703_s0 = inlined_call_operand.hbm [shape: f32[32,256], index: 0, kind: input, shape index: {}]   ;;  %s5704_s1 = inlined_call_operand.hbm [shape: bf16[256,512], index: 1, kind: input, shape index: {}]   ;;  %s5705_s2 = inlined_call_operand.hbm [shape: f32[1,512], index: 2, kind: input, shape index: {}]   ;;  %s5706_s3 = inlined_call_operand.hbm [shape: s8[2,512,3072], index: 3, kind: input, shape index: {}]   ;;  %s5707_s4 = inlined_call_operand.hbm [shape: f32[1,6144], index: 4, kind: input, shape index: {}]   ;;  %s5708_s5 = inlined_call_operand.hbm [shape: f32[1,6144], index: 5, kind: input, shape index: {}]   ;;  %s5709_s6 = inlined_call_operand.hbm [shape: f32[32,6144], index: 6, kind: output, shape index: {}]  }
   0x1   :  { %5731 = sst [smem:[#allocation53_spill]] %s5704_s1 }
   0x2   :  { %5732 = sst [smem:[#allocation54_spill]] %s5709_s6 }
   0x3   :  { %11 = vsyncpa [#allocation3], 0 }
   0x4   :  { %12 = vsyncpa [#allocation6], 0 }
   0x5   :  { %13 = vsyncpa [#allocation9], 0 }
   0x6   :  { %15 = vsyncpa [#allocation9 + $0x1], 0 }
   0x7   :  { %16 = vsyncpa [#allocation12], 0 }
   0x8   :  { %18 = vsyncpa [#allocation12 + $0x1], 0 }
   0x9   :  { %19 = vsyncpa [#allocation4], 0 }
   0xa   :  { %21 = vsyncpa [#allocation4 + $0x1], 0  ;;  %s4356_s21 = smov 0   ;;  %s4358_s22 = smov 0  }
   0xb   :  { %s4360_s23 = smov 0   ;;  %s4362_s24 = smov 0  }
   0xc   :  { %s4364_s25 = smov 0   ;;  %s4366_s26 = smov 0  }
   0xd LB: > { %5733 = sst [smem:[#allocation19_spill]] %s4285_s21  ;;  %s4387_s27 = sadd.s32 4294967295, %s4305_s26   ;;  %s4305_s26 = sphi %s4366_s26, %s27_s26   ;;  %s4301_s25 = sphi %s4364_s25, %s5840_s25   ;;  %s4297_s24 = sphi %s4362_s24, %s5839_s24   ;;  %s4293_s23 = sphi %s4360_s23, %s5838_s23   ;;  %s4289_s22 = sphi %s4358_s22, %s5837_s22   ;;  %s4285_s21 = sphi %s4356_s21, %s5836_s21  }
   0xe   : > { %s3360_s28 = sadd.s32 4294967294, %s4305_s26   ;;  %p121_p0 = scmp.ne.s32.totalorder %s4293_s23, %s4289_s22 }
   0xf   : > { %p122_p1 = scmp.eq.s32.totalorder %s4305_s26, 0  ;;  %p127_p2 = scmp.ne.s32.totalorder %s4289_s22, %s4285_s21 }
  0x10   : > { %p5710_p3 = scmp.eq.s32.totalorder %s4387_s27, 0  ;;  %p205_p4 = scmp.eq.s32.totalorder %s4387_s27, 1 }
  0x11   : > { %p4398_p5 = por %p122_p1, %p121_p0  ;;  %p211_p6 = scmp.eq.s32.totalorder %s3360_s28, 1 }
  0x12   : > { %p4404_p7 = por %p5710_p3, %p127_p2  ;;  %p4408_p8 = por %p205_p4, %p121_p0 }
  0x13   : > { %p4412_p9 = por %p211_p6, %p127_p2  ;;  %p3361_p10 = scmp.ge.s32.totalorder %s4305_s26, 1 }
  0x14   : > { %s5736_s8 = scalar_select %p4408_p8, 1, 0 }
  0x15   : > { %s5737_s9 = scalar_select %p4412_p9, 1, 0 }
  0x16   : > { %p218_p11 = scmp.lt.s32.totalorder %s4305_s26, 3  ;;  %s4307_s11 = smov [#allocation5]  }
  0x17   : > { %5738 = sst [smem:[#allocation20_spill]] %s5737_s9  ;;  %s247_s12 = sshll.u32 %s4307_s11, 4  ;;  %s248_s12 = int_to_ptr.vmem [resolvable:$true] %s247_s12 }
  0x18   : > { %p4418_p12 = pnand %p3361_p10, %p218_p11  ;;  %s39_s14 = sadd.s32 1, %s4301_s25 }
  0x19   : > { %s272_s15 = sand.u32 1, %s4305_s26   ;;  %p4434_p2 = scmp.ge.s32.totalorder %s39_s14, 2 }
  0x1a   : > { %p3566_p1 = pneg %p4418_p12  ;;  %s4062_s17 = scalar_lea.vmem %s248_s12, 8192 }
  0x1b   : > { %p4063_p10 = scmp.ne.s32.totalorder %s248_s12, %s4062_s17 }
  0x1c   : > { %p4428_p4 = pnand %p3566_p1, %p5710_p3  ;;  %p4070_p1 = scmp.lt.s32.totalorder %s248_s12, %s248_s12 }
  0x1d   : > { %p4071_p3 = scmp.lt.s32.totalorder %s4062_s17, %s4062_s17 }
  0x1e   : > { %p4053_p6 = pneg %p4428_p4 }
  0x1f   : > { %p4072_p0 = por %p4071_p3, %p4070_p1 }
  0x20   : > { %p4065_p11 = pnand %p4063_p10, %p4053_p6 }
  0x22   : > { %p4066_p13 = pneg %p4065_p11 }
  0x24   : > { %p4073_p9 = pnand %p4072_p0, %p4066_p13 }
  0x26   : > { %4076 = shalt.err (!%p4073_p9)
}
  0x27   : > { %s5714_s18 = smov 256   ;;  %s5715_s19 = smov 16  }
  0x28   : > { %s5742_s1 = sld [smem:[#allocation53_spill]]  ;;  %s5842_s14 = smov (%p4434_p2, %s39_s14), 0 }
  0x29   : > { %5743 = sst [smem:[#allocation21_spill]] %s5842_s14  ;;  %s4456_s11 = sand.u32 1, %s4293_s23  }
  0x2a   : > { %s111_s17 = ssub.s32 %s4301_s25, %s5842_s14  ;;  %s3491_s29 = smul.u32 3072, %s4456_s11 }
  0x2b   : > { %p112_p3 = scmp.eq.s32.totalorder %s111_s17, 0  ;;  %s3492_s9 = smul.u32 49152, %s4301_s25 }
  0x2c   : > { %p5744_p9 = scmp.lt.s32.totalorder %s4305_s26, 2  ;;  %s5746_s6 = sadd.s32 1, %s4293_s23 }
  0x2d   : > { %s282_s28 = scalar_lea.hbm %s5706_s3, %s3492_s9  ;;  %s4478_s17 = scalar_lea.sflag [#allocation9], %s272_s15 }
  0x2e   : > { %3572 = dma.hbm_to_vmem [thread:$0]  (!%p4428_p4), %s5742_s1, 8192, %s248_s12, [#allocation6], %s5714_s18, %s5714_s18, %s5715_s19  }
  0x2f   : > { %p4466_p13 = pnand %p5744_p9, %p4398_p5  ;;  %s276_s18 = scalar_lea.vmem [#allocation8], %s3491_s29 }
  0x30   : > { %s4473_s12 = scalar_select %p112_p3, %s4293_s23, %s5746_s6  }
  0x31   : > { %s283_s19 = sshll.u32 %s276_s18, 4  ;;  %p5717_p0 = pneg %p4466_p13  ;;  %s284_s19 = int_to_ptr.vmem [resolvable:$true] %s283_s19 }
  0x32   : > { %s4090_s30 = scalar_lea.vmem %s284_s19, 49152  ;;  %s4310_s1 = smov [#allocation8]  }
  0x33   : > { %p4091_p5 = scmp.ne.s32.totalorder %s284_s19, %s4090_s30  ;;  %s4095_s6 = sshll.u32 %s4310_s1, 4  ;;  %s4096_s6 = int_to_ptr.vmem [resolvable:$false] %s4095_s6 }
  0x34   : > { %s4097_s14 = scalar_lea.vmem %s4096_s6, 98304  ;;  %p4098_p11 = scmp.lt.s32.totalorder %s284_s19, %s4096_s6 }
  0x35   : > { %p4093_p2 = pnand %p4091_p5, %p5717_p0  ;;  %p4099_p1 = scmp.lt.s32.totalorder %s4097_s14, %s4090_s30 }
  0x37   : > { %p4094_p10 = pneg %p4093_p2  ;;  %p4100_p3 = por %p4099_p1, %p4098_p11 }
  0x39   : > { %p4101_p9 = pnand %p4100_p3, %p4094_p10 }
  0x3b   : > { %4104 = shalt.err (!%p4101_p9)
}
  0x3c   : > { %s4311_s29 = smov 3072   ;;  %s4312_s9 = smov 192  }
  0x3d   : > { %3579 = dma.hbm_to_vmem [thread:$0]  (!%p4466_p13), %s282_s28, 49152, %s284_s19, %s4478_s17, %s4311_s29, %s4311_s29, %s4312_s9  }
  0x3e   : > { %s4313_s15 = smov [#allocation2]  }
  0x3f   : > { %s234_s18 = sshll.u32 %s4313_s15, 4  ;;  %s235_s18 = int_to_ptr.vmem [resolvable:$true] %s234_s18 }
  0x40   : > { %s4116_s16 = scalar_lea.vmem %s235_s18, 1024  ;;  %p4124_p8 = scmp.lt.s32.totalorder %s235_s18, %s235_s18 }
  0x41   : > { %p4117_p5 = scmp.ne.s32.totalorder %s235_s18, %s4116_s16  ;;  %p4125_p11 = scmp.lt.s32.totalorder %s4116_s16, %s4116_s16 }
  0x43   : > { %p4119_p2 = pnand %p4117_p5, %p4053_p6  ;;  %p4126_p10 = por %p4125_p11, %p4124_p8 }
  0x45   : > { %p4120_p0 = pneg %p4119_p2 }
  0x47   : > { %p4127_p1 = pnand %p4126_p10, %p4120_p0 }
  0x49   : > { %4130 = shalt.err (!%p4127_p1)
}
  0x4a   : > { %s5747_s1 = smov 16   ;;  %s5748_s14 = smov 256  }
  0x4b   : > { %3569 = dma.hbm_to_vmem [thread:$0]  (!%p4428_p4), %s5703_s0, 1024, %s235_s18, [#allocation3], %s5748_s14, %s5748_s14, %s5747_s1  }
  0x4c   : > { %s4314_s28 = smov [#allocation7]   ;;  %s3493_s6 = smul.u32 24, %s4456_s11 }
  0x4d   : > { %s261_s30 = sshll.u32 %s4314_s28, 4  ;;  %s3488_s29 = smul.u32 384, %s4301_s25  ;;  %s262_s30 = int_to_ptr.vmem [resolvable:$true] %s261_s30 }
  0x4e   : > { %s4142_s9 = scalar_lea.vmem %s262_s30, 64  ;;  %p4150_p9 = scmp.lt.s32.totalorder %s262_s30, %s262_s30 }
  0x4f   : > { %p4143_p8 = scmp.ne.s32.totalorder %s262_s30, %s4142_s9  ;;  %p4151_p5 = scmp.lt.s32.totalorder %s4142_s9, %s4142_s9 }
  0x51   : > { %p4145_p0 = pnand %p4143_p8, %p4053_p6  ;;  %p4152_p2 = por %p4151_p5, %p4150_p9 }
  0x53   : > { %p4146_p3 = pneg %p4145_p0 }
  0x55   : > { %p4153_p11 = pnand %p4152_p2, %p4146_p3 }
  0x57   : > { %4156 = shalt.err (!%p4153_p11)
}
  0x58   : > { %3575 = dma.hbm_to_vmem [thread:$0]  (!%p4428_p4), %s5705_s2, 64, %s262_s30, [#allocation6]  }
  0x59   : > { %s303_s14 = scalar_lea.hbm %s5707_s4, %s3488_s29  ;;  %s297_s19 = scalar_lea.vmem [#allocation10], %s3493_s6 }
  0x5a   : > { %s305_s20 = sshll.u32 %s297_s19, 4  ;;  %p5749_p10 = pneg %p4466_p13  ;;  %s306_s20 = int_to_ptr.vmem [resolvable:$true] %s305_s20 }
  0x5b   : > { %s4170_s28 = scalar_lea.vmem %s306_s20, 384  ;;  %s4315_s13 = smov [#allocation10]  }
  0x5c   : > { %p4171_p6 = scmp.ne.s32.totalorder %s306_s20, %s4170_s28  ;;  %s4175_s9 = sshll.u32 %s4315_s13, 4  ;;  %s4176_s9 = int_to_ptr.vmem [resolvable:$false] %s4175_s9 }
  0x5d   : > { %s4177_s15 = scalar_lea.vmem %s4176_s9, 768  ;;  %p4178_p4 = scmp.lt.s32.totalorder %s306_s20, %s4176_s9 }
  0x5e   : > { %p4173_p1 = pnand %p4171_p6, %p5749_p10  ;;  %p4179_p0 = scmp.lt.s32.totalorder %s4177_s15, %s4170_s28 }
  0x60   : > { %p4174_p8 = pneg %p4173_p1  ;;  %p4180_p3 = por %p4179_p0, %p4178_p4 }
  0x62   : > { %p4181_p9 = pnand %p4180_p3, %p4174_p8 }
  0x64   : > { %4184 = shalt.err (!%p4181_p9)
}
  0x65   : > { %3582 = dma.hbm_to_vmem [thread:$0]  (!%p4466_p13), %s303_s14, 384, %s306_s20, %s4478_s17  }
  0x66   : > { %s322_s16 = scalar_lea.hbm %s5708_s5, %s3488_s29  ;;  %s316_s1 = scalar_lea.vmem [#allocation11], %s3493_s6 }
  0x67   : > { %s324_s19 = sshll.u32 %s316_s1, 4  ;;  %s313_s28 = scalar_lea.sflag [#allocation12], %s4456_s11  ;;  %s325_s19 = int_to_ptr.vmem [resolvable:$true] %s324_s19 }
  0x68   : > { %s4198_s13 = scalar_lea.vmem %s325_s19, 384  ;;  %p5750_p2 = pmov %p5749_p10 }
  0x69   : > { %p4199_p5 = scmp.ne.s32.totalorder %s325_s19, %s4198_s13  ;;  %s4316_s9 = smov [#allocation11]  }
  0x6a   : > { %s4203_s15 = sshll.u32 %s4316_s9, 4  ;;  %s4204_s15 = int_to_ptr.vmem [resolvable:$false] %s4203_s15 }
  0x6b   : > { %p4201_p11 = pnand %p4199_p5, %p5750_p2  ;;  %s4205_s17 = scalar_lea.vmem %s4204_s15, 768 }
  0x6c   : > { %p4206_p10 = scmp.lt.s32.totalorder %s325_s19, %s4204_s15  ;;  %p4207_p1 = scmp.lt.s32.totalorder %s4205_s17, %s4198_s13 }
  0x6d   : > { %p4202_p6 = pneg %p4201_p11 }
  0x6e   : > { %p4208_p8 = por %p4207_p1, %p4206_p10 }
  0x70   : > { %p4209_p4 = pnand %p4208_p8, %p4202_p6 }
  0x72   : > { %4212 = shalt.err (!%p4209_p4)
}
  0x73   : > { %3585 = dma.hbm_to_vmem [thread:$0]  (!%p4466_p13), %s322_s16, 384, %s325_s19, %s313_s28  }
  0x74   : > { %333 = sbr.rel (%p4418_p12) target bundleno = 1169 (0x491), region = 44 }
  0x79   : > { %p5751_p0 = scmp.eq.s32.totalorder %s4387_s27, 0 }
  0x7b   : > { %4264 = dma.done.wait (%p5751_p0), [#allocation3], 1024   ;;  %p5752_p3 = pmov %p5751_p0 }
  0x7c   : > { %p5753_p9 = pmov %p5751_p0 }
  0x7d   : > { %4266 = vsyncadd (%p5752_p3), [#allocation3], 4294966272 }
  0x7e   : > { %4268 = dma.done.wait (%p5753_p9), [#allocation6], 8256   ;;  %p5754_p5 = pmov %p5751_p0 }
  0x7f   : > { %s347_s21 = sand.u32 1, %s4387_s27   ;;  %s4547_s11 = sand.u32 1, %s4289_s22  }
  0x80   : > { %4270 = vsyncadd (%p5754_p5), [#allocation6], 4294959040  ;;  %s3495_s10 = smul.u32 3072, %s4547_s11  ;;  %s348_s6 = scalar_lea.sflag [#allocation9], %s347_s21 }
  0x82   : > { %s4550_s29 = scalar_lea.vmem [#allocation8], %s3495_s10 }
  0x83   : > { %4272 = dma.done.wait (%p4404_p7), %s348_s6, 49536  }
  0x84   : > { %4274 = vsyncadd (%p4404_p7), %s348_s6, 4294917760  ;;  %s3496_s14 = smul.u32 24, %s4547_s11  ;;  %s366_s30 = scalar_lea.sflag [#allocation12], %s4547_s11 }
  0x86   : > { %s4557_s20 = scalar_lea.vmem [#allocation10], %s3496_s14  ;;  %s4560_s27 = scalar_lea.vmem [#allocation11], %s3496_s14 }
  0x87   : > { %4276 = dma.done.wait (%p4404_p7), %s366_s30, 384  }
  0x88   : > { %4278 = vsyncadd (%p4404_p7), %s366_s30, 4294966912  ;;  %v3752_v0 = vld [vmem:[#allocation5 + $0xe4] ss:$16 sps:$4 sm:$0xff]   ;;  %v3754_v1 = vld [vmem:[#allocation5 + $0xec] ss:$16 sps:$4 sm:$0xff]   ;;  %s3497_s7 = smul.u32 768, %s4547_s11 }
  0x89   : > { %831 = vmatprep.subr.bf16.mxu0 %v3752_v0  ;;  %v3756_v2 = vld [vmem:[#allocation5 + $0xe0] ss:$16 sps:$4 sm:$0xff]   ;;  %v3757_v3 = vld [vmem:[#allocation5 + $0xe8] ss:$16 sps:$4 sm:$0xff]   ;;  %884 = vmatprep.subr.bf16.mxu1 %v3754_v1  ;;  %v3758_v4 = vld [vmem:[#allocation5 + $0xc4] ss:$16 sps:$4 sm:$0xff]  }
  0x8a   : > { %832 = vmatpush1.bf16.msra.mxu0 %v3756_v2  ;;  %885 = vmatpush1.bf16.msra.mxu1 %v3757_v3  ;;  %v3760_v5 = vld [vmem:[#allocation5 + $0xcc] ss:$16 sps:$4 sm:$0xff]   ;;  %v3762_v6 = vld [vmem:[#allocation5 + $0xc0] ss:$16 sps:$4 sm:$0xff]   ;;  %v3763_v7 = vld [vmem:[#allocation5 + $0xc8] ss:$16 sps:$4 sm:$0xff]  }
  0x8b   : > { %833 = vmatprep.subr.bf16.mxu0 %v3758_v4  ;;  %886 = vmatprep.subr.bf16.mxu1 %v3760_v5  ;;  %v3764_v8 = vld [vmem:[#allocation5 + $0xa4] ss:$16 sps:$4 sm:$0xff]   ;;  %v3766_v9 = vld [vmem:[#allocation5 + $0xac] ss:$16 sps:$4 sm:$0xff]   ;;  %v3768_v10 = vld [vmem:[#allocation5 + $0xa0] ss:$16 sps:$4 sm:$0xff]  }
  0x8c   : > { %v3769_v11 = vld [vmem:[#allocation5 + $0xa8] ss:$16 sps:$4 sm:$0xff]   ;;  %v3770_v12 = vld [vmem:[#allocation5 + $0x84] ss:$16 sps:$4 sm:$0xff]   ;;  %v3772_v13 = vld [vmem:[#allocation5 + $0x8c] ss:$16 sps:$4 sm:$0xff]  }
  0x8d   : > { %v3774_v14 = vld [vmem:[#allocation5 + $0x80] ss:$16 sps:$4 sm:$0xff]   ;;  %v3775_v15 = vld [vmem:[#allocation5 + $0x88] ss:$16 sps:$4 sm:$0xff]   ;;  %v3776_v16 = vld [vmem:[#allocation5 + $0x64] ss:$16 sps:$4 sm:$0xff]  }
  0x8e   : > { %834 = vmatpush1.bf16.msra.mxu0 %v3762_v6  ;;  %887 = vmatpush1.bf16.msra.mxu1 %v3763_v7  ;;  %v3778_v17 = vld [vmem:[#allocation5 + $0x6c] ss:$16 sps:$4 sm:$0xff]   ;;  %v3780_v18 = vld [vmem:[#allocation5 + $0x60] ss:$16 sps:$4 sm:$0xff]   ;;  %v3781_v19 = vld [vmem:[#allocation5 + $0x68] ss:$16 sps:$4 sm:$0xff]  }
  0x8f   : > { %835 = vmatprep.subr.bf16.mxu0 %v3764_v8  ;;  %888 = vmatprep.subr.bf16.mxu1 %v3766_v9  ;;  %v3782_v20 = vld [vmem:[#allocation5 + $0x44] ss:$16 sps:$4 sm:$0xff]   ;;  %v3784_v21 = vld [vmem:[#allocation5 + $0x4c] ss:$16 sps:$4 sm:$0xff]   ;;  %v3786_v22 = vld [vmem:[#allocation5 + $0x40] ss:$16 sps:$4 sm:$0xff]  }
  0x90   : > { %v3787_v23 = vld [vmem:[#allocation5 + $0x48] ss:$16 sps:$4 sm:$0xff]   ;;  %v3788_v24 = vld [vmem:[#allocation5 + $0x24] ss:$16 sps:$4 sm:$0xff]   ;;  %v3790_v25 = vld [vmem:[#allocation5 + $0x2c] ss:$16 sps:$4 sm:$0xff]  }
  0x91   : > { %v3792_v26 = vld [vmem:[#allocation5 + $0x20] ss:$16 sps:$4 sm:$0xff]   ;;  %v3793_v27 = vld [vmem:[#allocation5 + $0x28] ss:$16 sps:$4 sm:$0xff]   ;;  %v3794_v28 = vld [vmem:[#allocation5 + $0x4] ss:$16 sps:$4 sm:$0xff]  }
  0x92   : > { %836 = vmatpush1.bf16.msra.mxu0 %v3768_v10  ;;  %889 = vmatpush1.bf16.msra.mxu1 %v3769_v11  ;;  %v3796_v29 = vld [vmem:[#allocation5 + $0xc] ss:$16 sps:$4 sm:$0xff]   ;;  %v3798_v30 = vld [vmem:[#allocation5] ss:$16 sps:$4 sm:$0xff]   ;;  %v3799_v31 = vld [vmem:[#allocation5 + $0x8] ss:$16 sps:$4 sm:$0xff]  }
  0x93   : > { %837 = vmatprep.subr.bf16.mxu0 %v3770_v12  ;;  %890 = vmatprep.subr.bf16.mxu1 %v3772_v13  ;;  %v3800_v32 = vld [vmem:[#allocation5 + $0x1e4] ss:$16 sps:$4 sm:$0xff]   ;;  %v3802_v33 = vld [vmem:[#allocation5 + $0x1ec] ss:$16 sps:$4 sm:$0xff]   ;;  %v3804_v34 = vld [vmem:[#allocation5 + $0x1e0] ss:$16 sps:$4 sm:$0xff]   ;;  %v491_v12 = vlaneseq }
  0x94   : > { %v3805_v35 = vld [vmem:[#allocation5 + $0x1e8] ss:$16 sps:$4 sm:$0xff]   ;;  %v3806_v36 = vld [vmem:[#allocation5 + $0x1c4] ss:$16 sps:$4 sm:$0xff]   ;;  %v3808_v37 = vld [vmem:[#allocation5 + $0x1cc] ss:$16 sps:$4 sm:$0xff]  }
  0x95   : > { %v3810_v38 = vld [vmem:[#allocation5 + $0x1c0] ss:$16 sps:$4 sm:$0xff]   ;;  %v3811_v39 = vld [vmem:[#allocation5 + $0x1c8] ss:$16 sps:$4 sm:$0xff]   ;;  %v3812_v40 = vld [vmem:[#allocation5 + $0x1a4] ss:$16 sps:$4 sm:$0xff]  }
  0x96   : > { %838 = vmatpush1.bf16.msra.mxu0 %v3774_v14  ;;  %891 = vmatpush1.bf16.msra.mxu1 %v3775_v15  ;;  %v3814_v41 = vld [vmem:[#allocation5 + $0x1ac] ss:$16 sps:$4 sm:$0xff]   ;;  %v3816_v42 = vld [vmem:[#allocation5 + $0x1a0] ss:$16 sps:$4 sm:$0xff]   ;;  %v3817_v43 = vld [vmem:[#allocation5 + $0x1a8] ss:$16 sps:$4 sm:$0xff]  }
  0x97   : > { %839 = vmatprep.subr.bf16.mxu0 %v3776_v16  ;;  %892 = vmatprep.subr.bf16.mxu1 %v3778_v17  ;;  %v3818_v44 = vld [vmem:[#allocation5 + $0x184] ss:$16 sps:$4 sm:$0xff]   ;;  %v3820_v45 = vld [vmem:[#allocation5 + $0x18c] ss:$16 sps:$4 sm:$0xff]   ;;  %v3822_v48 = vld [vmem:[#allocation5 + $0x180] ss:$16 sps:$4 sm:$0xff]  }
  0x98   : > { %v414_v46 = vld [vmem:[#allocation2 + $0x8] sm:$0xff]  ;;  %v416_v47 = vld [vmem:[#allocation2 + $0x18] sm:$0xff]  ;;  %v3824_v51 = vld [vmem:[#allocation5 + $0x164] ss:$16 sps:$4 sm:$0xff]   ;;  %v4566_v13 = vshrl.u32 %v491_v12, 7  ;;  %s5205_s18 = scalar_lea.vmem [#allocation13], %s3497_s7 }
  0x99   : > { %v3823_v49 = vld [vmem:[#allocation5 + $0x188] ss:$16 sps:$4 sm:$0xff]   ;;  %v422_v50 = vpack.c.bf16 %v416_v47, %v414_v46  ;;  %v3826_v52 = vld [vmem:[#allocation5 + $0x16c] ss:$16 sps:$4 sm:$0xff]   ;;  %v3828_v53 = vld [vmem:[#allocation5 + $0x160] ss:$16 sps:$4 sm:$0xff]  }
  0x9a   : > { %840 = vmatpush1.bf16.msra.mxu0 %v3780_v18  ;;  %893 = vmatpush1.bf16.msra.mxu1 %v3781_v19  ;;  %v3829_v54 = vld [vmem:[#allocation5 + $0x168] ss:$16 sps:$4 sm:$0xff]   ;;  %v3830_v55 = vld [vmem:[#allocation5 + $0x144] ss:$16 sps:$4 sm:$0xff]   ;;  %v3832_v56 = vld [vmem:[#allocation5 + $0x14c] ss:$16 sps:$4 sm:$0xff]  }
  0x9b   : > { %841 = vmatprep.subr.bf16.mxu0 %v3782_v20  ;;  %894 = vmatprep.subr.bf16.mxu1 %v3784_v21  ;;  %v3834_v57 = vld [vmem:[#allocation5 + $0x140] ss:$16 sps:$4 sm:$0xff]   ;;  %v3835_v58 = vld [vmem:[#allocation5 + $0x148] ss:$16 sps:$4 sm:$0xff]   ;;  %v3836_v59 = vld [vmem:[#allocation5 + $0x124] ss:$16 sps:$4 sm:$0xff]  }
  0x9c   : > { %863 = vmatprep.mubr.bf16.mxu0 %v422_v50  ;;  %916 = vmatprep.mubr.bf16.mxu1 %v422_v50  ;;  %v3838_v60 = vld [vmem:[#allocation5 + $0x12c] ss:$16 sps:$4 sm:$0xff]   ;;  %v3840_v61 = vld [vmem:[#allocation5 + $0x120] ss:$16 sps:$4 sm:$0xff]   ;;  %v3841_v62 = vld [vmem:[#allocation5 + $0x128] ss:$16 sps:$4 sm:$0xff]  }
  0x9d   : > { %v3842_v63 = vld [vmem:[#allocation5 + $0x104] ss:$16 sps:$4 sm:$0xff]   ;;  %v3844_v0 = vld [vmem:[#allocation5 + $0x10c] ss:$16 sps:$4 sm:$0xff]   ;;  %v3846_v1 = vld [vmem:[#allocation5 + $0x100] ss:$16 sps:$4 sm:$0xff]  }
  0x9e   : > { %842 = vmatpush1.bf16.msra.mxu0 %v3786_v22  ;;  %895 = vmatpush1.bf16.msra.mxu1 %v3787_v23  ;;  %v3847_v2 = vld [vmem:[#allocation5 + $0x108] ss:$16 sps:$4 sm:$0xff]   ;;  %v413_v3 = vld [vmem:[#allocation2] sm:$0xff]  ;;  %v415_v4 = vld [vmem:[#allocation2 + $0x10] sm:$0xff]  ;;  %v4569_v14 = vsub.s32 0, %v4566_v13  ;;  %v4572_v15 = vsub.s32 2, %v4566_v13 }
  0x9f   : > { %843 = vmatprep.subr.bf16.mxu0 %v3788_v24  ;;  %896 = vmatprep.subr.bf16.mxu1 %v3790_v25  ;;  %v418_v5 = vld [vmem:[#allocation2 + $0x28] sm:$0xff]  ;;  %v420_v6 = vld [vmem:[#allocation2 + $0x38] sm:$0xff]  ;;  %v421_v7 = vpack.c.bf16 %v415_v4, %v413_v3  ;;  %v417_v9 = vld [vmem:[#allocation2 + $0x20] sm:$0xff]  ;;  %v4575_v17 = vsub.s32 1, %v4566_v13  ;;  %v4578_v18 = vsub.s32 3, %v4566_v13  ;;  %s3490_s16 = smul.u32 3072, %s4297_s24 }
  0xa0   : > { %v424_v8 = vpack.c.bf16 %v420_v6, %v418_v5  ;;  %v419_v10 = vld [vmem:[#allocation2 + $0x30] sm:$0xff]  ;;  %v489_v16 = vld [vmem:[#allocation7] sm:$0xf]  ;;  %s3199_s1 = sshll.u32 %s5205_s18, 4  ;;  %s5829_s13 = sld [smem:[#allocation54_spill]]  ;;  %s5652_s1 = int_to_ptr.vmem [resolvable:$true] %s3199_s1 }
  0xa1   : > { %v423_v11 = vpack.c.bf16 %v419_v10, %v417_v9  ;;  %v494_v19 = vrot.slane %v489_v16, %v4569_v14  ;;  %v502_v20 = vrot.slane %v489_v16, %v4572_v15  ;;  %v498_v21 = vrot.slane %v489_v16, %v4575_v17  ;;  %s3183_s24 = scalar_lea.sflag [#allocation4], %s4547_s11  ;;  %s4213_s15 = scalar_lea.vmem %s5652_s1, 12288 }
  0xa2   : > { %844 = vmatpush1.bf16.msra.mxu0 %v3792_v26  ;;  %897 = vmatpush1.bf16.msra.mxu1 %v3793_v27  ;;  %v506_v22 = vrot.slane %v489_v16, %v4578_v18  ;;  %p4214_p7 = scmp.ne.s32.totalorder %s5652_s1, %s4213_s15  ;;  %p5830_p12 = scmp.ne.s32.totalorder %s5736_s8, 0 }
  0xa3   : > { %845 = vmatprep.subr.bf16.mxu0 %v3794_v28  ;;  %898 = vmatprep.subr.bf16.mxu1 %v3796_v29  ;;  %s4317_s17 = smov [#allocation13]  }
  0xa4   : > { %p4215_p13 = pnand %p4214_p7, %p5830_p12  ;;  %s4217_s21 = sshll.u32 %s4317_s17, 4  ;;  %s4218_s21 = int_to_ptr.vmem [resolvable:$false] %s4217_s21 }
  0xa5   : > { %s4219_s10 = scalar_lea.vmem %s4218_s21, 24576  ;;  %p4220_p11 = scmp.lt.s32.totalorder %s5652_s1, %s4218_s21 }
  0xa6   : > { %846 = vmatpush1.bf16.msra.mxu0 %v3798_v30  ;;  %899 = vmatpush1.bf16.msra.mxu1 %v3799_v31  ;;  %s5650_s9 = scalar_lea.hbm %s5829_s13, %s3490_s16  ;;  %p4216_p2 = pneg %p4215_p13 }
  0xa7   : > { %847 = vmatprep.subr.bf16.mxu0 %v3800_v32  ;;  %900 = vmatprep.subr.bf16.mxu1 %v3802_v33  ;;  %p4221_p6 = scmp.lt.s32.totalorder %s4219_s10, %s4213_s15 }
  0xa9   : > { %p4222_p10 = por %p4221_p6, %p4220_p11 }
  0xaa   : > { %848 = vmatpush2.bf16.msra.mxu0 %v3804_v34  ;;  %901 = vmatpush2.bf16.msra.mxu1 %v3805_v35 }
  0xab   : > { %849 = vmatprep.subr.bf16.mxu0 %v3806_v36  ;;  %902 = vmatprep.subr.bf16.mxu1 %v3808_v37  ;;  %p4223_p1 = pnand %p4222_p10, %p4216_p2 }
  0xae   : > { %850 = vmatpush2.bf16.msra.mxu0 %v3810_v38  ;;  %903 = vmatpush2.bf16.msra.mxu1 %v3811_v39 }
  0xaf   : > { %851 = vmatprep.subr.bf16.mxu0 %v3812_v40  ;;  %904 = vmatprep.subr.bf16.mxu1 %v3814_v41 }
  0xb2   : > { %852 = vmatpush2.bf16.msra.mxu0 %v3816_v42  ;;  %905 = vmatpush2.bf16.msra.mxu1 %v3817_v43 }
  0xb3   : > { %853 = vmatprep.subr.bf16.mxu0 %v3818_v44  ;;  %906 = vmatprep.subr.bf16.mxu1 %v3820_v45 }
  0xb6   : > { %854 = vmatpush2.bf16.msra.mxu0 %v3822_v48  ;;  %907 = vmatpush2.bf16.msra.mxu1 %v3823_v49 }
  0xb7   : > { %855 = vmatprep.subr.bf16.mxu0 %v3824_v51  ;;  %908 = vmatprep.subr.bf16.mxu1 %v3826_v52 }
  0xba   : > { %856 = vmatpush2.bf16.msra.mxu0 %v3828_v53  ;;  %909 = vmatpush2.bf16.msra.mxu1 %v3829_v54 }
  0xbb   : > { %857 = vmatprep.subr.bf16.mxu0 %v3830_v55  ;;  %910 = vmatprep.subr.bf16.mxu1 %v3832_v56 }
  0xbe   : > { %858 = vmatpush2.bf16.msra.mxu0 %v3834_v57  ;;  %911 = vmatpush2.bf16.msra.mxu1 %v3835_v58 }
  0xbf   : > { %859 = vmatprep.subr.bf16.mxu0 %v3836_v59  ;;  %912 = vmatprep.subr.bf16.mxu1 %v3838_v60 }
  0xc2   : > { %860 = vmatpush2.bf16.msra.mxu0 %v3840_v61  ;;  %913 = vmatpush2.bf16.msra.mxu1 %v3841_v62 }
  0xc3   : > { %861 = vmatprep.subr.bf16.mxu0 %v3842_v63  ;;  %914 = vmatprep.subr.bf16.mxu1 %v3844_v0 }
  0xc6   : > { %862 = vmatpush2.bf16.msra.mxu0 %v3846_v1  ;;  %915 = vmatpush2.bf16.msra.mxu1 %v3847_v2 }
  0xc9   : > { %864 = vmatmul.mubr.bf16.vlgmr.msra.gmra.mxu0 %v421_v7  ;;  %917 = vmatmul.mubr.bf16.vlgmr.msra.gmra.mxu1 %v421_v7 }
  0xca   : > { %873 = vmatprep.mubr.bf16.mxu0 %v424_v8  ;;  %926 = vmatprep.mubr.bf16.mxu1 %v424_v8 }
  0xd1   : > { %874 = vmatmul.mubr.bf16.gmra.mxu0 %v423_v11  ;;  %927 = vmatmul.mubr.bf16.gmra.mxu1 %v423_v11 }
 0x189   : > { %v865_v23 = vpop.f32.mrf.mxu0  ;;  %v918_v24 = vpop.f32.mrf.mxu1 }
 0x18a   : > { %v4584_v25 = vadd.f32 %v865_v23, %v494_v19  ;;  %v4586_v26 = vadd.f32 %v918_v24, %v502_v20 }
 0x18b   : > { %v867_v27 = vpop.f32.mrf.mxu0  ;;  %v920_v28 = vpop.f32.mrf.mxu1 }
 0x18c   : > { %v4588_v29 = vadd.f32 %v867_v27, %v498_v21  ;;  %v4590_v30 = vadd.f32 %v920_v28, %v506_v22  ;;  %v937_v31 = vmax.f32 %v4584_v25, 0.0  ;;  %v939_v32 = vmax.f32 %v4586_v26, 0.0 }
 0x18d   : > { %v869_v33 = vpop.f32.mrf.mxu0  ;;  %v922_v34 = vpop.f32.mrf.mxu1 }
 0x18e   : > { %v938_v35 = vmax.f32 %v4588_v29, 0.0  ;;  %v940_v36 = vmax.f32 %v4590_v30, 0.0  ;;  %v4596_v37 = vadd.f32 %v869_v33, %v494_v19  ;;  %v4598_v38 = vadd.f32 %v922_v34, %v502_v20 }
 0x18f   : > { %v871_v39 = vpop.f32.mrf.mxu0  ;;  %v924_v40 = vpop.f32.mrf.mxu1  ;;  %v953_v44 = vand.u32 2147483647, %v937_v31  ;;  %v955_v45 = vand.u32 2147483647, %v939_v32 }
 0x190   : > { %v954_v41 = vand.u32 2147483647, %v938_v35  ;;  %v4602_v42 = vadd.f32 %v871_v39, %v498_v21  ;;  %v4604_v43 = vadd.f32 %v924_v40, %v506_v22  ;;  %v5730_v46 = vmax.f32 %v4596_v37, 0.0 }
 0x191   : > { %v5728_v47 = vmax.f32 %v4598_v38, 0.0  ;;  %v875_v48 = vpop.f32.mrf.mxu0  ;;  %v928_v49 = vpop.f32.mrf.mxu1  ;;  %v956_v56 = vand.u32 2147483647, %v940_v36 }
 0x192   : > { %v5729_v50 = vmax.f32 %v4602_v42, 0.0  ;;  %v5727_v51 = vmax.f32 %v4604_v43, 0.0  ;;  %v4614_v52 = vadd.f32 %v875_v48, %v494_v19  ;;  %v4616_v53 = vadd.f32 %v928_v49, %v502_v20 }
 0x193   : > { %v877_v54 = vpop.f32.mrf.mxu0  ;;  %v930_v55 = vpop.f32.mrf.mxu1  ;;  %v969_v57 = vmax.f32.f32 %v953_v44, %v954_v41  ;;  %v957_v58 = vand.u32 2147483647, %v5730_v46  ;;  %v959_v3 = vand.u32 2147483647, %v5728_v47 }
 0x194   : > { %v958_v59 = vand.u32 2147483647, %v5729_v50  ;;  %v5726_v60 = vmax.f32 %v4614_v52, 0.0  ;;  %v5724_v61 = vmax.f32 %v4616_v53, 0.0  ;;  %v4626_v62 = vadd.f32 %v877_v54, %v498_v21 }
 0x195   : > { %v4628_v63 = vadd.f32 %v930_v55, %v506_v22  ;;  %v879_v0 = vpop.f32.mrf.mxu0  ;;  %v932_v1 = vpop.f32.mrf.mxu1  ;;  %v970_v2 = vmax.f32.f32 %v969_v57, %v955_v45  ;;  %v960_v5 = vand.u32 2147483647, %v5727_v51 }
 0x196   : > { %v974_v4 = vmax.f32.f32 %v957_v58, %v958_v59  ;;  %v4634_v6 = vadd.f32 %v879_v0, %v494_v19  ;;  %v961_v7 = vand.u32 2147483647, %v5726_v60  ;;  %v5725_v8 = vmax.f32 %v4626_v62, 0.0  ;;  %v1198_v58 = vld [vmem:[%s4550_s29 + $0x248] sm:$0xff]  ;;  %v1197_v0 = vld [vmem:[%s4550_s29 + $0x240] sm:$0xff] }
 0x197   : > { %v4639_v9 = vadd.f32 %v932_v1, %v502_v20  ;;  %v881_v10 = vpop.f32.mrf.mxu0  ;;  %v934_v11 = vpop.f32.mrf.mxu1  ;;  %v971_v12 = vmax.f32.f32 %v970_v2, %v956_v56  ;;  %v963_v19 = vand.u32 2147483647, %v5724_v61  ;;  %v5723_v33 = vmax.f32 %v4628_v63, 0.0  ;;  %v1390_v59 = vld [vmem:[%s4550_s29 + $0x848] sm:$0xff]  ;;  %1509 = vmatprep.subr.s8.mxu0 %v1198_v58  ;;  %v1389_v1 = vld [vmem:[%s4550_s29 + $0x840] sm:$0xff] }
 0x198   : > { %v5722_v16 = vmax.f32 %v4634_v6, 0.0  ;;  %v4642_v23 = vadd.f32 %v881_v10, %v498_v21  ;;  %v4644_v24 = vadd.f32 %v934_v11, %v506_v22  ;;  %v975_v27 = vmax.f32.f32 %v974_v4, %v959_v3  ;;  %1544 = vmatprep.subr.s8.mxu1 %v1390_v59  ;;  %1510 = vmatpush1.s8.msra.mxu0 %v1197_v0  ;;  %v1174_v2 = vld [vmem:[%s4550_s29 + $0x188] sm:$0xff]  ;;  %v1173_v4 = vld [vmem:[%s4550_s29 + $0x180] sm:$0xff] }
 0x199   : > { %v962_v28 = vand.u32 2147483647, %v5725_v8  ;;  %972 = vmax.xlane.f32.xlu0 %v971_v12  ;;  %v5720_v20 = vmax.f32 %v4639_v9, 0.0  ;;  %v964_v44 = vand.u32 2147483647, %v5723_v33  ;;  %1545 = vmatpush1.s8.msra.mxu1 %v1389_v1  ;;  %v1366_v3 = vld [vmem:[%s4550_s29 + $0x788] sm:$0xff] }
 0x19a   : > { %v5721_v34 = vmax.f32 %v4642_v23, 0.0  ;;  %v976_v39 = vmax.f32.f32 %v975_v27, %v960_v5  ;;  %v965_v22 = vand.u32 2147483647, %v5722_v16  ;;  %v5719_v41 = vmax.f32 %v4644_v24, 0.0  ;;  %1511 = vmatprep.subr.s8.mxu0 %v1174_v2  ;;  %1546 = vmatprep.subr.s8.mxu1 %v1366_v3  ;;  %v1365_v5 = vld [vmem:[%s4550_s29 + $0x780] sm:$0xff]  ;;  %v1342_v10 = vld [vmem:[%s4550_s29 + $0x6c8] sm:$0xff] }
 0x19b   : > { %v979_v21 = vmax.f32.f32 %v961_v7, %v962_v28  ;;  %v967_v48 = vand.u32 2147483647, %v5720_v20  ;;  %v1150_v7 = vld [vmem:[%s4550_s29 + $0xc8] sm:$0xff]  ;;  %v1149_v11 = vld [vmem:[%s4550_s29 + $0xc0] sm:$0xff]  ;;  %v1200_v3 = vld [vmem:[%s4550_s29 + $0x258] sm:$0xff] }
 0x19c   : > { %v966_v40 = vand.u32 2147483647, %v5721_v34  ;;  %v968_v55 = vand.u32 2147483647, %v5719_v41  ;;  %1512 = vmatpush1.s8.msra.mxu0 %v1173_v4  ;;  %v1341_v12 = vld [vmem:[%s4550_s29 + $0x6c0] sm:$0xff]  ;;  %v1126_v27 = vld [vmem:[%s4550_s29 + $0x8] sm:$0xff] }
 0x19d   : > { %977 = vmax.xlane.f32.xlu0 %v976_v39  ;;  %v980_v45 = vmax.f32.f32 %v979_v21, %v963_v19  ;;  %1547 = vmatpush1.s8.msra.mxu1 %v1365_v5  ;;  %v1318_v19 = vld [vmem:[%s4550_s29 + $0x608] sm:$0xff]  ;;  %v1125_v28 = vld [vmem:[%s4550_s29] sm:$0xff]  ;;  %v1392_v4 = vld [vmem:[%s4550_s29 + $0x858] sm:$0xff]  ;;  %v4699_v5 = vsub.s32 4, %v4566_v13 }
 0x19e   : > { %v984_v49 = vmax.f32.f32 %v965_v22, %v966_v40  ;;  %1513 = vmatprep.subr.s8.mxu0 %v1150_v7  ;;  %1548 = vmatprep.subr.s8.mxu1 %v1342_v10  ;;  %v1317_v39 = vld [vmem:[%s4550_s29 + $0x600] sm:$0xff]  ;;  %v1294_v21 = vld [vmem:[%s4550_s29 + $0x548] sm:$0xff]  ;;  %v4702_v7 = vsub.s32 5, %v4566_v13  ;;  %v4705_v10 = vsub.s32 6, %v4566_v13 }
 0x19f   : > { %v981_v54 = vmax.f32.f32 %v980_v45, %v964_v44  ;;  %v1486_v22 = vld [vmem:[%s4550_s29 + $0xb48] sm:$0xff]  ;;  %v1293_v40 = vld [vmem:[%s4550_s29 + $0x540] sm:$0xff] }
 0x1a0   : > { %v985_v56 = vmax.f32.f32 %v984_v49, %v967_v48  ;;  %1514 = vmatpush1.s8.msra.mxu0 %v1149_v11  ;;  %v1485_v44 = vld [vmem:[%s4550_s29 + $0xb40] sm:$0xff]  ;;  %v1270_v45 = vld [vmem:[%s4550_s29 + $0x488] sm:$0xff] }
 0x1a1   : > { %982 = vmax.xlane.f32.xlu1 %v981_v54  ;;  %1549 = vmatpush1.s8.msra.mxu1 %v1341_v12  ;;  %v1462_v48 = vld [vmem:[%s4550_s29 + $0xa88] sm:$0xff]  ;;  %v1269_v49 = vld [vmem:[%s4550_s29 + $0x480] sm:$0xff]  ;;  %v4709_v12 = vsub.s32 7, %v4566_v13 }
 0x1a2   : > { %v986_v57 = vmax.f32.f32 %v985_v56, %v968_v55  ;;  %1515 = vmatprep.subr.s8.mxu0 %v1126_v27  ;;  %1550 = vmatprep.subr.s8.mxu1 %v1318_v19  ;;  %v1461_v54 = vld [vmem:[%s4550_s29 + $0xa80] sm:$0xff]  ;;  %v1246_v55 = vld [vmem:[%s4550_s29 + $0x3c8] sm:$0xff] }
 0x1a3   : > { %v1438_v56 = vld [vmem:[%s4550_s29 + $0x9c8] sm:$0xff]  ;;  %v1437_v58 = vld [vmem:[%s4550_s29 + $0x9c0] sm:$0xff] }
 0x1a4   : > { %1516 = vmatpush1.s8.msra.mxu0 %v1125_v28  ;;  %v1222_v59 = vld [vmem:[%s4550_s29 + $0x308] sm:$0xff]  ;;  %v1221_v1 = vld [vmem:[%s4550_s29 + $0x300] sm:$0xff] }
 0x1a5   : > { %987 = vmax.xlane.f32.xlu1 %v986_v57  ;;  %1551 = vmatpush1.s8.msra.mxu1 %v1317_v39  ;;  %v1245_v57 = vld [vmem:[%s4550_s29 + $0x3c0] sm:$0xff]  ;;  %v1414_v0 = vld [vmem:[%s4550_s29 + $0x908] sm:$0xff] }
 0x1a6   : > { %1517 = vmatprep.subr.s8.mxu0 %v1294_v21  ;;  %1552 = vmatprep.subr.s8.mxu1 %v1486_v22  ;;  %v1413_v2 = vld [vmem:[%s4550_s29 + $0x900] sm:$0xff] }
 0x1a7   : > { %v2450_v11 = vld [vmem:[%s4557_s20] sm:$0xff]  ;;  %v4712_v28 = vld [vmem:[%s4557_s20 + $0x8] sm:$0xff] }
 0x1a8   : > { %1518 = vmatpush2.s8.msra.mxu0 %v1293_v40  ;;  %v2475_v39 = vrot.slane %v2450_v11, %v4699_v5  ;;  %v2479_v21 = vrot.slane %v2450_v11, %v4702_v7  ;;  %v2483_v22 = vrot.slane %v2450_v11, %v4705_v10  ;;  %v2507_v13 = vrot.slane %v4712_v28, %v4699_v5 }
 0x1a9   : > { %1553 = vmatpush2.s8.msra.mxu1 %v1485_v44  ;;  %1519 = vmatprep.subr.s8.mxu0 %v1270_v45  ;;  %v2487_v44 = vrot.slane %v2450_v11, %v4709_v12 }
 0x1aa   : > { %1554 = vmatprep.subr.s8.mxu1 %v1462_v48 }
 0x1ac   : > { %1520 = vmatpush2.s8.msra.mxu0 %v1269_v49 }
 0x1ad   : > { %1555 = vmatpush2.s8.msra.mxu1 %v1461_v54  ;;  %1521 = vmatprep.subr.s8.mxu0 %v1246_v55 }
 0x1ae   : > { %1556 = vmatprep.subr.s8.mxu1 %v1438_v56 }
 0x1b0   : > { %1522 = vmatpush2.s8.msra.mxu0 %v1245_v57 }
 0x1b1   : > { %1557 = vmatpush2.s8.msra.mxu1 %v1437_v58  ;;  %1523 = vmatprep.subr.s8.mxu0 %v1222_v59 }
 0x1b2   : > { %1558 = vmatprep.subr.s8.mxu1 %v1414_v0  ;;  %v2511_v0 = vrot.slane %v4712_v28, %v4702_v7 }
 0x1b4   : > { %1524 = vmatpush2.s8.msra.mxu0 %v1221_v1 }
 0x1b5   : > { %1559 = vmatpush2.s8.msra.mxu1 %v1413_v2  ;;  %1579 = vmatprep.subr.s8.mxu0 %v1200_v3 }
 0x1b6   : > { %1614 = vmatprep.subr.s8.mxu1 %v1392_v4 }
 0x222   : > { %v973_v27 = vpop.xlane.xlu0 %972 }
 0x223   : > { %v989_v19 = vmax.f32 %v973_v27, 1e-12 }
 0x225   : > { %3848 = vrcp.f32 %v989_v19  ;;  %v4717_v40 = vmul.f32 0.007874016, %v989_v19 }
 0x226   : > { %v978_v45 = vpop.xlane.xlu0 %977 }
 0x227   : > { %v990_v48 = vmax.f32 %v978_v45, 1e-12  ;;  %v4723_v49 = vmul.f32 %v2475_v39, %v4717_v40  ;;  %v4726_v54 = vmul.f32 %v2479_v21, %v4717_v40  ;;  %v4729_v55 = vmul.f32 %v2483_v22, %v4717_v40 }
 0x228   : > { %v4734_v57 = vmul.f32 %v2487_v44, %v4717_v40  ;;  %v4737_v59 = vmul.f32 %v2507_v13, %v4717_v40  ;;  %v4756_v45 = vmul.f32 %v2511_v0, %v4717_v40 }
 0x229   : > { %3850 = vrcp.f32 %v990_v48  ;;  %v4731_v56 = vmul.f32 0.007874016, %v990_v48 }
 0x22a   : > { %v983_v58 = vpop.xlane.xlu1 %982  ;;  %5755 = vst [vmem:[#allocation22_spill] sm:$0xff] %v4737_v59  ;;  %5756 = vst [vmem:[#allocation23_spill] sm:$0xff] %v4756_v45 }
 0x22b   : > { %v991_v1 = vmax.f32 %v983_v58, 1e-12  ;;  %v4742_v2 = vmul.f32 %v2475_v39, %v4731_v56  ;;  %v4745_v3 = vmul.f32 %v2479_v21, %v4731_v56  ;;  %v4748_v4 = vmul.f32 %v2483_v22, %v4731_v56 }
 0x22c   : > { %v4753_v27 = vmul.f32 %v2487_v44, %v4731_v56  ;;  %v4773_v33 = vmul.f32 %v2507_v13, %v4731_v56 }
 0x22d   : > { %3852 = vrcp.f32 %v991_v1  ;;  %v4750_v11 = vmul.f32 0.007874016, %v991_v1 }
 0x22e   : > { %v988_v19 = vpop.xlane.xlu1 %987  ;;  %5757 = vst [vmem:[#allocation24_spill] sm:$0xff] %v4773_v33 }
 0x22f   : > { %v992_v48 = vmax.f32 %v988_v19, 1e-12  ;;  %v4759_v58 = vmul.f32 %v2475_v39, %v4750_v11  ;;  %v4762_v41 = vmul.f32 %v2479_v21, %v4750_v11  ;;  %v4765_v20 = vmul.f32 %v2483_v22, %v4750_v11 }
 0x230   : > { %v4770_v1 = vmul.f32 %v2487_v44, %v4750_v11  ;;  %v4799_v25 = vmul.f32 %v2507_v13, %v4750_v11 }
 0x231   : > { %v4767_v34 = vmul.f32 0.007874016, %v992_v48  ;;  %3854 = vrcp.f32 %v992_v48 }
 0x232   : > { %v3849_v16 = vpop.eup %3848  ;;  %5761 = vst [vmem:[#allocation28_spill] sm:$0xff] %v4799_v25 }
 0x233   : > { %v994_v19 = vmul.f32 127.0, %v3849_v16  ;;  %v4776_v61 = vmul.f32 %v2475_v39, %v4767_v34  ;;  %v4779_v8 = vmul.f32 %v2479_v21, %v4767_v34  ;;  %v4782_v60 = vmul.f32 %v2483_v22, %v4767_v34 }
 0x234   : > { %v4793_v39 = vmul.f32 %v2487_v44, %v4767_v34  ;;  %v4796_v22 = vmul.f32 %v2511_v0, %v4731_v56  ;;  %v4810_v44 = vmul.f32 %v2511_v0, %v4767_v34 }
 0x235   : > { %5758 = vst [vmem:[#allocation25_spill] sm:$0xff] %v4782_v60  ;;  %v1001_v51 = vmul.f32 %v994_v19, %v937_v31  ;;  %v1002_v48 = vmul.f32 %v994_v19, %v938_v35  ;;  %v1003_v50 = vmul.f32 %v994_v19, %v939_v32  ;;  %v1004_v16 = vmul.f32 %v994_v19, %v940_v36  ;;  %v4813_v19 = vld [vmem:[%s4557_s20 + $0x10] sm:$0xff] }
 0x236   : > { %v3851_v47 = vpop.eup %3850  ;;  %5759 = vst [vmem:[#allocation26_spill] sm:$0xff] %v4793_v39  ;;  %5760 = vst [vmem:[#allocation27_spill] sm:$0xff] %v4796_v22  ;;  %v5762_v32 = vmax.f32 %v4596_v37, 0.0  ;;  %v4804_v36 = vmul.f32 %v2511_v0, %v4750_v11  ;;  %v5768_v37 = vmax.f32 %v4604_v43, 0.0  ;;  %v5771_v0 = vmax.f32 %v4616_v53, 0.0 }
 0x237   : > { %v996_v21 = vmul.f32 127.0, %v3851_v47  ;;  %v3453_v31 = vclamps-f32 %v1001_v51, 127.0  ;;  %v3455_v35 = vclamps-f32 %v1002_v48, 127.0  ;;  %v3457_v46 = vclamps-f32 %v1003_v50, 127.0  ;;  %5765 = vst [vmem:[#allocation31_spill] sm:$0xff] %v4810_v44 }
 0x238   : > { %v3459_v26 = vclamps-f32 %v1004_v16, 127.0  ;;  %5763 = vst [vmem:[#allocation29_spill] sm:$0xff] %v4804_v36  ;;  %v4807_v47 = vmul.f32 %v2507_v13, %v4767_v34  ;;  %v5766_v51 = vmax.f32 %v4602_v42, 0.0  ;;  %v5767_v50 = vmax.f32 %v4598_v38, 0.0 }
 0x239   : > { %v1005_v30 = vmul.f32 %v996_v21, %v5762_v32  ;;  %v5769_v36 = vmax.f32 %v4614_v52, 0.0  ;;  %v5770_v13 = vmax.f32 %v4626_v62, 0.0  ;;  %v5772_v22 = vmax.f32 %v4628_v63, 0.0 }
 0x23a   : > { %v3853_v29 = vpop.eup %3852  ;;  %5764 = vst [vmem:[#allocation30_spill] sm:$0xff] %v4807_v47  ;;  %v1006_v48 = vmul.f32 %v996_v21, %v5766_v51  ;;  %v1007_v16 = vmul.f32 %v996_v21, %v5767_v50  ;;  %v2515_v38 = vrot.slane %v4712_v28, %v4705_v10  ;;  %v2519_v43 = vrot.slane %v4712_v28, %v4709_v12 }
 0x23b   : > { %v998_v33 = vmul.f32 127.0, %v3853_v29  ;;  %v1008_v29 = vmul.f32 %v996_v21, %v5768_v37  ;;  %v3461_v32 = vclamps-f32 %v1005_v30, 127.0  ;;  %v4835_v21 = vrot.slane %v4813_v19, %v4699_v5 }
 0x23c   : > { %v4839_v52 = vrot.slane %v4813_v19, %v4702_v7  ;;  %v3500_v53 = vcvt.f32.s32 %v3453_v31  ;;  %v3503_v30 = vcvt.f32.s32 %v3455_v35  ;;  %v3509_v63 = vcvt.f32.s32 %v3459_v26 }
 0x23d   : > { %v1009_v25 = vmul.f32 %v998_v33, %v5769_v36  ;;  %v1010_v47 = vmul.f32 %v998_v33, %v5770_v13  ;;  %v1011_v44 = vmul.f32 %v998_v33, %v5771_v0  ;;  %v1012_v42 = vmul.f32 %v998_v33, %v5772_v22 }
 0x23e   : > { %v3855_v62 = vpop.eup %3854  ;;  %v3506_v36 = vcvt.f32.s32 %v3457_v46  ;;  %v3512_v33 = vcvt.f32.s32 %v3461_v32  ;;  %v3463_v22 = vclamps-f32 %v1006_v48, 127.0  ;;  %v3465_v51 = vclamps-f32 %v1007_v16, 127.0 }
 0x23f   : > { %v3467_v50 = vclamps-f32 %v1008_v29, 127.0  ;;  %v3469_v37 = vclamps-f32 %v1009_v25, 127.0  ;;  %v3471_v13 = vclamps-f32 %v1010_v47, 127.0  ;;  %v3473_v28 = vclamps-f32 %v1011_v44, 127.0 }
 0x240   : > { %v3475_v0 = vclamps-f32 %v1012_v42, 127.0  ;;  %v1000_v45 = vmul.f32 127.0, %v3855_v62  ;;  %v4842_v59 = vmul.f32 %v2515_v38, %v4717_v40  ;;  %v4845_v39 = vmul.f32 %v2519_v43, %v4717_v40 }
 0x241   : > { %v4848_v31 = vmul.f32 %v2515_v38, %v4731_v56  ;;  %v4851_v46 = vmul.f32 %v2519_v43, %v4731_v56  ;;  %v4854_v35 = vmul.f32 %v2515_v38, %v4750_v11  ;;  %v4857_v25 = vmul.f32 %v2519_v43, %v4750_v11 }
 0x242   : > { %5773 = vst [vmem:[#allocation32_spill] sm:$0xff] %v4842_v59  ;;  %5774 = vst [vmem:[#allocation33_spill] sm:$0xff] %v4845_v39  ;;  %v4860_v26 = vmul.f32 %v2515_v38, %v4767_v34  ;;  %v5780_v47 = vmax.f32 %v4634_v6, 0.0  ;;  %v5781_v48 = vmax.f32 %v4642_v23, 0.0  ;;  %v5782_v29 = vmax.f32 %v4639_v9, 0.0 }
 0x243   : > { %5775 = vst [vmem:[#allocation34_spill] sm:$0xff] %v4848_v31  ;;  %5776 = vst [vmem:[#allocation35_spill] sm:$0xff] %v4851_v46  ;;  %v5783_v42 = vmax.f32 %v4644_v24, 0.0  ;;  %v3515_v46 = vcvt.f32.s32 %v3463_v22  ;;  %v3521_v31 = vcvt.f32.s32 %v3467_v50  ;;  %v3527_v59 = vcvt.f32.s32 %v3471_v13 }
 0x244   : > { %5777 = vst [vmem:[#allocation36_spill] sm:$0xff] %v4854_v35  ;;  %5778 = vst [vmem:[#allocation37_spill] sm:$0xff] %v4857_v25  ;;  %v1013_v44 = vmul.f32 %v1000_v45, %v5780_v47  ;;  %v1014_v16 = vmul.f32 %v1000_v45, %v5781_v48  ;;  %v1015_v32 = vmul.f32 %v1000_v45, %v5782_v29  ;;  %v3518_v35 = vcvt.f32.s32 %v3465_v51 }
 0x245   : > { %5779 = vst [vmem:[#allocation38_spill] sm:$0xff] %v4860_v26  ;;  %v1016_v62 = vmul.f32 %v1000_v45, %v5783_v42  ;;  %v4871_v25 = vmul.f32 %v2519_v43, %v4767_v34  ;;  %v3524_v47 = vcvt.f32.s32 %v3469_v37  ;;  %v3530_v23 = vcvt.f32.s32 %v3473_v28 }
 0x246   : > { %v3477_v38 = vclamps-f32 %v1013_v44, 127.0  ;;  %v3479_v26 = vclamps-f32 %v1014_v16, 127.0  ;;  %v3481_v39 = vclamps-f32 %v1015_v32, 127.0  ;;  %v3533_v48 = vcvt.f32.s32 %v3475_v0 }
 0x247   : > { %v3483_v6 = vclamps-f32 %v1016_v62, 127.0  ;;  %v1113_v45 = vpack.c.b16 %v3512_v33, %v3500_v53  ;;  %v1116_v22 = vpack.c.b16 %v3515_v46, %v3503_v30  ;;  %v1119_v51 = vpack.c.b16 %v3518_v35, %v3506_v36  ;;  %v1176_v46 = vld [vmem:[%s4550_s29 + $0x198] sm:$0xff] }
 0x248   : > { %v3536_v60 = vcvt.f32.s32 %v3477_v38  ;;  %v3539_v9 = vcvt.f32.s32 %v3479_v26  ;;  %v3542_v29 = vcvt.f32.s32 %v3481_v39  ;;  %v1122_v50 = vpack.c.b16 %v3521_v31, %v3509_v63  ;;  %v1368_v35 = vld [vmem:[%s4550_s29 + $0x798] sm:$0xff] }
 0x249   : > { %v3545_v24 = vcvt.f32.s32 %v3483_v6  ;;  %v2547_v37 = vrot.slane %v4813_v19, %v4705_v10  ;;  %v2551_v13 = vrot.slane %v4813_v19, %v4709_v12  ;;  %v4889_v36 = vmul.f32 %v4835_v21, %v4717_v40 }
 0x24a   : > { %v1114_v43 = vpack.c.b16 %v3536_v60, %v3524_v47  ;;  %v1117_v42 = vpack.c.b16 %v3539_v9, %v3527_v59  ;;  %v1120_v44 = vpack.c.b16 %v3542_v29, %v3530_v23  ;;  %v1199_v60 = vld [vmem:[%s4550_s29 + $0x250] sm:$0xff]  ;;  %v4893_v63 = vmul.f32 %v4839_v52, %v4717_v40  ;;  %v1152_v29 = vld [vmem:[%s4550_s29 + $0xd8] sm:$0xff] }
 0x24b   : > { %v1123_v16 = vpack.c.b16 %v3545_v24, %v3533_v48  ;;  %v1391_v59 = vld [vmem:[%s4550_s29 + $0x850] sm:$0xff]  ;;  %v4897_v19 = vmul.f32 %v4835_v21, %v4731_v56  ;;  %v4903_v33 = vmul.f32 %v4839_v52, %v4731_v56  ;;  %v4907_v0 = vmul.f32 %v4835_v21, %v4750_v11  ;;  %v1344_v24 = vld [vmem:[%s4550_s29 + $0x6d8] sm:$0xff] }
 0x24c   : > { %v4877_v28 = vpack.c.b8 %v1114_v43, %v1113_v45  ;;  %v4879_v39 = vpack.c.b8 %v1117_v42, %v1116_v22  ;;  %v4881_v53 = vpack.c.b8 %v1120_v44, %v1119_v51  ;;  %v4911_v31 = vmul.f32 %v4839_v52, %v4750_v11  ;;  %v1367_v47 = vld [vmem:[%s4550_s29 + $0x790] sm:$0xff]  ;;  %v1320_v43 = vld [vmem:[%s4550_s29 + $0x618] sm:$0xff] }
 0x24d   : > { %v4883_v30 = vpack.c.b8 %v1123_v16, %v1122_v50  ;;  %5784 = vst [vmem:[#allocation39_spill] sm:$0xff] %v4897_v19  ;;  %5785 = vst [vmem:[#allocation40_spill] sm:$0xff] %v4903_v33  ;;  %v4919_v26 = vmul.f32 %v4835_v21, %v4767_v34  ;;  %v4923_v32 = vmul.f32 %v4839_v52, %v4767_v34  ;;  %v1175_v52 = vld [vmem:[%s4550_s29 + $0x190] sm:$0xff]  ;;  %v1128_v50 = vld [vmem:[%s4550_s29 + $0x18] sm:$0xff] }
 0x24e   : > { %1525 = vmatprep.mubr.s8.mxu0 %v4879_v39  ;;  %5786 = vst [vmem:[#allocation41_spill] sm:$0xff] %v4907_v0  ;;  %5787 = vst [vmem:[#allocation42_spill] sm:$0xff] %v4911_v31  ;;  %v4926_v62 = vmul.f32 %v2547_v37, %v4717_v40  ;;  %v4929_v38 = vmul.f32 %v2551_v13, %v4717_v40  ;;  %v4932_v6 = vmul.f32 %v2547_v37, %v4731_v56  ;;  %v1151_v22 = vld [vmem:[%s4550_s29 + $0xd0] sm:$0xff]  ;;  %v1296_v16 = vld [vmem:[%s4550_s29 + $0x558] sm:$0xff] }
 0x24f   : > { %1560 = vmatprep.mubr.s8.mxu1 %v4883_v30  ;;  %1526 = vmatmul.mubr.s8.vlgmr.msra.gmra.mxu0 %v4877_v28  ;;  %5788 = vst [vmem:[#allocation43_spill] sm:$0xff] %v4919_v26  ;;  %5789 = vst [vmem:[#allocation44_spill] sm:$0xff] %v4923_v32  ;;  %v4935_v21 = vmul.f32 %v2551_v13, %v4731_v56  ;;  %v4942_v23 = vmul.f32 %v2547_v37, %v4750_v11  ;;  %v1343_v51 = vld [vmem:[%s4550_s29 + $0x6d0] sm:$0xff]  ;;  %v1425_v26 = vld [vmem:[%s4550_s29 + $0x960] sm:$0xff] }
 0x250   : > { %1561 = vmatmul.mubr.s8.vlgmr.msra.gmra.mxu1 %v4881_v53  ;;  %5790 = vst [vmem:[#allocation45_spill] sm:$0xff] %v4926_v62  ;;  %1580 = vmatpush1.s8.msra.mxu0 %v1199_v60  ;;  %5791 = vst [vmem:[#allocation46_spill] sm:$0xff] %v4929_v38  ;;  %v4945_v48 = vmul.f32 %v2551_v13, %v4750_v11  ;;  %v4948_v9 = vmul.f32 %v2547_v37, %v4767_v34  ;;  %v1127_v42 = vld [vmem:[%s4550_s29 + $0x10] sm:$0xff]  ;;  %v1488_v37 = vld [vmem:[%s4550_s29 + $0xb58] sm:$0xff] }
 0x251   : > { %1615 = vmatpush1.s8.msra.mxu1 %v1391_v59  ;;  %5792 = vst [vmem:[#allocation47_spill] sm:$0xff] %v4932_v6  ;;  %5793 = vst [vmem:[#allocation48_spill] sm:$0xff] %v4935_v21  ;;  %1595 = vmatprep.mubr.s8.mxu0 %v4879_v39  ;;  %v4953_v45 = vmul.f32 %v2551_v13, %v4767_v34  ;;  %v1319_v44 = vld [vmem:[%s4550_s29 + $0x610] sm:$0xff]  ;;  %v1272_v59 = vld [vmem:[%s4550_s29 + $0x498] sm:$0xff] }
 0x252   : > { %1630 = vmatprep.mubr.s8.mxu1 %v4883_v30  ;;  %5794 = vst [vmem:[#allocation49_spill] sm:$0xff] %v4942_v23  ;;  %5795 = vst [vmem:[#allocation50_spill] sm:$0xff] %v4945_v48  ;;  %1581 = vmatprep.subr.s8.mxu0 %v1176_v46  ;;  %v1295_v13 = vld [vmem:[%s4550_s29 + $0x550] sm:$0xff]  ;;  %v1464_v46 = vld [vmem:[%s4550_s29 + $0xa98] sm:$0xff] }
 0x253   : > { %5796 = vst [vmem:[#allocation51_spill] sm:$0xff] %v4948_v9  ;;  %1616 = vmatprep.subr.s8.mxu1 %v1368_v35  ;;  %5797 = vst [vmem:[#allocation52_spill] sm:$0xff] %v4953_v45  ;;  %v1487_v60 = vld [vmem:[%s4550_s29 + $0xb50] sm:$0xff]  ;;  %v1426_v45 = vld [vmem:[%s4550_s29 + $0x968] sm:$0xff] }
 0x254   : > { %1582 = vmatpush1.s8.msra.mxu0 %v1175_v52  ;;  %v1271_v35 = vld [vmem:[%s4550_s29 + $0x490] sm:$0xff]  ;;  %v1404_v19 = vld [vmem:[%s4550_s29 + $0x8b8] sm:$0xff] }
 0x255   : > { %1617 = vmatpush1.s8.msra.mxu1 %v1367_v47  ;;  %1583 = vmatprep.subr.s8.mxu0 %v1152_v29  ;;  %v1463_v52 = vld [vmem:[%s4550_s29 + $0xa90] sm:$0xff]  ;;  %v1248_v47 = vld [vmem:[%s4550_s29 + $0x3d8] sm:$0xff] }
 0x256   : > { %1618 = vmatprep.subr.s8.mxu1 %v1344_v24  ;;  %v1440_v29 = vld [vmem:[%s4550_s29 + $0x9d8] sm:$0xff]  ;;  %v1247_v24 = vld [vmem:[%s4550_s29 + $0x3d0] sm:$0xff] }
 0x258   : > { %1584 = vmatpush1.s8.msra.mxu0 %v1151_v22  ;;  %v1439_v22 = vld [vmem:[%s4550_s29 + $0x9d0] sm:$0xff] }
 0x259   : > { %1619 = vmatpush1.s8.msra.mxu1 %v1343_v51  ;;  %1585 = vmatprep.subr.s8.mxu0 %v1128_v50  ;;  %v1224_v51 = vld [vmem:[%s4550_s29 + $0x318] sm:$0xff] }
 0x25a   : > { %1620 = vmatprep.subr.s8.mxu1 %v1320_v43  ;;  %v1416_v50 = vld [vmem:[%s4550_s29 + $0x918] sm:$0xff]  ;;  %v1223_v43 = vld [vmem:[%s4550_s29 + $0x310] sm:$0xff] }
 0x25c   : > { %1586 = vmatpush1.s8.msra.mxu0 %v1127_v42  ;;  %v1415_v42 = vld [vmem:[%s4550_s29 + $0x910] sm:$0xff] }
 0x25d   : > { %1621 = vmatpush1.s8.msra.mxu1 %v1319_v44  ;;  %1587 = vmatprep.subr.s8.mxu0 %v1296_v16  ;;  %v1202_v44 = vld [vmem:[%s4550_s29 + $0x268] sm:$0xff] }
 0x25e   : > { %1622 = vmatprep.subr.s8.mxu1 %v1488_v37  ;;  %v1394_v16 = vld [vmem:[%s4550_s29 + $0x868] sm:$0xff]  ;;  %v1201_v37 = vld [vmem:[%s4550_s29 + $0x260] sm:$0xff] }
 0x260   : > { %1588 = vmatpush2.s8.msra.mxu0 %v1295_v13  ;;  %v1393_v13 = vld [vmem:[%s4550_s29 + $0x860] sm:$0xff] }
 0x261   : > { %1623 = vmatpush2.s8.msra.mxu1 %v1487_v60  ;;  %1589 = vmatprep.subr.s8.mxu0 %v1272_v59  ;;  %v1178_v60 = vld [vmem:[%s4550_s29 + $0x1a8] sm:$0xff] }
 0x262   : > { %1624 = vmatprep.subr.s8.mxu1 %v1464_v46  ;;  %v1370_v59 = vld [vmem:[%s4550_s29 + $0x7a8] sm:$0xff]  ;;  %v1177_v46 = vld [vmem:[%s4550_s29 + $0x1a0] sm:$0xff] }
 0x264   : > { %1590 = vmatpush2.s8.msra.mxu0 %v1271_v35  ;;  %v1369_v35 = vld [vmem:[%s4550_s29 + $0x7a0] sm:$0xff] }
 0x265   : > { %1625 = vmatpush2.s8.msra.mxu1 %v1463_v52  ;;  %1591 = vmatprep.subr.s8.mxu0 %v1248_v47  ;;  %v1154_v52 = vld [vmem:[%s4550_s29 + $0xe8] sm:$0xff] }
 0x266   : > { %1626 = vmatprep.subr.s8.mxu1 %v1440_v29  ;;  %v1346_v47 = vld [vmem:[%s4550_s29 + $0x6e8] sm:$0xff]  ;;  %v1153_v29 = vld [vmem:[%s4550_s29 + $0xe0] sm:$0xff] }
 0x268   : > { %1592 = vmatpush2.s8.msra.mxu0 %v1247_v24  ;;  %v1345_v24 = vld [vmem:[%s4550_s29 + $0x6e0] sm:$0xff] }
 0x269   : > { %1627 = vmatpush2.s8.msra.mxu1 %v1439_v22  ;;  %1593 = vmatprep.subr.s8.mxu0 %v1224_v51  ;;  %v1130_v22 = vld [vmem:[%s4550_s29 + $0x28] sm:$0xff] }
 0x26a   : > { %1628 = vmatprep.subr.s8.mxu1 %v1416_v50  ;;  %v1322_v51 = vld [vmem:[%s4550_s29 + $0x628] sm:$0xff]  ;;  %v1129_v50 = vld [vmem:[%s4550_s29 + $0x20] sm:$0xff] }
 0x26c   : > { %1594 = vmatpush2.s8.msra.mxu0 %v1223_v43  ;;  %v1321_v43 = vld [vmem:[%s4550_s29 + $0x620] sm:$0xff] }
 0x26d   : > { %1629 = vmatpush2.s8.msra.mxu1 %v1415_v42  ;;  %1649 = vmatprep.subr.s8.mxu0 %v1202_v44  ;;  %v1298_v42 = vld [vmem:[%s4550_s29 + $0x568] sm:$0xff] }
 0x26e   : > { %1684 = vmatprep.subr.s8.mxu1 %v1394_v16  ;;  %v1490_v44 = vld [vmem:[%s4550_s29 + $0xb68] sm:$0xff]  ;;  %v1297_v16 = vld [vmem:[%s4550_s29 + $0x560] sm:$0xff] }
 0x26f   : > { %1596 = vmatmul.mubr.s8.vlgmr.msra.gmra.mxu0 %v4877_v28 }
 0x270   : > { %1631 = vmatmul.mubr.s8.vlgmr.msra.gmra.mxu1 %v4881_v53  ;;  %1650 = vmatpush1.s8.msra.mxu0 %v1201_v37  ;;  %v1489_v37 = vld [vmem:[%s4550_s29 + $0xb60] sm:$0xff] }
 0x271   : > { %1665 = vmatprep.mubr.s8.mxu0 %v4879_v39  ;;  %1685 = vmatpush1.s8.msra.mxu1 %v1393_v13  ;;  %v1274_v13 = vld [vmem:[%s4550_s29 + $0x4a8] sm:$0xff] }
 0x272   : > { %1700 = vmatprep.mubr.s8.mxu1 %v4883_v30  ;;  %1651 = vmatprep.subr.s8.mxu0 %v1178_v60  ;;  %v1466_v60 = vld [vmem:[%s4550_s29 + $0xaa8] sm:$0xff] }
 0x273   : > { %1686 = vmatprep.subr.s8.mxu1 %v1370_v59  ;;  %v1273_v59 = vld [vmem:[%s4550_s29 + $0x4a0] sm:$0xff] }
 0x274   : > { %1652 = vmatpush1.s8.msra.mxu0 %v1177_v46  ;;  %v1465_v46 = vld [vmem:[%s4550_s29 + $0xaa0] sm:$0xff] }
 0x275   : > { %1687 = vmatpush1.s8.msra.mxu1 %v1369_v35  ;;  %1653 = vmatprep.subr.s8.mxu0 %v1154_v52  ;;  %v1250_v35 = vld [vmem:[%s4550_s29 + $0x3e8] sm:$0xff] }
 0x276   : > { %1688 = vmatprep.subr.s8.mxu1 %v1346_v47  ;;  %v1442_v52 = vld [vmem:[%s4550_s29 + $0x9e8] sm:$0xff]  ;;  %v1249_v47 = vld [vmem:[%s4550_s29 + $0x3e0] sm:$0xff] }
 0x278   : > { %1654 = vmatpush1.s8.msra.mxu0 %v1153_v29  ;;  %v1441_v29 = vld [vmem:[%s4550_s29 + $0x9e0] sm:$0xff] }
 0x279   : > { %1689 = vmatpush1.s8.msra.mxu1 %v1345_v24  ;;  %1655 = vmatprep.subr.s8.mxu0 %v1130_v22  ;;  %v1226_v24 = vld [vmem:[%s4550_s29 + $0x328] sm:$0xff] }
 0x27a   : > { %1690 = vmatprep.subr.s8.mxu1 %v1322_v51  ;;  %v1418_v22 = vld [vmem:[%s4550_s29 + $0x928] sm:$0xff]  ;;  %v1225_v51 = vld [vmem:[%s4550_s29 + $0x320] sm:$0xff] }
 0x27c   : > { %1656 = vmatpush1.s8.msra.mxu0 %v1129_v50  ;;  %v1417_v50 = vld [vmem:[%s4550_s29 + $0x920] sm:$0xff] }
 0x27d   : > { %1691 = vmatpush1.s8.msra.mxu1 %v1321_v43  ;;  %1657 = vmatprep.subr.s8.mxu0 %v1298_v42  ;;  %v1204_v43 = vld [vmem:[%s4550_s29 + $0x278] sm:$0xff] }
 0x27e   : > { %1692 = vmatprep.subr.s8.mxu1 %v1490_v44  ;;  %v1396_v42 = vld [vmem:[%s4550_s29 + $0x878] sm:$0xff]  ;;  %v1203_v44 = vld [vmem:[%s4550_s29 + $0x270] sm:$0xff] }
 0x280   : > { %1658 = vmatpush2.s8.msra.mxu0 %v1297_v16  ;;  %v1395_v16 = vld [vmem:[%s4550_s29 + $0x870] sm:$0xff] }
 0x281   : > { %1693 = vmatpush2.s8.msra.mxu1 %v1489_v37  ;;  %1659 = vmatprep.subr.s8.mxu0 %v1274_v13  ;;  %v1180_v37 = vld [vmem:[%s4550_s29 + $0x1b8] sm:$0xff] }
 0x282   : > { %1694 = vmatprep.subr.s8.mxu1 %v1466_v60  ;;  %v1372_v13 = vld [vmem:[%s4550_s29 + $0x7b8] sm:$0xff]  ;;  %v1179_v60 = vld [vmem:[%s4550_s29 + $0x1b0] sm:$0xff] }
 0x284   : > { %1660 = vmatpush2.s8.msra.mxu0 %v1273_v59  ;;  %v1371_v59 = vld [vmem:[%s4550_s29 + $0x7b0] sm:$0xff] }
 0x285   : > { %1695 = vmatpush2.s8.msra.mxu1 %v1465_v46  ;;  %1661 = vmatprep.subr.s8.mxu0 %v1250_v35  ;;  %v1156_v46 = vld [vmem:[%s4550_s29 + $0xf8] sm:$0xff] }
 0x286   : > { %1696 = vmatprep.subr.s8.mxu1 %v1442_v52  ;;  %v1348_v35 = vld [vmem:[%s4550_s29 + $0x6f8] sm:$0xff]  ;;  %v1155_v52 = vld [vmem:[%s4550_s29 + $0xf0] sm:$0xff] }
 0x288   : > { %1662 = vmatpush2.s8.msra.mxu0 %v1249_v47  ;;  %v1347_v47 = vld [vmem:[%s4550_s29 + $0x6f0] sm:$0xff] }
 0x289   : > { %1697 = vmatpush2.s8.msra.mxu1 %v1441_v29  ;;  %1663 = vmatprep.subr.s8.mxu0 %v1226_v24  ;;  %v1132_v29 = vld [vmem:[%s4550_s29 + $0x38] sm:$0xff] }
 0x28a   : > { %1698 = vmatprep.subr.s8.mxu1 %v1418_v22  ;;  %v1324_v24 = vld [vmem:[%s4550_s29 + $0x638] sm:$0xff]  ;;  %v1131_v22 = vld [vmem:[%s4550_s29 + $0x30] sm:$0xff] }
 0x28c   : > { %1664 = vmatpush2.s8.msra.mxu0 %v1225_v51  ;;  %v1323_v51 = vld [vmem:[%s4550_s29 + $0x630] sm:$0xff] }
 0x28d   : > { %1699 = vmatpush2.s8.msra.mxu1 %v1417_v50  ;;  %1719 = vmatprep.subr.s8.mxu0 %v1204_v43  ;;  %v1300_v50 = vld [vmem:[%s4550_s29 + $0x578] sm:$0xff] }
 0x28e   : > { %1754 = vmatprep.subr.s8.mxu1 %v1396_v42  ;;  %v1492_v43 = vld [vmem:[%s4550_s29 + $0xb78] sm:$0xff]  ;;  %v1299_v42 = vld [vmem:[%s4550_s29 + $0x570] sm:$0xff] }
 0x28f   : > { %1666 = vmatmul.mubr.s8.vlgmr.msra.gmra.mxu0 %v4877_v28 }
 0x290   : > { %1701 = vmatmul.mubr.s8.vlgmr.msra.gmra.mxu1 %v4881_v53  ;;  %1720 = vmatpush1.s8.msra.mxu0 %v1203_v44  ;;  %v1491_v44 = vld [vmem:[%s4550_s29 + $0xb70] sm:$0xff] }
 0x291   : > { %1735 = vmatprep.mubr.s8.mxu0 %v4879_v39  ;;  %1755 = vmatpush1.s8.msra.mxu1 %v1395_v16  ;;  %v1276_v16 = vld [vmem:[%s4550_s29 + $0x4b8] sm:$0xff] }
 0x292   : > { %1770 = vmatprep.mubr.s8.mxu1 %v4883_v30  ;;  %1721 = vmatprep.subr.s8.mxu0 %v1180_v37  ;;  %v1468_v37 = vld [vmem:[%s4550_s29 + $0xab8] sm:$0xff] }
 0x293   : > { %1756 = vmatprep.subr.s8.mxu1 %v1372_v13  ;;  %v1275_v13 = vld [vmem:[%s4550_s29 + $0x4b0] sm:$0xff] }
 0x294   : > { %1722 = vmatpush1.s8.msra.mxu0 %v1179_v60  ;;  %v1467_v60 = vld [vmem:[%s4550_s29 + $0xab0] sm:$0xff] }
 0x295   : > { %1757 = vmatpush1.s8.msra.mxu1 %v1371_v59  ;;  %1723 = vmatprep.subr.s8.mxu0 %v1156_v46  ;;  %v1252_v59 = vld [vmem:[%s4550_s29 + $0x3f8] sm:$0xff] }
 0x296   : > { %1758 = vmatprep.subr.s8.mxu1 %v1348_v35  ;;  %v1444_v46 = vld [vmem:[%s4550_s29 + $0x9f8] sm:$0xff]  ;;  %v1251_v35 = vld [vmem:[%s4550_s29 + $0x3f0] sm:$0xff] }
 0x298   : > { %1724 = vmatpush1.s8.msra.mxu0 %v1155_v52  ;;  %v1443_v52 = vld [vmem:[%s4550_s29 + $0x9f0] sm:$0xff] }
 0x299   : > { %1759 = vmatpush1.s8.msra.mxu1 %v1347_v47  ;;  %1725 = vmatprep.subr.s8.mxu0 %v1132_v29  ;;  %v1228_v47 = vld [vmem:[%s4550_s29 + $0x338] sm:$0xff] }
 0x29a   : > { %1760 = vmatprep.subr.s8.mxu1 %v1324_v24  ;;  %v1420_v29 = vld [vmem:[%s4550_s29 + $0x938] sm:$0xff]  ;;  %v1227_v24 = vld [vmem:[%s4550_s29 + $0x330] sm:$0xff] }
 0x29c   : > { %1726 = vmatpush1.s8.msra.mxu0 %v1131_v22  ;;  %v1419_v22 = vld [vmem:[%s4550_s29 + $0x930] sm:$0xff] }
 0x29d   : > { %1761 = vmatpush1.s8.msra.mxu1 %v1323_v51  ;;  %1727 = vmatprep.subr.s8.mxu0 %v1300_v50  ;;  %v1206_v51 = vld [vmem:[%s4550_s29 + $0x288] sm:$0xff] }
 0x29e   : > { %1762 = vmatprep.subr.s8.mxu1 %v1492_v43  ;;  %v1398_v50 = vld [vmem:[%s4550_s29 + $0x888] sm:$0xff]  ;;  %v1205_v43 = vld [vmem:[%s4550_s29 + $0x280] sm:$0xff] }
 0x2a0   : > { %1728 = vmatpush2.s8.msra.mxu0 %v1299_v42  ;;  %v1397_v42 = vld [vmem:[%s4550_s29 + $0x880] sm:$0xff] }
 0x2a1   : > { %1763 = vmatpush2.s8.msra.mxu1 %v1491_v44  ;;  %1729 = vmatprep.subr.s8.mxu0 %v1276_v16  ;;  %v1182_v44 = vld [vmem:[%s4550_s29 + $0x1c8] sm:$0xff] }
 0x2a2   : > { %1764 = vmatprep.subr.s8.mxu1 %v1468_v37  ;;  %v1374_v16 = vld [vmem:[%s4550_s29 + $0x7c8] sm:$0xff]  ;;  %v1181_v37 = vld [vmem:[%s4550_s29 + $0x1c0] sm:$0xff] }
 0x2a4   : > { %1730 = vmatpush2.s8.msra.mxu0 %v1275_v13  ;;  %v1373_v13 = vld [vmem:[%s4550_s29 + $0x7c0] sm:$0xff] }
 0x2a5   : > { %1765 = vmatpush2.s8.msra.mxu1 %v1467_v60  ;;  %1731 = vmatprep.subr.s8.mxu0 %v1252_v59  ;;  %v1158_v60 = vld [vmem:[%s4550_s29 + $0x108] sm:$0xff] }
 0x2a6   : > { %1766 = vmatprep.subr.s8.mxu1 %v1444_v46  ;;  %v1350_v59 = vld [vmem:[%s4550_s29 + $0x708] sm:$0xff]  ;;  %v1157_v46 = vld [vmem:[%s4550_s29 + $0x100] sm:$0xff] }
 0x2a8   : > { %1732 = vmatpush2.s8.msra.mxu0 %v1251_v35  ;;  %v1349_v35 = vld [vmem:[%s4550_s29 + $0x700] sm:$0xff] }
 0x2a9   : > { %1767 = vmatpush2.s8.msra.mxu1 %v1443_v52  ;;  %1733 = vmatprep.subr.s8.mxu0 %v1228_v47  ;;  %v1134_v52 = vld [vmem:[%s4550_s29 + $0x48] sm:$0xff] }
 0x2aa   : > { %1768 = vmatprep.subr.s8.mxu1 %v1420_v29  ;;  %v1326_v47 = vld [vmem:[%s4550_s29 + $0x648] sm:$0xff]  ;;  %v1133_v29 = vld [vmem:[%s4550_s29 + $0x40] sm:$0xff] }
 0x2ac   : > { %1734 = vmatpush2.s8.msra.mxu0 %v1227_v24  ;;  %v1325_v24 = vld [vmem:[%s4550_s29 + $0x640] sm:$0xff] }
 0x2ad   : > { %1769 = vmatpush2.s8.msra.mxu1 %v1419_v22  ;;  %1789 = vmatprep.subr.s8.mxu0 %v1206_v51  ;;  %v1302_v22 = vld [vmem:[%s4550_s29 + $0x588] sm:$0xff] }
 0x2ae   : > { %1824 = vmatprep.subr.s8.mxu1 %v1398_v50  ;;  %v1494_v51 = vld [vmem:[%s4550_s29 + $0xb88] sm:$0xff]  ;;  %v1301_v50 = vld [vmem:[%s4550_s29 + $0x580] sm:$0xff] }
 0x2af   : > { %1736 = vmatmul.mubr.s8.vlgmr.msra.gmra.mxu0 %v4877_v28 }
 0x2b0   : > { %1771 = vmatmul.mubr.s8.vlgmr.msra.gmra.mxu1 %v4881_v53  ;;  %1790 = vmatpush1.s8.msra.mxu0 %v1205_v43  ;;  %v1493_v43 = vld [vmem:[%s4550_s29 + $0xb80] sm:$0xff] }
 0x2b1   : > { %1805 = vmatprep.mubr.s8.mxu0 %v4879_v39  ;;  %1825 = vmatpush1.s8.msra.mxu1 %v1397_v42  ;;  %v1278_v42 = vld [vmem:[%s4550_s29 + $0x4c8] sm:$0xff] }
 0x2b2   : > { %1840 = vmatprep.mubr.s8.mxu1 %v4883_v30  ;;  %1791 = vmatprep.subr.s8.mxu0 %v1182_v44  ;;  %v1470_v44 = vld [vmem:[%s4550_s29 + $0xac8] sm:$0xff] }
 0x2b3   : > { %1826 = vmatprep.subr.s8.mxu1 %v1374_v16  ;;  %v1277_v16 = vld [vmem:[%s4550_s29 + $0x4c0] sm:$0xff] }
 0x2b4   : > { %1792 = vmatpush1.s8.msra.mxu0 %v1181_v37  ;;  %v1469_v37 = vld [vmem:[%s4550_s29 + $0xac0] sm:$0xff] }
 0x2b5   : > { %1827 = vmatpush1.s8.msra.mxu1 %v1373_v13  ;;  %1793 = vmatprep.subr.s8.mxu0 %v1158_v60  ;;  %v1254_v13 = vld [vmem:[%s4550_s29 + $0x408] sm:$0xff] }
 0x2b6   : > { %1828 = vmatprep.subr.s8.mxu1 %v1350_v59  ;;  %v1446_v60 = vld [vmem:[%s4550_s29 + $0xa08] sm:$0xff]  ;;  %v1253_v59 = vld [vmem:[%s4550_s29 + $0x400] sm:$0xff] }
 0x2b8   : > { %1794 = vmatpush1.s8.msra.mxu0 %v1157_v46  ;;  %v1445_v46 = vld [vmem:[%s4550_s29 + $0xa00] sm:$0xff] }
 0x2b9   : > { %1829 = vmatpush1.s8.msra.mxu1 %v1349_v35  ;;  %1795 = vmatprep.subr.s8.mxu0 %v1134_v52  ;;  %v1230_v35 = vld [vmem:[%s4550_s29 + $0x348] sm:$0xff] }
 0x2ba   : > { %1830 = vmatprep.subr.s8.mxu1 %v1326_v47  ;;  %v1422_v52 = vld [vmem:[%s4550_s29 + $0x948] sm:$0xff]  ;;  %v1229_v47 = vld [vmem:[%s4550_s29 + $0x340] sm:$0xff] }
 0x2bc   : > { %1796 = vmatpush1.s8.msra.mxu0 %v1133_v29  ;;  %v1421_v29 = vld [vmem:[%s4550_s29 + $0x940] sm:$0xff] }
 0x2bd   : > { %1831 = vmatpush1.s8.msra.mxu1 %v1325_v24  ;;  %1797 = vmatprep.subr.s8.mxu0 %v1302_v22  ;;  %v1208_v24 = vld [vmem:[%s4550_s29 + $0x298] sm:$0xff] }
 0x2be   : > { %1832 = vmatprep.subr.s8.mxu1 %v1494_v51  ;;  %v1400_v22 = vld [vmem:[%s4550_s29 + $0x898] sm:$0xff]  ;;  %v1207_v51 = vld [vmem:[%s4550_s29 + $0x290] sm:$0xff] }
 0x2c0   : > { %1798 = vmatpush2.s8.msra.mxu0 %v1301_v50  ;;  %v1399_v50 = vld [vmem:[%s4550_s29 + $0x890] sm:$0xff] }
 0x2c1   : > { %1833 = vmatpush2.s8.msra.mxu1 %v1493_v43  ;;  %1799 = vmatprep.subr.s8.mxu0 %v1278_v42  ;;  %v1184_v43 = vld [vmem:[%s4550_s29 + $0x1d8] sm:$0xff] }
 0x2c2   : > { %1834 = vmatprep.subr.s8.mxu1 %v1470_v44  ;;  %v1376_v42 = vld [vmem:[%s4550_s29 + $0x7d8] sm:$0xff]  ;;  %v1183_v44 = vld [vmem:[%s4550_s29 + $0x1d0] sm:$0xff] }
 0x2c4   : > { %1800 = vmatpush2.s8.msra.mxu0 %v1277_v16  ;;  %v1375_v16 = vld [vmem:[%s4550_s29 + $0x7d0] sm:$0xff] }
 0x2c5   : > { %1835 = vmatpush2.s8.msra.mxu1 %v1469_v37  ;;  %1801 = vmatprep.subr.s8.mxu0 %v1254_v13  ;;  %v1160_v37 = vld [vmem:[%s4550_s29 + $0x118] sm:$0xff] }
 0x2c6   : > { %1836 = vmatprep.subr.s8.mxu1 %v1446_v60  ;;  %v1352_v13 = vld [vmem:[%s4550_s29 + $0x718] sm:$0xff]  ;;  %v1159_v60 = vld [vmem:[%s4550_s29 + $0x110] sm:$0xff] }
 0x2c8   : > { %1802 = vmatpush2.s8.msra.mxu0 %v1253_v59  ;;  %v1351_v59 = vld [vmem:[%s4550_s29 + $0x710] sm:$0xff] }
 0x2c9   : > { %1837 = vmatpush2.s8.msra.mxu1 %v1445_v46  ;;  %1803 = vmatprep.subr.s8.mxu0 %v1230_v35  ;;  %v1136_v46 = vld [vmem:[%s4550_s29 + $0x58] sm:$0xff] }
 0x2ca   : > { %1838 = vmatprep.subr.s8.mxu1 %v1422_v52  ;;  %v1328_v35 = vld [vmem:[%s4550_s29 + $0x658] sm:$0xff]  ;;  %v1135_v52 = vld [vmem:[%s4550_s29 + $0x50] sm:$0xff] }
 0x2cc   : > { %1804 = vmatpush2.s8.msra.mxu0 %v1229_v47  ;;  %v1327_v47 = vld [vmem:[%s4550_s29 + $0x650] sm:$0xff] }
 0x2cd   : > { %1839 = vmatpush2.s8.msra.mxu1 %v1421_v29  ;;  %1859 = vmatprep.subr.s8.mxu0 %v1208_v24  ;;  %v1304_v29 = vld [vmem:[%s4550_s29 + $0x598] sm:$0xff] }
 0x2ce   : > { %1894 = vmatprep.subr.s8.mxu1 %v1400_v22  ;;  %v1496_v24 = vld [vmem:[%s4550_s29 + $0xb98] sm:$0xff]  ;;  %v1303_v22 = vld [vmem:[%s4550_s29 + $0x590] sm:$0xff] }
 0x2cf   : > { %1806 = vmatmul.mubr.s8.vlgmr.msra.gmra.mxu0 %v4877_v28 }
 0x2d0   : > { %1841 = vmatmul.mubr.s8.vlgmr.msra.gmra.mxu1 %v4881_v53  ;;  %1860 = vmatpush1.s8.msra.mxu0 %v1207_v51  ;;  %v1495_v51 = vld [vmem:[%s4550_s29 + $0xb90] sm:$0xff] }
 0x2d1   : > { %1875 = vmatprep.mubr.s8.mxu0 %v4879_v39  ;;  %1895 = vmatpush1.s8.msra.mxu1 %v1399_v50  ;;  %v1280_v50 = vld [vmem:[%s4550_s29 + $0x4d8] sm:$0xff] }
 0x2d2   : > { %1910 = vmatprep.mubr.s8.mxu1 %v4883_v30  ;;  %1861 = vmatprep.subr.s8.mxu0 %v1184_v43  ;;  %v1472_v43 = vld [vmem:[%s4550_s29 + $0xad8] sm:$0xff] }
 0x2d3   : > { %1896 = vmatprep.subr.s8.mxu1 %v1376_v42  ;;  %v1279_v42 = vld [vmem:[%s4550_s29 + $0x4d0] sm:$0xff] }
 0x2d4   : > { %1862 = vmatpush1.s8.msra.mxu0 %v1183_v44  ;;  %v1471_v44 = vld [vmem:[%s4550_s29 + $0xad0] sm:$0xff] }
 0x2d5   : > { %1897 = vmatpush1.s8.msra.mxu1 %v1375_v16  ;;  %1863 = vmatprep.subr.s8.mxu0 %v1160_v37  ;;  %v1256_v16 = vld [vmem:[%s4550_s29 + $0x418] sm:$0xff] }
 0x2d6   : > { %1898 = vmatprep.subr.s8.mxu1 %v1352_v13  ;;  %v1448_v37 = vld [vmem:[%s4550_s29 + $0xa18] sm:$0xff]  ;;  %v1255_v13 = vld [vmem:[%s4550_s29 + $0x410] sm:$0xff] }
 0x2d8   : > { %1864 = vmatpush1.s8.msra.mxu0 %v1159_v60  ;;  %v1447_v60 = vld [vmem:[%s4550_s29 + $0xa10] sm:$0xff] }
 0x2d9   : > { %1899 = vmatpush1.s8.msra.mxu1 %v1351_v59  ;;  %1865 = vmatprep.subr.s8.mxu0 %v1136_v46  ;;  %v1232_v59 = vld [vmem:[%s4550_s29 + $0x358] sm:$0xff] }
 0x2da   : > { %1900 = vmatprep.subr.s8.mxu1 %v1328_v35  ;;  %v1424_v46 = vld [vmem:[%s4550_s29 + $0x958] sm:$0xff]  ;;  %v1231_v35 = vld [vmem:[%s4550_s29 + $0x350] sm:$0xff] }
 0x2dc   : > { %1866 = vmatpush1.s8.msra.mxu0 %v1135_v52  ;;  %v1423_v52 = vld [vmem:[%s4550_s29 + $0x950] sm:$0xff] }
 0x2dd   : > { %1901 = vmatpush1.s8.msra.mxu1 %v1327_v47  ;;  %1867 = vmatprep.subr.s8.mxu0 %v1304_v29  ;;  %v1210_v47 = vld [vmem:[%s4550_s29 + $0x2a8] sm:$0xff] }
 0x2de   : > { %1902 = vmatprep.subr.s8.mxu1 %v1496_v24  ;;  %v1402_v29 = vld [vmem:[%s4550_s29 + $0x8a8] sm:$0xff]  ;;  %v1209_v24 = vld [vmem:[%s4550_s29 + $0x2a0] sm:$0xff] }
 0x2e0   : > { %1868 = vmatpush2.s8.msra.mxu0 %v1303_v22  ;;  %v1401_v22 = vld [vmem:[%s4550_s29 + $0x8a0] sm:$0xff] }
 0x2e1   : > { %1903 = vmatpush2.s8.msra.mxu1 %v1495_v51  ;;  %1869 = vmatprep.subr.s8.mxu0 %v1280_v50  ;;  %v1186_v51 = vld [vmem:[%s4550_s29 + $0x1e8] sm:$0xff] }
 0x2e2   : > { %1904 = vmatprep.subr.s8.mxu1 %v1472_v43  ;;  %v1378_v50 = vld [vmem:[%s4550_s29 + $0x7e8] sm:$0xff]  ;;  %v1185_v43 = vld [vmem:[%s4550_s29 + $0x1e0] sm:$0xff] }
 0x2e4   : > { %1870 = vmatpush2.s8.msra.mxu0 %v1279_v42  ;;  %v1377_v42 = vld [vmem:[%s4550_s29 + $0x7e0] sm:$0xff] }
 0x2e5   : > { %1905 = vmatpush2.s8.msra.mxu1 %v1471_v44  ;;  %1871 = vmatprep.subr.s8.mxu0 %v1256_v16  ;;  %v1162_v44 = vld [vmem:[%s4550_s29 + $0x128] sm:$0xff] }
 0x2e6   : > { %1906 = vmatprep.subr.s8.mxu1 %v1448_v37  ;;  %v1354_v16 = vld [vmem:[%s4550_s29 + $0x728] sm:$0xff]  ;;  %v1161_v37 = vld [vmem:[%s4550_s29 + $0x120] sm:$0xff] }
 0x2e8   : > { %1872 = vmatpush2.s8.msra.mxu0 %v1255_v13  ;;  %v1353_v13 = vld [vmem:[%s4550_s29 + $0x720] sm:$0xff] }
 0x2e9   : > { %1907 = vmatpush2.s8.msra.mxu1 %v1447_v60  ;;  %1873 = vmatprep.subr.s8.mxu0 %v1232_v59  ;;  %v1138_v60 = vld [vmem:[%s4550_s29 + $0x68] sm:$0xff] }
 0x2ea   : > { %1908 = vmatprep.subr.s8.mxu1 %v1424_v46  ;;  %v1330_v59 = vld [vmem:[%s4550_s29 + $0x668] sm:$0xff]  ;;  %v1137_v46 = vld [vmem:[%s4550_s29 + $0x60] sm:$0xff] }
 0x2ec   : > { %1874 = vmatpush2.s8.msra.mxu0 %v1231_v35  ;;  %v1329_v35 = vld [vmem:[%s4550_s29 + $0x660] sm:$0xff] }
 0x2ed   : > { %1909 = vmatpush2.s8.msra.mxu1 %v1423_v52  ;;  %1929 = vmatprep.subr.s8.mxu0 %v1210_v47  ;;  %v1306_v52 = vld [vmem:[%s4550_s29 + $0x5a8] sm:$0xff] }
 0x2ee   : > { %1964 = vmatprep.subr.s8.mxu1 %v1402_v29  ;;  %v1498_v47 = vld [vmem:[%s4550_s29 + $0xba8] sm:$0xff]  ;;  %v1305_v29 = vld [vmem:[%s4550_s29 + $0x5a0] sm:$0xff] }
 0x2ef   : > { %1876 = vmatmul.mubr.s8.vlgmr.msra.gmra.mxu0 %v4877_v28 }
 0x2f0   : > { %1911 = vmatmul.mubr.s8.vlgmr.msra.gmra.mxu1 %v4881_v53  ;;  %1930 = vmatpush1.s8.msra.mxu0 %v1209_v24  ;;  %v1497_v24 = vld [vmem:[%s4550_s29 + $0xba0] sm:$0xff] }
 0x2f1   : > { %1945 = vmatprep.mubr.s8.mxu0 %v4879_v39  ;;  %1965 = vmatpush1.s8.msra.mxu1 %v1401_v22  ;;  %v1282_v22 = vld [vmem:[%s4550_s29 + $0x4e8] sm:$0xff] }
 0x2f2   : > { %1980 = vmatprep.mubr.s8.mxu1 %v4883_v30  ;;  %1931 = vmatprep.subr.s8.mxu0 %v1186_v51  ;;  %v1474_v51 = vld [vmem:[%s4550_s29 + $0xae8] sm:$0xff] }
 0x2f3   : > { %1966 = vmatprep.subr.s8.mxu1 %v1378_v50  ;;  %v1281_v50 = vld [vmem:[%s4550_s29 + $0x4e0] sm:$0xff] }
 0x2f4   : > { %1932 = vmatpush1.s8.msra.mxu0 %v1185_v43  ;;  %v1473_v43 = vld [vmem:[%s4550_s29 + $0xae0] sm:$0xff] }
 0x2f5   : > { %1967 = vmatpush1.s8.msra.mxu1 %v1377_v42  ;;  %1933 = vmatprep.subr.s8.mxu0 %v1162_v44  ;;  %v5150_v42 = vld [vmem:[%s4557_s20] sm:$0xff] }
 0x2f6   : > { %1968 = vmatprep.subr.s8.mxu1 %v1354_v16  ;;  %v2459_v44 = vrot.slane %v5150_v42, %v4569_v14  ;;  %v1258_v16 = vld [vmem:[%s4550_s29 + $0x428] sm:$0xff] }
 0x2f8   : > { %1934 = vmatpush1.s8.msra.mxu0 %v1161_v37  ;;  %v5156_v37 = vld [vmem:[%s4560_s27] sm:$0xff]  ;;  %v2600_v48 = vmul.f32 %v2459_v44, %v4731_v56  ;;  %v2624_v38 = vmul.f32 %v2459_v44, %v4750_v11  ;;  %v2648_v31 = vmul.f32 %v2459_v44, %v4767_v34 }
 0x2f9   : > { %1969 = vmatpush1.s8.msra.mxu1 %v1353_v13  ;;  %1935 = vmatprep.subr.s8.mxu0 %v1138_v60  ;;  %v1450_v13 = vld [vmem:[%s4550_s29 + $0xa28] sm:$0xff]  ;;  %v2463_v60 = vrot.slane %v5150_v42, %v4575_v17 }
 0x2fa   : > { %1970 = vmatprep.subr.s8.mxu1 %v1330_v59 }
 0x2fb   : > { %v2649_v33 = vmul.f32 %v2463_v60, %v4767_v34 }
 0x2fc   : > { %1936 = vmatpush1.s8.msra.mxu0 %v1137_v46  ;;  %v1257_v46 = vld [vmem:[%s4550_s29 + $0x420] sm:$0xff] }
 0x2fd   : > { %1971 = vmatpush1.s8.msra.mxu1 %v1329_v35  ;;  %1937 = vmatprep.subr.s8.mxu0 %v1306_v52  ;;  %v2576_v35 = vmul.f32 %v2459_v44, %v4717_v40  ;;  %v5165_v52 = vrot.slane %v5156_v37, %v4569_v14 }
 0x2fe   : > { %1972 = vmatprep.subr.s8.mxu1 %v1498_v47 }
 0x300   : > { %1938 = vmatpush2.s8.msra.mxu0 %v1305_v29 }
 0x301   : > { %1973 = vmatpush2.s8.msra.mxu1 %v1497_v24  ;;  %1939 = vmatprep.subr.s8.mxu0 %v1282_v22  ;;  %v1449_v24 = vld [vmem:[%s4550_s29 + $0xa20] sm:$0xff]  ;;  %v1234_v22 = vld [vmem:[%s4550_s29 + $0x368] sm:$0xff] }
 0x302   : > { %1974 = vmatprep.subr.s8.mxu1 %v1474_v51  ;;  %v2577_v51 = vmul.f32 %v2463_v60, %v4717_v40 }
 0x304   : > { %1940 = vmatpush2.s8.msra.mxu0 %v1281_v50  ;;  %v2781_v50 = vrot.slane %v5156_v37, %v4575_v17 }
 0x305   : > { %1975 = vmatpush2.s8.msra.mxu1 %v1473_v43  ;;  %1941 = vmatprep.subr.s8.mxu0 %v1258_v16 }
 0x306   : > { %v3656_v59 = vpop.add.s32.mrf.mxu0.mxu1  ;;  %1976 = vmatprep.subr.s8.mxu1 %v1450_v13  ;;  %v2601_v13 = vmul.f32 %v2463_v60, %v4731_v56 }
 0x307   : > { %v2349_v47 = vcvt.s32.f32 %v3656_v59  ;;  %v3657_v29 = vpop.add.s32.mrf.mxu0.mxu1 }
 0x308   : > { %v2350_v43 = vcvt.s32.f32 %v3657_v29  ;;  %v3658_v16 = vpop.add.s32.mrf.mxu0.mxu1  ;;  %1942 = vmatpush2.s8.msra.mxu0 %v1257_v46  ;;  %v2625_v29 = vmul.f32 %v2463_v60, %v4750_v11  ;;  %v1403_v60 = vld [vmem:[%s4550_s29 + $0x8b0] sm:$0xff] }
 0x309   : > { %v2672_v9 = vmul.f32 %v2576_v35, %v2349_v47  ;;  %v2373_v23 = vcvt.s32.f32 %v3658_v16  ;;  %v3659_v59 = vpop.add.s32.mrf.mxu0.mxu1  ;;  %1977 = vmatpush2.s8.msra.mxu1 %v1449_v24  ;;  %1943 = vmatprep.subr.s8.mxu0 %v1234_v22  ;;  %v1233_v35 = vld [vmem:[%s4550_s29 + $0x360] sm:$0xff] }
 0x30a   : > { %v2673_v21 = vmul.f32 %v2577_v51, %v2350_v43  ;;  %v2374_v6 = vcvt.s32.f32 %v3659_v59  ;;  %v3660_v62 = vpop.add.s32.mrf.mxu0.mxu1  ;;  %1978 = vmatprep.subr.s8.mxu1 %v1426_v45  ;;  %v1212_v51 = vld [vmem:[%s4550_s29 + $0x2b8] sm:$0xff] }
 0x30b   : > { %v2894_v47 = vadd.f32 %v5165_v52, %v2672_v9  ;;  %v2696_v16 = vmul.f32 %v2600_v48, %v2373_v23  ;;  %v2397_v46 = vcvt.s32.f32 %v3660_v62  ;;  %v3661_v32 = vpop.add.s32.mrf.mxu0.mxu1 }
 0x30c   : > { %v2895_v24 = vadd.f32 %v2781_v50, %v2673_v21  ;;  %v2697_v43 = vmul.f32 %v2601_v13, %v2374_v6  ;;  %v2398_v59 = vcvt.s32.f32 %v3661_v32  ;;  %v3662_v0 = vpop.add.s32.mrf.mxu0.mxu1  ;;  %1944 = vmatpush2.s8.msra.mxu0 %v1233_v35  ;;  %v1211_v32 = vld [vmem:[%s4550_s29 + $0x2b0] sm:$0xff]  ;;  %v1188_v13 = vld [vmem:[%s4550_s29 + $0x1f8] sm:$0xff] }
 0x30d   : > { %3856 = vtanh.f32 %v2894_v47  ;;  %v2918_v22 = vadd.f32 %v5165_v52, %v2696_v16  ;;  %v2720_v23 = vmul.f32 %v2624_v38, %v2397_v46  ;;  %v2421_v62 = vcvt.s32.f32 %v3662_v0  ;;  %v3663_v48 = vpop.add.s32.mrf.mxu0.mxu1  ;;  %1979 = vmatpush2.s8.msra.mxu1 %v1425_v26  ;;  %1999 = vmatprep.subr.s8.mxu0 %v1212_v51  ;;  %v1356_v35 = vld [vmem:[%s4550_s29 + $0x738] sm:$0xff]  ;;  %v1355_v47 = vld [vmem:[%s4550_s29 + $0x730] sm:$0xff] }
 0x30e   : > { %3858 = vtanh.f32 %v2895_v24  ;;  %v2919_v9 = vadd.f32 %v2781_v50, %v2697_v43  ;;  %v2721_v45 = vmul.f32 %v2625_v29, %v2398_v59  ;;  %v2422_v6 = vcvt.s32.f32 %v3663_v48  ;;  %2034 = vmatprep.subr.s8.mxu1 %v1404_v19  ;;  %v1164_v29 = vld [vmem:[%s4550_s29 + $0x138] sm:$0xff]  ;;  %v1139_v24 = vld [vmem:[%s4550_s29 + $0x70] sm:$0xff] }
 0x30f   : > { %3860 = vtanh.f32 %v2918_v22  ;;  %v2942_v21 = vadd.f32 %v5165_v52, %v2720_v23  ;;  %v2744_v44 = vmul.f32 %v2648_v31, %v2421_v62  ;;  %1946 = vmatmul.mubr.s8.vlgmr.msra.gmra.mxu0 %v4877_v28  ;;  %v1380_v31 = vld [vmem:[%s4550_s29 + $0x7f8] sm:$0xff]  ;;  %v1331_v59 = vld [vmem:[%s4550_s29 + $0x670] sm:$0xff] }
 0x310   : > { %3862 = vtanh.f32 %v2919_v9  ;;  %v2943_v0 = vadd.f32 %v2781_v50, %v2721_v45  ;;  %v2745_v38 = vmul.f32 %v2649_v33, %v2422_v6  ;;  %1981 = vmatmul.mubr.s8.vlgmr.msra.gmra.mxu1 %v4881_v53  ;;  %2000 = vmatpush1.s8.msra.mxu0 %v1211_v32  ;;  %v1187_v33 = vld [vmem:[%s4550_s29 + $0x1f0] sm:$0xff]  ;;  %v1140_v16 = vld [vmem:[%s4550_s29 + $0x78] sm:$0xff] }
 0x311   : > { %3864 = vtanh.f32 %v2942_v21  ;;  %v2966_v26 = vadd.f32 %v5165_v52, %v2744_v44  ;;  %2015 = vmatprep.mubr.s8.mxu0 %v4879_v39  ;;  %2035 = vmatpush1.s8.msra.mxu1 %v1403_v60  ;;  %v1379_v52 = vld [vmem:[%s4550_s29 + $0x7f0] sm:$0xff]  ;;  %v1332_v46 = vld [vmem:[%s4550_s29 + $0x678] sm:$0xff] }
 0x312   : > { %3866 = vtanh.f32 %v2943_v0  ;;  %v2967_v19 = vadd.f32 %v2781_v50, %v2745_v38  ;;  %2050 = vmatprep.mubr.s8.mxu1 %v4883_v30  ;;  %2001 = vmatprep.subr.s8.mxu0 %v1188_v13  ;;  %v1163_v50 = vld [vmem:[%s4550_s29 + $0x130] sm:$0xff]  ;;  %v1308_v22 = vld [vmem:[%s4550_s29 + $0x5b8] sm:$0xff] }
 0x313   : > { %3868 = vtanh.f32 %v2966_v26  ;;  %2036 = vmatprep.subr.s8.mxu1 %v1380_v31  ;;  %v1500_v62 = vld [vmem:[%s4550_s29 + $0xbb8] sm:$0xff]  ;;  %v1307_v45 = vld [vmem:[%s4550_s29 + $0x5b0] sm:$0xff]  ;;  %v2467_v26 = vrot.slane %v5150_v42, %v4572_v15 }
 0x314   : > { %3870 = vtanh.f32 %v2967_v19  ;;  %2002 = vmatpush1.s8.msra.mxu0 %v1187_v33  ;;  %v1499_v32 = vld [vmem:[%s4550_s29 + $0xbb0] sm:$0xff]  ;;  %v1284_v21 = vld [vmem:[%s4550_s29 + $0x4f8] sm:$0xff]  ;;  %v2471_v19 = vrot.slane %v5150_v42, %v4578_v18 }
 0x315   : > { %2037 = vmatpush1.s8.msra.mxu1 %v1379_v52  ;;  %2003 = vmatprep.subr.s8.mxu0 %v1164_v29  ;;  %v1476_v60 = vld [vmem:[%s4550_s29 + $0xaf8] sm:$0xff]  ;;  %v1283_v38 = vld [vmem:[%s4550_s29 + $0x4f0] sm:$0xff] }
 0x316   : > { %2038 = vmatprep.subr.s8.mxu1 %v1356_v35  ;;  %v1475_v13 = vld [vmem:[%s4550_s29 + $0xaf0] sm:$0xff]  ;;  %v1260_v31 = vld [vmem:[%s4550_s29 + $0x438] sm:$0xff]  ;;  %v2578_v35 = vmul.f32 %v2467_v26, %v4717_v40  ;;  %v2579_v42 = vmul.f32 %v2471_v19, %v4717_v40 }
 0x317   : > { %v1452_v33 = vld [vmem:[%s4550_s29 + $0xa38] sm:$0xff]  ;;  %v1259_v29 = vld [vmem:[%s4550_s29 + $0x430] sm:$0xff] }
 0x318   : > { %2004 = vmatpush1.s8.msra.mxu0 %v1163_v50  ;;  %v5234_v50 = vrot.slane %v5156_v37, %v4572_v15 }
 0x319   : > { %2039 = vmatpush1.s8.msra.mxu1 %v1355_v47  ;;  %2005 = vmatprep.subr.s8.mxu0 %v1140_v16 }
 0x31a   : > { %v3857_v51 = vpop.eup %3856  ;;  %2040 = vmatprep.subr.s8.mxu1 %v1332_v46  ;;  %v1451_v46 = vld [vmem:[%s4550_s29 + $0xa30] sm:$0xff] }
 0x31b   : > { %v3859_v43 = vpop.eup %3858  ;;  %3086 = vst [vmem:[%s5205_s18] sm:$0xff] %v3857_v51  ;;  %v1236_v51 = vld [vmem:[%s4550_s29 + $0x378] sm:$0xff] }
 0x31c   : > { %v3861_v23 = vpop.eup %3860  ;;  %3087 = vst [vmem:[%s5205_s18 + $0x8] sm:$0xff] %v3859_v43  ;;  %2006 = vmatpush1.s8.msra.mxu0 %v1139_v24  ;;  %v2789_v24 = vrot.slane %v5156_v37, %v4578_v18 }
 0x31d   : > { %v3863_v48 = vpop.eup %3862  ;;  %3110 = vst [vmem:[%s5205_s18 + $0xc0] sm:$0xff] %v3861_v23  ;;  %2041 = vmatpush1.s8.msra.mxu1 %v1331_v59  ;;  %2007 = vmatprep.subr.s8.mxu0 %v1308_v22  ;;  %v1428_v22 = vld [vmem:[%s4550_s29 + $0x978] sm:$0xff] }
 0x31e   : > { %v3865_v9 = vpop.eup %3864  ;;  %3111 = vst [vmem:[%s5205_s18 + $0xc8] sm:$0xff] %v3863_v48  ;;  %2042 = vmatprep.subr.s8.mxu1 %v1500_v62  ;;  %v2602_v62 = vmul.f32 %v2467_v26, %v4731_v56 }
 0x31f   : > { %v3867_v6 = vpop.eup %3866  ;;  %3134 = vst [vmem:[%s5205_s18 + $0x180] sm:$0xff] %v3865_v9  ;;  %v2603_v9 = vmul.f32 %v2471_v19, %v4731_v56 }
 0x320   : > { %v3869_v44 = vpop.eup %3868  ;;  %3135 = vst [vmem:[%s5205_s18 + $0x188] sm:$0xff] %v3867_v6  ;;  %2008 = vmatpush2.s8.msra.mxu0 %v1307_v45 }
 0x321   : > { %v3871_v0 = vpop.eup %3870  ;;  %3158 = vst [vmem:[%s5205_s18 + $0x240] sm:$0xff] %v3869_v44  ;;  %2043 = vmatpush2.s8.msra.mxu1 %v1499_v32  ;;  %2009 = vmatprep.subr.s8.mxu0 %v1284_v21  ;;  %v2626_v21 = vmul.f32 %v2467_v26, %v4750_v11 }
 0x322   : > { %3159 = vst [vmem:[%s5205_s18 + $0x248] sm:$0xff] %v3871_v0  ;;  %2044 = vmatprep.subr.s8.mxu1 %v1476_v60  ;;  %v2627_v60 = vmul.f32 %v2471_v19, %v4750_v11  ;;  %v1235_v0 = vld [vmem:[%s4550_s29 + $0x370] sm:$0xff] }
 0x324   : > { %2010 = vmatpush2.s8.msra.mxu0 %v1283_v38 }
 0x325   : > { %2045 = vmatpush2.s8.msra.mxu1 %v1475_v13  ;;  %2011 = vmatprep.subr.s8.mxu0 %v1260_v31 }
 0x326   : > { %v3664_v52 = vpop.add.s32.mrf.mxu0.mxu1  ;;  %2046 = vmatprep.subr.s8.mxu1 %v1452_v33 }
 0x327   : > { %v2351_v47 = vcvt.s32.f32 %v3664_v52  ;;  %v3665_v16 = vpop.add.s32.mrf.mxu0.mxu1  ;;  %v2650_v52 = vmul.f32 %v2467_v26, %v4767_v34 }
 0x328   : > { %v2352_v43 = vcvt.s32.f32 %v3665_v16  ;;  %v3666_v59 = vpop.add.s32.mrf.mxu0.mxu1  ;;  %2012 = vmatpush2.s8.msra.mxu0 %v1259_v29  ;;  %v1427_v29 = vld [vmem:[%s4550_s29 + $0x970] sm:$0xff] }
 0x329   : > { %v2674_v23 = vmul.f32 %v2578_v35, %v2351_v47  ;;  %v2375_v48 = vcvt.s32.f32 %v3666_v59  ;;  %v3667_v45 = vpop.add.s32.mrf.mxu0.mxu1  ;;  %2047 = vmatpush2.s8.msra.mxu1 %v1451_v46  ;;  %2013 = vmatprep.subr.s8.mxu0 %v1236_v51  ;;  %v1214_v35 = vld [vmem:[%s4550_s29 + $0x2c8] sm:$0xff] }
 0x32a   : > { %v2675_v6 = vmul.f32 %v2579_v42, %v2352_v43  ;;  %v2376_v32 = vcvt.s32.f32 %v3667_v45  ;;  %v3668_v44 = vpop.add.s32.mrf.mxu0.mxu1  ;;  %2048 = vmatprep.subr.s8.mxu1 %v1428_v22  ;;  %v2651_v43 = vmul.f32 %v2471_v19, %v4767_v34  ;;  %v1406_v59 = vld [vmem:[%s4550_s29 + $0x8c8] sm:$0xff]  ;;  %v1213_v45 = vld [vmem:[%s4550_s29 + $0x2c0] sm:$0xff] }
 0x32b   : > { %v2896_v38 = vadd.f32 %v5234_v50, %v2674_v23  ;;  %v2698_v13 = vmul.f32 %v2602_v62, %v2375_v48  ;;  %v2399_v31 = vcvt.s32.f32 %v3668_v44  ;;  %v3669_v33 = vpop.add.s32.mrf.mxu0.mxu1 }
 0x32c   : > { %v2897_v47 = vadd.f32 %v2789_v24, %v2675_v6  ;;  %v2699_v16 = vmul.f32 %v2603_v9, %v2376_v32  ;;  %v2400_v46 = vcvt.s32.f32 %v3669_v33  ;;  %v3670_v42 = vpop.add.s32.mrf.mxu0.mxu1  ;;  %2014 = vmatpush2.s8.msra.mxu0 %v1235_v0  ;;  %v1405_v32 = vld [vmem:[%s4550_s29 + $0x8c0] sm:$0xff]  ;;  %v1166_v33 = vld [vmem:[%s4550_s29 + $0x148] sm:$0xff] }
 0x32d   : > { %3872 = vtanh.f32 %v2896_v38  ;;  %v2920_v51 = vadd.f32 %v5234_v50, %v2698_v13  ;;  %v2722_v23 = vmul.f32 %v2626_v21, %v2399_v31  ;;  %v2423_v62 = vcvt.s32.f32 %v3670_v42  ;;  %v3671_v48 = vpop.add.s32.mrf.mxu0.mxu1  ;;  %2049 = vmatpush2.s8.msra.mxu1 %v1427_v29  ;;  %2069 = vmatprep.subr.s8.mxu0 %v1214_v35  ;;  %v1382_v38 = vld [vmem:[%s4550_s29 + $0x808] sm:$0xff]  ;;  %v1189_v31 = vld [vmem:[%s4550_s29 + $0x200] sm:$0xff] }
 0x32e   : > { %3874 = vtanh.f32 %v2897_v47  ;;  %v2921_v26 = vadd.f32 %v2789_v24, %v2699_v16  ;;  %v2723_v22 = vmul.f32 %v2627_v60, %v2400_v46  ;;  %v2424_v9 = vcvt.s32.f32 %v3671_v48  ;;  %2104 = vmatprep.subr.s8.mxu1 %v1406_v59  ;;  %v1190_v60 = vld [vmem:[%s4550_s29 + $0x208] sm:$0xff]  ;;  %v1357_v29 = vld [vmem:[%s4550_s29 + $0x740] sm:$0xff] }
 0x32f   : > { %3876 = vtanh.f32 %v2920_v51  ;;  %v2944_v19 = vadd.f32 %v5234_v50, %v2722_v23  ;;  %v2746_v6 = vmul.f32 %v2650_v52, %v2423_v62  ;;  %2016 = vmatmul.mubr.s8.vlgmr.msra.gmra.mxu0 %v4877_v28  ;;  %v1358_v52 = vld [vmem:[%s4550_s29 + $0x748] sm:$0xff]  ;;  %v1141_v46 = vld [vmem:[%s4550_s29 + $0x80] sm:$0xff] }
 0x330   : > { %3878 = vtanh.f32 %v2921_v26  ;;  %v2945_v21 = vadd.f32 %v2789_v24, %v2723_v22  ;;  %v2747_v44 = vmul.f32 %v2651_v43, %v2424_v9  ;;  %2051 = vmatmul.mubr.s8.vlgmr.msra.gmra.mxu1 %v4881_v53  ;;  %2070 = vmatpush1.s8.msra.mxu0 %v1213_v45  ;;  %v1142_v35 = vld [vmem:[%s4550_s29 + $0x88] sm:$0xff]  ;;  %v1333_v43 = vld [vmem:[%s4550_s29 + $0x680] sm:$0xff] }
 0x331   : > { %3880 = vtanh.f32 %v2944_v19  ;;  %v2968_v0 = vadd.f32 %v5234_v50, %v2746_v6  ;;  %2085 = vmatprep.mubr.s8.mxu0 %v4879_v39  ;;  %2105 = vmatpush1.s8.msra.mxu1 %v1405_v32  ;;  %v1381_v50 = vld [vmem:[%s4550_s29 + $0x800] sm:$0xff]  ;;  %v1334_v47 = vld [vmem:[%s4550_s29 + $0x688] sm:$0xff] }
 0x332   : > { %3882 = vtanh.f32 %v2945_v21  ;;  %v2969_v13 = vadd.f32 %v2789_v24, %v2747_v44  ;;  %2120 = vmatprep.mubr.s8.mxu1 %v4883_v30  ;;  %2071 = vmatprep.subr.s8.mxu0 %v1190_v60  ;;  %v1165_v24 = vld [vmem:[%s4550_s29 + $0x140] sm:$0xff]  ;;  %v1310_v59 = vld [vmem:[%s4550_s29 + $0x5c8] sm:$0xff] }
 0x333   : > { %3884 = vtanh.f32 %v2968_v0  ;;  %2106 = vmatprep.subr.s8.mxu1 %v1382_v38  ;;  %v1502_v23 = vld [vmem:[%s4550_s29 + $0xbc8] sm:$0xff]  ;;  %v1309_v26 = vld [vmem:[%s4550_s29 + $0x5c0] sm:$0xff] }
 0x334   : > { %3886 = vtanh.f32 %v2969_v13  ;;  %2072 = vmatpush1.s8.msra.mxu0 %v1189_v31  ;;  %v1501_v9 = vld [vmem:[%s4550_s29 + $0xbc0] sm:$0xff]  ;;  %v1286_v45 = vld [vmem:[%s4550_s29 + $0x508] sm:$0xff] }
 0x335   : > { %2107 = vmatpush1.s8.msra.mxu1 %v1381_v50  ;;  %2073 = vmatprep.subr.s8.mxu0 %v1166_v33  ;;  %v1478_v6 = vld [vmem:[%s4550_s29 + $0xb08] sm:$0xff]  ;;  %v1285_v21 = vld [vmem:[%s4550_s29 + $0x500] sm:$0xff]  ;;  %v2793_v33 = vrot.slane %v5156_v37, %v4699_v5 }
 0x336   : > { %2108 = vmatprep.subr.s8.mxu1 %v1358_v52  ;;  %v1477_v44 = vld [vmem:[%s4550_s29 + $0xb00] sm:$0xff]  ;;  %v1262_v60 = vld [vmem:[%s4550_s29 + $0x448] sm:$0xff] }
 0x337   : > { %v1454_v0 = vld [vmem:[%s4550_s29 + $0xa48] sm:$0xff]  ;;  %v1261_v38 = vld [vmem:[%s4550_s29 + $0x440] sm:$0xff] }
 0x338   : > { %2074 = vmatpush1.s8.msra.mxu0 %v1165_v24  ;;  %v1453_v31 = vld [vmem:[%s4550_s29 + $0xa40] sm:$0xff]  ;;  %v1238_v50 = vld [vmem:[%s4550_s29 + $0x388] sm:$0xff] }
 0x339   : > { %2109 = vmatpush1.s8.msra.mxu1 %v1357_v29  ;;  %2075 = vmatprep.subr.s8.mxu0 %v1142_v35  ;;  %v1430_v29 = vld [vmem:[%s4550_s29 + $0x988] sm:$0xff]  ;;  %v2797_v35 = vrot.slane %v5156_v37, %v4702_v7 }
 0x33a   : > { %v3873_v16 = vpop.eup %3872  ;;  %2110 = vmatprep.subr.s8.mxu1 %v1334_v47 }
 0x33b   : > { %v3875_v42 = vpop.eup %3874  ;;  %3088 = vst [vmem:[%s5205_s18 + $0x10] sm:$0xff] %v3873_v16 }
 0x33c   : > { %v3877_v51 = vpop.eup %3876  ;;  %3089 = vst [vmem:[%s5205_s18 + $0x18] sm:$0xff] %v3875_v42  ;;  %2076 = vmatpush1.s8.msra.mxu0 %v1141_v46 }
 0x33d   : > { %v3879_v62 = vpop.eup %3878  ;;  %3112 = vst [vmem:[%s5205_s18 + $0xd0] sm:$0xff] %v3877_v51  ;;  %2111 = vmatpush1.s8.msra.mxu1 %v1333_v43  ;;  %2077 = vmatprep.subr.s8.mxu0 %v1310_v59  ;;  %v1237_v59 = vld [vmem:[%s4550_s29 + $0x380] sm:$0xff] }
 0x33e   : > { %v3881_v48 = vpop.eup %3880  ;;  %3113 = vst [vmem:[%s5205_s18 + $0xd8] sm:$0xff] %v3879_v62  ;;  %2112 = vmatprep.subr.s8.mxu1 %v1502_v23 }
 0x33f   : > { %v3883_v22 = vpop.eup %3882  ;;  %3136 = vst [vmem:[%s5205_s18 + $0x190] sm:$0xff] %v3881_v48  ;;  %v1429_v48 = vld [vmem:[%s4550_s29 + $0x980] sm:$0xff] }
 0x340   : > { %v3885_v19 = vpop.eup %3884  ;;  %3137 = vst [vmem:[%s5205_s18 + $0x198] sm:$0xff] %v3883_v22  ;;  %2078 = vmatpush2.s8.msra.mxu0 %v1309_v26  ;;  %v1216_v26 = vld [vmem:[%s4550_s29 + $0x2d8] sm:$0xff] }
 0x341   : > { %v3887_v32 = vpop.eup %3886  ;;  %3160 = vst [vmem:[%s5205_s18 + $0x250] sm:$0xff] %v3885_v19  ;;  %2113 = vmatpush2.s8.msra.mxu1 %v1501_v9  ;;  %2079 = vmatprep.subr.s8.mxu0 %v1286_v45 }
 0x342   : > { %3161 = vst [vmem:[%s5205_s18 + $0x258] sm:$0xff] %v3887_v32  ;;  %2114 = vmatprep.subr.s8.mxu1 %v1478_v6 }
 0x344   : > { %2080 = vmatpush2.s8.msra.mxu0 %v1285_v21 }
 0x345   : > { %2115 = vmatpush2.s8.msra.mxu1 %v1477_v44  ;;  %2081 = vmatprep.subr.s8.mxu0 %v1262_v60 }
 0x346   : > { %v3672_v13 = vpop.add.s32.mrf.mxu0.mxu1  ;;  %2116 = vmatprep.subr.s8.mxu1 %v1454_v0 }
 0x347   : > { %v2353_v52 = vcvt.s32.f32 %v3672_v13  ;;  %v3673_v24 = vpop.add.s32.mrf.mxu0.mxu1 }
 0x348   : > { %v2354_v47 = vcvt.s32.f32 %v3673_v24  ;;  %v3674_v16 = vpop.add.s32.mrf.mxu0.mxu1  ;;  %2082 = vmatpush2.s8.msra.mxu0 %v1261_v38 }
 0x349   : > { %v2676_v46 = vmul.f32 %v4723_v49, %v2353_v52  ;;  %v2377_v42 = vcvt.s32.f32 %v3674_v16  ;;  %2117 = vmatpush2.s8.msra.mxu1 %v1453_v31  ;;  %v3675_v43 = vpop.add.s32.mrf.mxu0.mxu1  ;;  %2083 = vmatprep.subr.s8.mxu0 %v1238_v50  ;;  %v1408_v49 = vld [vmem:[%s4550_s29 + $0x8d8] sm:$0xff]  ;;  %v1407_v50 = vld [vmem:[%s4550_s29 + $0x8d0] sm:$0xff] }
 0x34a   : > { %v2677_v51 = vmul.f32 %v4726_v54, %v2354_v47  ;;  %v2378_v23 = vcvt.s32.f32 %v3675_v43  ;;  %v3676_v62 = vpop.add.s32.mrf.mxu0.mxu1  ;;  %2118 = vmatprep.subr.s8.mxu1 %v1430_v29  ;;  %v1360_v43 = vld [vmem:[%s4550_s29 + $0x758] sm:$0xff] }
 0x34b   : > { %v2898_v22 = vadd.f32 %v2793_v33, %v2676_v46  ;;  %v2700_v9 = vmul.f32 %v4742_v2, %v2377_v42  ;;  %v2401_v45 = vcvt.s32.f32 %v3676_v62  ;;  %v3677_v19 = vpop.add.s32.mrf.mxu0.mxu1  ;;  %v1215_v2 = vld [vmem:[%s4550_s29 + $0x2d0] sm:$0xff]  ;;  %v1168_v42 = vld [vmem:[%s4550_s29 + $0x158] sm:$0xff] }
 0x34c   : > { %v2899_v6 = vadd.f32 %v2797_v35, %v2677_v51  ;;  %v2701_v32 = vmul.f32 %v4745_v3, %v2378_v23  ;;  %v2402_v21 = vcvt.s32.f32 %v3677_v19  ;;  %v3678_v44 = vpop.add.s32.mrf.mxu0.mxu1  ;;  %2084 = vmatpush2.s8.msra.mxu0 %v1237_v59  ;;  %v1144_v59 = vld [vmem:[%s4550_s29 + $0x98] sm:$0xff]  ;;  %v1143_v23 = vld [vmem:[%s4550_s29 + $0x90] sm:$0xff] }
 0x34d   : > { %3888 = vtanh.f32 %v2898_v22  ;;  %v2922_v54 = vadd.f32 %v2793_v33, %v2700_v9  ;;  %v2724_v60 = vmul.f32 %v4759_v58, %v2401_v45  ;;  %v2425_v0 = vcvt.s32.f32 %v3678_v44  ;;  %2119 = vmatpush2.s8.msra.mxu1 %v1429_v48  ;;  %v3679_v38 = vpop.add.s32.mrf.mxu0.mxu1  ;;  %2139 = vmatprep.subr.s8.mxu0 %v1216_v26  ;;  %v1192_v58 = vld [vmem:[%s4550_s29 + $0x218] sm:$0xff]  ;;  %v1335_v48 = vld [vmem:[%s4550_s29 + $0x690] sm:$0xff] }
 0x34e   : > { %3890 = vtanh.f32 %v2899_v6  ;;  %v2923_v13 = vadd.f32 %v2797_v35, %v2701_v32  ;;  %v2725_v31 = vmul.f32 %v4762_v41, %v2402_v21  ;;  %v2426_v3 = vcvt.s32.f32 %v3679_v38  ;;  %2174 = vmatprep.subr.s8.mxu1 %v1408_v49  ;;  %v1384_v41 = vld [vmem:[%s4550_s29 + $0x818] sm:$0xff]  ;;  %v1311_v49 = vld [vmem:[%s4550_s29 + $0x5d0] sm:$0xff] }
 0x34f   : > { %3892 = vtanh.f32 %v2922_v54  ;;  %v2946_v52 = vadd.f32 %v2793_v33, %v2724_v60  ;;  %v2748_v24 = vmul.f32 %v4776_v61, %v2425_v0  ;;  %2086 = vmatmul.mubr.s8.vlgmr.msra.gmra.mxu0 %v4877_v28  ;;  %v1191_v61 = vld [vmem:[%s4550_s29 + $0x210] sm:$0xff]  ;;  %v1336_v51 = vld [vmem:[%s4550_s29 + $0x698] sm:$0xff] }
 0x350   : > { %3894 = vtanh.f32 %v2923_v13  ;;  %v2947_v29 = vadd.f32 %v2797_v35, %v2725_v31  ;;  %v2749_v47 = vmul.f32 %v4779_v8, %v2426_v3  ;;  %2121 = vmatmul.mubr.s8.vlgmr.msra.gmra.mxu1 %v4881_v53  ;;  %2140 = vmatpush1.s8.msra.mxu0 %v1215_v2  ;;  %v1383_v8 = vld [vmem:[%s4550_s29 + $0x810] sm:$0xff]  ;;  %v1312_v26 = vld [vmem:[%s4550_s29 + $0x5d8] sm:$0xff] }
 0x351   : > { %3896 = vtanh.f32 %v2946_v52  ;;  %v2970_v16 = vadd.f32 %v2793_v33, %v2748_v24  ;;  %2155 = vmatprep.mubr.s8.mxu0 %v4879_v39  ;;  %2175 = vmatpush1.s8.msra.mxu1 %v1407_v50  ;;  %v1167_v33 = vld [vmem:[%s4550_s29 + $0x150] sm:$0xff]  ;;  %v1504_v9 = vld [vmem:[%s4550_s29 + $0xbd8] sm:$0xff] }
 0x352   : > { %3898 = vtanh.f32 %v2947_v29  ;;  %v2971_v46 = vadd.f32 %v2797_v35, %v2749_v47  ;;  %2190 = vmatprep.mubr.s8.mxu1 %v4883_v30  ;;  %2141 = vmatprep.subr.s8.mxu0 %v1192_v58  ;;  %v1359_v35 = vld [vmem:[%s4550_s29 + $0x750] sm:$0xff]  ;;  %v1288_v21 = vld [vmem:[%s4550_s29 + $0x518] sm:$0xff]  ;;  %v2801_v58 = vrot.slane %v5156_v37, %v4705_v10 }
 0x353   : > { %3900 = vtanh.f32 %v2970_v16  ;;  %2176 = vmatprep.subr.s8.mxu1 %v1384_v41  ;;  %v1503_v32 = vld [vmem:[%s4550_s29 + $0xbd0] sm:$0xff]  ;;  %v1480_v54 = vld [vmem:[%s4550_s29 + $0xb18] sm:$0xff]  ;;  %v2805_v16 = vrot.slane %v5156_v37, %v4709_v12 }
 0x354   : > { %3902 = vtanh.f32 %v2971_v46  ;;  %2142 = vmatpush1.s8.msra.mxu0 %v1191_v61  ;;  %v1287_v38 = vld [vmem:[%s4550_s29 + $0x510] sm:$0xff]  ;;  %v1264_v13 = vld [vmem:[%s4550_s29 + $0x458] sm:$0xff] }
 0x355   : > { %2177 = vmatpush1.s8.msra.mxu1 %v1383_v8  ;;  %2143 = vmatprep.subr.s8.mxu0 %v1168_v42  ;;  %v1479_v2 = vld [vmem:[%s4550_s29 + $0xb10] sm:$0xff]  ;;  %v1456_v31 = vld [vmem:[%s4550_s29 + $0xa58] sm:$0xff] }
 0x356   : > { %2178 = vmatprep.subr.s8.mxu1 %v1360_v43  ;;  %v1263_v3 = vld [vmem:[%s4550_s29 + $0x450] sm:$0xff]  ;;  %v1240_v24 = vld [vmem:[%s4550_s29 + $0x398] sm:$0xff] }
 0x357   : > { %v1455_v52 = vld [vmem:[%s4550_s29 + $0xa50] sm:$0xff]  ;;  %v1432_v41 = vld [vmem:[%s4550_s29 + $0x998] sm:$0xff] }
 0x358   : > { %2144 = vmatpush1.s8.msra.mxu0 %v1167_v33  ;;  %v1239_v33 = vld [vmem:[%s4550_s29 + $0x390] sm:$0xff] }
 0x359   : > { %2179 = vmatpush1.s8.msra.mxu1 %v1359_v35  ;;  %2145 = vmatprep.subr.s8.mxu0 %v1144_v59 }
 0x35a   : > { %v3889_v62 = vpop.eup %3888  ;;  %2180 = vmatprep.subr.s8.mxu1 %v1336_v51 }
 0x35b   : > { %v3891_v22 = vpop.eup %3890  ;;  %3090 = vst [vmem:[%s5205_s18 + $0x20] sm:$0xff] %v3889_v62  ;;  %v1218_v62 = vld [vmem:[%s4550_s29 + $0x2e8] sm:$0xff] }
 0x35c   : > { %v3893_v45 = vpop.eup %3892  ;;  %3091 = vst [vmem:[%s5205_s18 + $0x28] sm:$0xff] %v3891_v22  ;;  %2146 = vmatpush1.s8.msra.mxu0 %v1143_v23  ;;  %v1431_v23 = vld [vmem:[%s4550_s29 + $0x990] sm:$0xff] }
 0x35d   : > { %v3895_v19 = vpop.eup %3894  ;;  %3114 = vst [vmem:[%s5205_s18 + $0xe0] sm:$0xff] %v3893_v45  ;;  %2181 = vmatpush1.s8.msra.mxu1 %v1335_v48  ;;  %2147 = vmatprep.subr.s8.mxu0 %v1312_v26 }
 0x35e   : > { %v3897_v6 = vpop.eup %3896  ;;  %3115 = vst [vmem:[%s5205_s18 + $0xe8] sm:$0xff] %v3895_v19  ;;  %2182 = vmatprep.subr.s8.mxu1 %v1504_v9 }
 0x35f   : > { %v3899_v44 = vpop.eup %3898  ;;  %3138 = vst [vmem:[%s5205_s18 + $0x1a0] sm:$0xff] %v3897_v6 }
 0x360   : > { %v3901_v60 = vpop.eup %3900  ;;  %3139 = vst [vmem:[%s5205_s18 + $0x1a8] sm:$0xff] %v3899_v44  ;;  %2148 = vmatpush2.s8.msra.mxu0 %v1311_v49 }
 0x361   : > { %v3903_v0 = vpop.eup %3902  ;;  %3162 = vst [vmem:[%s5205_s18 + $0x260] sm:$0xff] %v3901_v60  ;;  %2183 = vmatpush2.s8.msra.mxu1 %v1503_v32  ;;  %2149 = vmatprep.subr.s8.mxu0 %v1288_v21  ;;  %v1409_v60 = vld [vmem:[%s4550_s29 + $0x8e0] sm:$0xff] }
 0x362   : > { %3163 = vst [vmem:[%s5205_s18 + $0x268] sm:$0xff] %v3903_v0  ;;  %2184 = vmatprep.subr.s8.mxu1 %v1480_v54 }
 0x364   : > { %2150 = vmatpush2.s8.msra.mxu0 %v1287_v38  ;;  %v5798_v38 = vld [vmem:[#allocation25_spill] sm:$0xff] }
 0x365   : > { %2185 = vmatpush2.s8.msra.mxu1 %v1479_v2  ;;  %2151 = vmatprep.subr.s8.mxu0 %v1264_v13 }
 0x366   : > { %v3680_v50 = vpop.add.s32.mrf.mxu0.mxu1  ;;  %2186 = vmatprep.subr.s8.mxu1 %v1456_v31  ;;  %v5799_v31 = vld [vmem:[#allocation26_spill] sm:$0xff] }
 0x367   : > { %v2355_v29 = vcvt.s32.f32 %v3680_v50  ;;  %v3681_v47 = vpop.add.s32.mrf.mxu0.mxu1 }
 0x368   : > { %v2356_v61 = vcvt.s32.f32 %v3681_v47  ;;  %v3682_v46 = vpop.add.s32.mrf.mxu0.mxu1  ;;  %2152 = vmatpush2.s8.msra.mxu0 %v1263_v3  ;;  %v1170_v47 = vld [vmem:[%s4550_s29 + $0x168] sm:$0xff] }
 0x369   : > { %v2678_v8 = vmul.f32 %v4729_v55, %v2355_v29  ;;  %v2379_v42 = vcvt.s32.f32 %v3682_v46  ;;  %2187 = vmatpush2.s8.msra.mxu1 %v1455_v52  ;;  %v3683_v43 = vpop.add.s32.mrf.mxu0.mxu1  ;;  %2153 = vmatprep.subr.s8.mxu0 %v1240_v24  ;;  %v1410_v55 = vld [vmem:[%s4550_s29 + $0x8e8] sm:$0xff]  ;;  %v1193_v52 = vld [vmem:[%s4550_s29 + $0x220] sm:$0xff] }
 0x36a   : > { %v2679_v35 = vmul.f32 %v4734_v57, %v2356_v61  ;;  %v2380_v59 = vcvt.s32.f32 %v3683_v43  ;;  %v3684_v51 = vpop.add.s32.mrf.mxu0.mxu1  ;;  %2188 = vmatprep.subr.s8.mxu1 %v1432_v41  ;;  %v1385_v29 = vld [vmem:[%s4550_s29 + $0x820] sm:$0xff]  ;;  %v1362_v41 = vld [vmem:[%s4550_s29 + $0x768] sm:$0xff] }
 0x36b   : > { %v2900_v48 = vadd.f32 %v2801_v58, %v2678_v8  ;;  %v2702_v37 = vmul.f32 %v4748_v4, %v2379_v42  ;;  %v2403_v26 = vcvt.s32.f32 %v3684_v51  ;;  %v3685_v22 = vpop.add.s32.mrf.mxu0.mxu1  ;;  %v1217_v4 = vld [vmem:[%s4550_s29 + $0x2e0] sm:$0xff]  ;;  %v1146_v61 = vld [vmem:[%s4550_s29 + $0xa8] sm:$0xff] }
 0x36c   : > { %v2901_v9 = vadd.f32 %v2805_v16, %v2679_v35  ;;  %v2703_v45 = vmul.f32 %v4753_v27, %v2380_v59  ;;  %v2404_v19 = vcvt.s32.f32 %v3685_v22  ;;  %v3686_v49 = vpop.add.s32.mrf.mxu0.mxu1  ;;  %2154 = vmatpush2.s8.msra.mxu0 %v1239_v33  ;;  %v1338_v46 = vld [vmem:[%s4550_s29 + $0x6a8] sm:$0xff]  ;;  %v1145_v8 = vld [vmem:[%s4550_s29 + $0xa0] sm:$0xff] }
 0x36d   : > { %3904 = vtanh.f32 %v2900_v48  ;;  %v2924_v57 = vadd.f32 %v2801_v58, %v2702_v37  ;;  %v2726_v6 = vmul.f32 %v4765_v20, %v2403_v26  ;;  %v2427_v32 = vcvt.s32.f32 %v3686_v49  ;;  %2189 = vmatpush2.s8.msra.mxu1 %v1431_v23  ;;  %v3687_v21 = vpop.add.s32.mrf.mxu0.mxu1  ;;  %2209 = vmatprep.subr.s8.mxu0 %v1218_v62  ;;  %v1194_v20 = vld [vmem:[%s4550_s29 + $0x228] sm:$0xff]  ;;  %v1337_v43 = vld [vmem:[%s4550_s29 + $0x6a0] sm:$0xff] }
 0x36e   : > { %3906 = vtanh.f32 %v2901_v9  ;;  %v2925_v44 = vadd.f32 %v2805_v16, %v2703_v45  ;;  %v2727_v54 = vmul.f32 %v4770_v1, %v2404_v19  ;;  %v2428_v27 = vcvt.s32.f32 %v3687_v21  ;;  %2244 = vmatprep.subr.s8.mxu1 %v1410_v55  ;;  %v1386_v1 = vld [vmem:[%s4550_s29 + $0x828] sm:$0xff]  ;;  %v1313_v62 = vld [vmem:[%s4550_s29 + $0x5e0] sm:$0xff] }
 0x36f   : > { %3908 = vtanh.f32 %v2924_v57  ;;  %v2948_v0 = vadd.f32 %v2801_v58, %v2726_v6  ;;  %v2750_v2 = vmul.f32 %v5798_v38, %v2427_v32  ;;  %2156 = vmatmul.mubr.s8.vlgmr.msra.gmra.mxu0 %v4877_v28  ;;  %v1314_v33 = vld [vmem:[%s4550_s29 + $0x5e8] sm:$0xff]  ;;  %v1505_v37 = vld [vmem:[%s4550_s29 + $0xbe0] sm:$0xff] }
 0x370   : > { %3910 = vtanh.f32 %v2925_v44  ;;  %v2949_v13 = vadd.f32 %v2805_v16, %v2727_v54  ;;  %v2751_v3 = vmul.f32 %v5799_v31, %v2428_v27  ;;  %2191 = vmatmul.mubr.s8.vlgmr.msra.gmra.mxu1 %v4881_v53  ;;  %2210 = vmatpush1.s8.msra.mxu0 %v1217_v4  ;;  %v1506_v59 = vld [vmem:[%s4550_s29 + $0xbe8] sm:$0xff]  ;;  %v1289_v19 = vld [vmem:[%s4550_s29 + $0x520] sm:$0xff]  ;;  %v5410_v4 = vld [vmem:[%s4560_s27 + $0x8] sm:$0xff] }
 0x371   : > { %3912 = vtanh.f32 %v2948_v0  ;;  %v2972_v50 = vadd.f32 %v2801_v58, %v2750_v2  ;;  %2225 = vmatprep.mubr.s8.mxu0 %v4879_v39  ;;  %2245 = vmatpush1.s8.msra.mxu1 %v1409_v60  ;;  %v1169_v58 = vld [vmem:[%s4550_s29 + $0x160] sm:$0xff]  ;;  %v1290_v26 = vld [vmem:[%s4550_s29 + $0x528] sm:$0xff]  ;;  %v5420_v2 = vrot.slane %v5410_v4, %v4569_v14 }
 0x372   : > { %3914 = vtanh.f32 %v2949_v13  ;;  %v2973_v24 = vadd.f32 %v2805_v16, %v2751_v3  ;;  %2260 = vmatprep.mubr.s8.mxu1 %v4883_v30  ;;  %2211 = vmatprep.subr.s8.mxu0 %v1194_v20  ;;  %v1361_v16 = vld [vmem:[%s4550_s29 + $0x760] sm:$0xff]  ;;  %v1482_v55 = vld [vmem:[%s4550_s29 + $0xb28] sm:$0xff] }
 0x373   : > { %3916 = vtanh.f32 %v2972_v50  ;;  %2246 = vmatprep.subr.s8.mxu1 %v1386_v1  ;;  %v1481_v49 = vld [vmem:[%s4550_s29 + $0xb20] sm:$0xff]  ;;  %v1266_v57 = vld [vmem:[%s4550_s29 + $0x468] sm:$0xff]  ;;  %v5426_v1 = vrot.slane %v5410_v4, %v4575_v17 }
 0x374   : > { %3918 = vtanh.f32 %v2973_v24  ;;  %2212 = vmatpush1.s8.msra.mxu0 %v1193_v52  ;;  %v5404_v6 = vld [vmem:[%s4557_s20 + $0x8] sm:$0xff] }
 0x375   : > { %2247 = vmatpush1.s8.msra.mxu1 %v1385_v29  ;;  %2213 = vmatprep.subr.s8.mxu0 %v1170_v47  ;;  %v2491_v32 = vrot.slane %v5404_v6, %v4569_v14  ;;  %v1458_v21 = vld [vmem:[%s4550_s29 + $0xa68] sm:$0xff]  ;;  %v2495_v44 = vrot.slane %v5404_v6, %v4575_v17  ;;  %v1265_v54 = vld [vmem:[%s4550_s29 + $0x460] sm:$0xff] }
 0x376   : > { %2248 = vmatprep.subr.s8.mxu1 %v1362_v41  ;;  %v1457_v60 = vld [vmem:[%s4550_s29 + $0xa60] sm:$0xff]  ;;  %v1242_v0 = vld [vmem:[%s4550_s29 + $0x3a8] sm:$0xff] }
 0x377   : > { %v2584_v38 = vmul.f32 %v2491_v32, %v4717_v40  ;;  %v1434_v31 = vld [vmem:[%s4550_s29 + $0x9a8] sm:$0xff]  ;;  %v2585_v3 = vmul.f32 %v2495_v44, %v4717_v40  ;;  %v2608_v29 = vmul.f32 %v2491_v32, %v4731_v56  ;;  %v2609_v41 = vmul.f32 %v2495_v44, %v4731_v56 }
 0x378   : > { %2214 = vmatpush1.s8.msra.mxu0 %v1169_v58 }
 0x379   : > { %2249 = vmatpush1.s8.msra.mxu1 %v1361_v16  ;;  %2215 = vmatprep.subr.s8.mxu0 %v1146_v61  ;;  %v1241_v16 = vld [vmem:[%s4550_s29 + $0x3a0] sm:$0xff] }
 0x37a   : > { %v3905_v42 = vpop.eup %3904  ;;  %2250 = vmatprep.subr.s8.mxu1 %v1338_v46 }
 0x37b   : > { %v3907_v35 = vpop.eup %3906  ;;  %3092 = vst [vmem:[%s5205_s18 + $0x30] sm:$0xff] %v3905_v42 }
 0x37c   : > { %v3909_v51 = vpop.eup %3908  ;;  %3093 = vst [vmem:[%s5205_s18 + $0x38] sm:$0xff] %v3907_v35  ;;  %2216 = vmatpush1.s8.msra.mxu0 %v1145_v8  ;;  %v2632_v8 = vmul.f32 %v2491_v32, %v4750_v11  ;;  %v1220_v35 = vld [vmem:[%s4550_s29 + $0x2f8] sm:$0xff] }
 0x37d   : > { %v3911_v23 = vpop.eup %3910  ;;  %3116 = vst [vmem:[%s5205_s18 + $0xf0] sm:$0xff] %v3909_v51  ;;  %2251 = vmatpush1.s8.msra.mxu1 %v1337_v43  ;;  %2217 = vmatprep.subr.s8.mxu0 %v1314_v33  ;;  %v2633_v43 = vmul.f32 %v2495_v44, %v4750_v11  ;;  %v1433_v33 = vld [vmem:[%s4550_s29 + $0x9a0] sm:$0xff] }
 0x37e   : > { %v3913_v48 = vpop.eup %3912  ;;  %3117 = vst [vmem:[%s5205_s18 + $0xf8] sm:$0xff] %v3911_v23  ;;  %2252 = vmatprep.subr.s8.mxu1 %v1506_v59 }
 0x37f   : > { %v3915_v22 = vpop.eup %3914  ;;  %3140 = vst [vmem:[%s5205_s18 + $0x1b0] sm:$0xff] %v3913_v48  ;;  %v2656_v48 = vmul.f32 %v2491_v32, %v4767_v34  ;;  %v1219_v32 = vld [vmem:[%s4550_s29 + $0x2f0] sm:$0xff] }
 0x380   : > { %v3917_v9 = vpop.eup %3916  ;;  %3141 = vst [vmem:[%s5205_s18 + $0x1b8] sm:$0xff] %v3915_v22  ;;  %2218 = vmatpush2.s8.msra.mxu0 %v1313_v62 }
 0x381   : > { %v3919_v45 = vpop.eup %3918  ;;  %3164 = vst [vmem:[%s5205_s18 + $0x270] sm:$0xff] %v3917_v9  ;;  %2253 = vmatpush2.s8.msra.mxu1 %v1505_v37  ;;  %2219 = vmatprep.subr.s8.mxu0 %v1290_v26  ;;  %v1412_v37 = vld [vmem:[%s4550_s29 + $0x8f8] sm:$0xff] }
 0x382   : > { %3165 = vst [vmem:[%s5205_s18 + $0x278] sm:$0xff] %v3919_v45  ;;  %2254 = vmatprep.subr.s8.mxu1 %v1482_v55  ;;  %v2657_v45 = vmul.f32 %v2495_v44, %v4767_v34 }
 0x384   : > { %2220 = vmatpush2.s8.msra.mxu0 %v1289_v19 }
 0x385   : > { %2255 = vmatpush2.s8.msra.mxu1 %v1481_v49  ;;  %2221 = vmatprep.subr.s8.mxu0 %v1266_v57 }
 0x386   : > { %v3688_v27 = vpop.add.s32.mrf.mxu0.mxu1  ;;  %2256 = vmatprep.subr.s8.mxu1 %v1458_v21 }
 0x387   : > { %v2357_v20 = vcvt.s32.f32 %v3688_v27  ;;  %v3689_v13 = vpop.add.s32.mrf.mxu0.mxu1 }
 0x388   : > { %v2358_v50 = vcvt.s32.f32 %v3689_v13  ;;  %v3690_v52 = vpop.add.s32.mrf.mxu0.mxu1  ;;  %2222 = vmatpush2.s8.msra.mxu0 %v1265_v54 }
 0x389   : > { %v2680_v24 = vmul.f32 %v2584_v38, %v2357_v20  ;;  %v2381_v47 = vcvt.s32.f32 %v3690_v52  ;;  %2257 = vmatpush2.s8.msra.mxu1 %v1457_v60  ;;  %v3691_v58 = vpop.add.s32.mrf.mxu0.mxu1  ;;  %2223 = vmatprep.subr.s8.mxu0 %v1242_v0  ;;  %v1411_v0 = vld [vmem:[%s4550_s29 + $0x8f0] sm:$0xff]  ;;  %v1196_v20 = vld [vmem:[%s4550_s29 + $0x238] sm:$0xff] }
 0x38a   : > { %v2681_v61 = vmul.f32 %v2585_v3, %v2358_v50  ;;  %v2382_v46 = vcvt.s32.f32 %v3691_v58  ;;  %v3692_v42 = vpop.add.s32.mrf.mxu0.mxu1  ;;  %2258 = vmatprep.subr.s8.mxu1 %v1434_v31  ;;  %v1388_v3 = vld [vmem:[%s4550_s29 + $0x838] sm:$0xff]  ;;  %v1195_v52 = vld [vmem:[%s4550_s29 + $0x230] sm:$0xff] }
 0x38b   : > { %v2902_v59 = vadd.f32 %v5420_v2, %v2680_v24  ;;  %v2704_v51 = vmul.f32 %v2608_v29, %v2381_v47  ;;  %v2405_v23 = vcvt.s32.f32 %v3692_v42  ;;  %v3693_v62 = vpop.add.s32.mrf.mxu0.mxu1  ;;  %v1387_v29 = vld [vmem:[%s4550_s29 + $0x830] sm:$0xff]  ;;  %v1172_v47 = vld [vmem:[%s4550_s29 + $0x178] sm:$0xff] }
 0x38c   : > { %v2903_v26 = vadd.f32 %v5426_v1, %v2681_v61  ;;  %v2705_v22 = vmul.f32 %v2609_v41, %v2382_v46  ;;  %v2406_v55 = vcvt.s32.f32 %v3693_v62  ;;  %v3694_v9 = vpop.add.s32.mrf.mxu0.mxu1  ;;  %2224 = vmatpush2.s8.msra.mxu0 %v1241_v16  ;;  %v1340_v41 = vld [vmem:[%s4550_s29 + $0x6b8] sm:$0xff]  ;;  %v1147_v58 = vld [vmem:[%s4550_s29 + $0xb0] sm:$0xff] }
 0x38d   : > { %3920 = vtanh.f32 %v2902_v59  ;;  %v2926_v19 = vadd.f32 %v5420_v2, %v2704_v51  ;;  %v2728_v49 = vmul.f32 %v2632_v8, %v2405_v23  ;;  %v2429_v57 = vcvt.s32.f32 %v3694_v9  ;;  %2259 = vmatpush2.s8.msra.mxu1 %v1433_v33  ;;  %v3695_v21 = vpop.add.s32.mrf.mxu0.mxu1  ;;  %2279 = vmatprep.subr.s8.mxu0 %v1220_v35  ;;  %v1339_v61 = vld [vmem:[%s4550_s29 + $0x6b0] sm:$0xff]  ;;  %v1316_v46 = vld [vmem:[%s4550_s29 + $0x5f8] sm:$0xff] }
 0x38e   : > { %3922 = vtanh.f32 %v2903_v26  ;;  %v2927_v54 = vadd.f32 %v5426_v1, %v2705_v22  ;;  %v2729_v27 = vmul.f32 %v2633_v43, %v2406_v55  ;;  %v2430_v60 = vcvt.s32.f32 %v3695_v21  ;;  %2314 = vmatprep.subr.s8.mxu1 %v1412_v37  ;;  %v1508_v42 = vld [vmem:[%s4550_s29 + $0xbf8] sm:$0xff]  ;;  %v1315_v35 = vld [vmem:[%s4550_s29 + $0x5f0] sm:$0xff] }
 0x38f   : > { %3924 = vtanh.f32 %v2926_v19  ;;  %v2950_v44 = vadd.f32 %v5420_v2, %v2728_v49  ;;  %v2752_v38 = vmul.f32 %v2656_v48, %v2429_v57  ;;  %2226 = vmatmul.mubr.s8.vlgmr.msra.gmra.mxu0 %v4877_v28  ;;  %v1507_v51 = vld [vmem:[%s4550_s29 + $0xbf0] sm:$0xff]  ;;  %v1292_v23 = vld [vmem:[%s4550_s29 + $0x538] sm:$0xff]  ;;  %v2503_v49 = vrot.slane %v5404_v6, %v4578_v18 }
 0x390   : > { %3926 = vtanh.f32 %v2927_v54  ;;  %v2951_v13 = vadd.f32 %v5426_v1, %v2729_v27  ;;  %v2753_v31 = vmul.f32 %v2657_v45, %v2430_v60  ;;  %2261 = vmatmul.mubr.s8.vlgmr.msra.gmra.mxu1 %v4881_v53  ;;  %2280 = vmatpush1.s8.msra.mxu0 %v1219_v32  ;;  %v1484_v48 = vld [vmem:[%s4550_s29 + $0xb38] sm:$0xff]  ;;  %v1291_v22 = vld [vmem:[%s4550_s29 + $0x530] sm:$0xff]  ;;  %v2499_v45 = vrot.slane %v5404_v6, %v4572_v15 }
 0x391   : > { %3928 = vtanh.f32 %v2950_v44  ;;  %v2974_v50 = vadd.f32 %v5420_v2, %v2752_v38  ;;  %2295 = vmatprep.mubr.s8.mxu0 %v4879_v39  ;;  %2315 = vmatpush1.s8.msra.mxu1 %v1411_v0  ;;  %v1364_v2 = vld [vmem:[%s4550_s29 + $0x778] sm:$0xff]  ;;  %v1171_v39 = vld [vmem:[%s4550_s29 + $0x170] sm:$0xff]  ;;  %v2817_v60 = vrot.slane %v5410_v4, %v4572_v15  ;;  %v2821_v6 = vrot.slane %v5410_v4, %v4578_v18 }
 0x392   : > { %3930 = vtanh.f32 %v2951_v13  ;;  %v2975_v24 = vadd.f32 %v5426_v1, %v2753_v31  ;;  %2330 = vmatprep.mubr.s8.mxu1 %v4883_v30  ;;  %2281 = vmatprep.subr.s8.mxu0 %v1196_v20  ;;  %v1363_v1 = vld [vmem:[%s4550_s29 + $0x770] sm:$0xff]  ;;  %v1148_v30 = vld [vmem:[%s4550_s29 + $0xb8] sm:$0xff]  ;;  %v2586_v27 = vmul.f32 %v2499_v45, %v4717_v40  ;;  %v2587_v20 = vmul.f32 %v2503_v49, %v4717_v40 }
 0x393   : > { %3932 = vtanh.f32 %v2974_v50  ;;  %2316 = vmatprep.subr.s8.mxu1 %v1388_v3  ;;  %v1483_v55 = vld [vmem:[%s4550_s29 + $0xb30] sm:$0xff]  ;;  %v1268_v9 = vld [vmem:[%s4550_s29 + $0x478] sm:$0xff]  ;;  %v2610_v50 = vmul.f32 %v2499_v45, %v4731_v56 }
 0x394   : > { %3934 = vtanh.f32 %v2975_v24  ;;  %2282 = vmatpush1.s8.msra.mxu0 %v1195_v52  ;;  %v1460_v19 = vld [vmem:[%s4550_s29 + $0xa78] sm:$0xff]  ;;  %v1267_v57 = vld [vmem:[%s4550_s29 + $0x470] sm:$0xff]  ;;  %v2611_v24 = vmul.f32 %v2503_v49, %v4731_v56 }
 0x395   : > { %2317 = vmatpush1.s8.msra.mxu1 %v1387_v29  ;;  %2283 = vmatprep.subr.s8.mxu0 %v1172_v47  ;;  %v1459_v32 = vld [vmem:[%s4550_s29 + $0xa70] sm:$0xff]  ;;  %v1244_v54 = vld [vmem:[%s4550_s29 + $0x3b8] sm:$0xff] }
 0x396   : > { %2318 = vmatprep.subr.s8.mxu1 %v1364_v2  ;;  %v1436_v38 = vld [vmem:[%s4550_s29 + $0x9b8] sm:$0xff]  ;;  %v1243_v47 = vld [vmem:[%s4550_s29 + $0x3b0] sm:$0xff] }
 0x398   : > { %2284 = vmatpush1.s8.msra.mxu0 %v1171_v39 }
 0x399   : > { %2319 = vmatpush1.s8.msra.mxu1 %v1363_v1  ;;  %2285 = vmatprep.subr.s8.mxu0 %v1148_v30  ;;  %v2634_v1 = vmul.f32 %v2499_v45, %v4750_v11 }
 0x39a   : > { %v3921_v16 = vpop.eup %3920  ;;  %2320 = vmatprep.subr.s8.mxu1 %v1340_v41  ;;  %v2635_v41 = vmul.f32 %v2503_v49, %v4750_v11 }
 0x39b   : > { %v3923_v8 = vpop.eup %3922  ;;  %3094 = vst [vmem:[%s5205_s18 + $0x40] sm:$0xff] %v3921_v16 }
 0x39c   : > { %v3925_v43 = vpop.eup %3924  ;;  %3095 = vst [vmem:[%s5205_s18 + $0x48] sm:$0xff] %v3923_v8  ;;  %2286 = vmatpush1.s8.msra.mxu0 %v1147_v58  ;;  %v1435_v58 = vld [vmem:[%s4550_s29 + $0x9b0] sm:$0xff] }
 0x39d   : > { %v3927_v33 = vpop.eup %3926  ;;  %3118 = vst [vmem:[%s5205_s18 + $0x100] sm:$0xff] %v3925_v43  ;;  %2321 = vmatpush1.s8.msra.mxu1 %v1339_v61  ;;  %2287 = vmatprep.subr.s8.mxu0 %v1316_v46 }
 0x39e   : > { %v3929_v59 = vpop.eup %3928  ;;  %3119 = vst [vmem:[%s5205_s18 + $0x108] sm:$0xff] %v3927_v33  ;;  %2322 = vmatprep.subr.s8.mxu1 %v1508_v42  ;;  %v2658_v42 = vmul.f32 %v2499_v45, %v4767_v34 }
 0x39f   : > { %v3931_v62 = vpop.eup %3930  ;;  %3142 = vst [vmem:[%s5205_s18 + $0x1c0] sm:$0xff] %v3929_v59 }
 0x3a0   : > { %v3933_v37 = vpop.eup %3932  ;;  %3143 = vst [vmem:[%s5205_s18 + $0x1c8] sm:$0xff] %v3931_v62  ;;  %2288 = vmatpush2.s8.msra.mxu0 %v1315_v35 }
 0x3a1   : > { %v3935_v26 = vpop.eup %3934  ;;  %3166 = vst [vmem:[%s5205_s18 + $0x280] sm:$0xff] %v3933_v37  ;;  %2323 = vmatpush2.s8.msra.mxu1 %v1507_v51  ;;  %2289 = vmatprep.subr.s8.mxu0 %v1292_v23  ;;  %v2659_v51 = vmul.f32 %v2503_v49, %v4767_v34 }
 0x3a2   : > { %3167 = vst [vmem:[%s5205_s18 + $0x288] sm:$0xff] %v3935_v26  ;;  %2324 = vmatprep.subr.s8.mxu1 %v1484_v48 }
 0x3a4   : > { %2290 = vmatpush2.s8.msra.mxu0 %v1291_v22 }
 0x3a5   : > { %2325 = vmatpush2.s8.msra.mxu1 %v1483_v55  ;;  %2291 = vmatprep.subr.s8.mxu0 %v1268_v9 }
 0x3a6   : > { %v3696_v21 = vpop.add.s32.mrf.mxu0.mxu1  ;;  %2326 = vmatprep.subr.s8.mxu1 %v1460_v19 }
 0x3a7   : > { %v2359_v0 = vcvt.s32.f32 %v3696_v21  ;;  %v3697_v44 = vpop.add.s32.mrf.mxu0.mxu1 }
 0x3a8   : > { %v2360_v13 = vcvt.s32.f32 %v3697_v44  ;;  %v3698_v31 = vpop.add.s32.mrf.mxu0.mxu1  ;;  %2292 = vmatpush2.s8.msra.mxu0 %v1267_v57 }
 0x3a9   : > { %v2682_v3 = vmul.f32 %v2586_v27, %v2359_v0  ;;  %v2383_v52 = vcvt.s32.f32 %v3698_v31  ;;  %2327 = vmatpush2.s8.msra.mxu1 %v1459_v32  ;;  %v3699_v29 = vpop.add.s32.mrf.mxu0.mxu1  ;;  %2293 = vmatprep.subr.s8.mxu0 %v1244_v54  ;;  %v2829_v31 = vrot.slane %v5410_v4, %v4702_v7 }
 0x3aa   : > { %v2683_v2 = vmul.f32 %v2587_v20, %v2360_v13  ;;  %v2384_v39 = vcvt.s32.f32 %v3699_v29  ;;  %v3700_v30 = vpop.add.s32.mrf.mxu0.mxu1  ;;  %2328 = vmatprep.subr.s8.mxu1 %v1436_v38  ;;  %v2825_v20 = vrot.slane %v5410_v4, %v4699_v5 }
 0x3ab   : > { %v2904_v16 = vadd.f32 %v2817_v60, %v2682_v3  ;;  %v2706_v61 = vmul.f32 %v2610_v50, %v2383_v52  ;;  %v2407_v46 = vcvt.s32.f32 %v3700_v30  ;;  %v3701_v8 = vpop.add.s32.mrf.mxu0.mxu1  ;;  %v5800_v52 = vld [vmem:[#allocation22_spill] sm:$0xff] }
 0x3ac   : > { %v2905_v43 = vadd.f32 %v2821_v6, %v2683_v2  ;;  %v2707_v33 = vmul.f32 %v2611_v24, %v2384_v39  ;;  %v2408_v35 = vcvt.s32.f32 %v3701_v8  ;;  %v3702_v59 = vpop.add.s32.mrf.mxu0.mxu1  ;;  %2294 = vmatpush2.s8.msra.mxu0 %v1243_v47  ;;  %v5801_v2 = vld [vmem:[#allocation23_spill] sm:$0xff] }
 0x3ad   : > { %3936 = vtanh.f32 %v2904_v16  ;;  %v2928_v23 = vadd.f32 %v2817_v60, %v2706_v61  ;;  %v2730_v62 = vmul.f32 %v2634_v1, %v2407_v46  ;;  %v2431_v48 = vcvt.s32.f32 %v3702_v59  ;;  %2329 = vmatpush2.s8.msra.mxu1 %v1435_v58  ;;  %v3703_v37 = vpop.add.s32.mrf.mxu0.mxu1  ;;  %v5802_v58 = vld [vmem:[#allocation24_spill] sm:$0xff] }
 0x3ae   : > { %3938 = vtanh.f32 %v2905_v43  ;;  %v2929_v26 = vadd.f32 %v2821_v6, %v2707_v33  ;;  %v2731_v22 = vmul.f32 %v2635_v41, %v2408_v35  ;;  %v2432_v55 = vcvt.s32.f32 %v3703_v37 }
 0x3af   : > { %3940 = vtanh.f32 %v2928_v23  ;;  %v2952_v9 = vadd.f32 %v2817_v60, %v2730_v62  ;;  %v2754_v45 = vmul.f32 %v2658_v42, %v2431_v48  ;;  %2296 = vmatmul.mubr.s8.vlgmr.msra.gmra.mxu0 %v4877_v28  ;;  %v5803_v42 = vld [vmem:[#allocation27_spill] sm:$0xff] }
 0x3b0   : > { %3942 = vtanh.f32 %v2929_v26  ;;  %v2953_v19 = vadd.f32 %v2821_v6, %v2731_v22  ;;  %v2755_v49 = vmul.f32 %v2659_v51, %v2432_v55  ;;  %2331 = vmatmul.mubr.s8.vlgmr.msra.gmra.mxu1 %v4881_v53  ;;  %v5804_v51 = vld [vmem:[#allocation28_spill] sm:$0xff]  ;;  %v5805_v26 = vld [vmem:[#allocation29_spill] sm:$0xff] }
 0x3b1   : > { %3944 = vtanh.f32 %v2952_v9  ;;  %v2976_v57 = vadd.f32 %v2817_v60, %v2754_v45  ;;  %v5806_v45 = vld [vmem:[#allocation30_spill] sm:$0xff] }
 0x3b2   : > { %3946 = vtanh.f32 %v2953_v19  ;;  %v2977_v21 = vadd.f32 %v2821_v6, %v2755_v49 }
 0x3b3   : > { %3948 = vtanh.f32 %v2976_v57  ;;  %v5807_v57 = vld [vmem:[#allocation31_spill] sm:$0xff] }
 0x3b4   : > { %3950 = vtanh.f32 %v2977_v21 }
 0x3ba   : > { %v3937_v32 = vpop.eup %3936 }
 0x3bb   : > { %v3939_v54 = vpop.eup %3938  ;;  %3096 = vst [vmem:[%s5205_s18 + $0x50] sm:$0xff] %v3937_v32 }
 0x3bc   : > { %v3941_v28 = vpop.eup %3940  ;;  %3097 = vst [vmem:[%s5205_s18 + $0x58] sm:$0xff] %v3939_v54 }
 0x3bd   : > { %v3943_v27 = vpop.eup %3942  ;;  %3120 = vst [vmem:[%s5205_s18 + $0x110] sm:$0xff] %v3941_v28 }
 0x3be   : > { %v3945_v0 = vpop.eup %3944  ;;  %3121 = vst [vmem:[%s5205_s18 + $0x118] sm:$0xff] %v3943_v27 }
 0x3bf   : > { %v3947_v53 = vpop.eup %3946  ;;  %3144 = vst [vmem:[%s5205_s18 + $0x1d0] sm:$0xff] %v3945_v0 }
 0x3c0   : > { %v3949_v44 = vpop.eup %3948  ;;  %3145 = vst [vmem:[%s5205_s18 + $0x1d8] sm:$0xff] %v3947_v53 }
 0x3c1   : > { %v3951_v60 = vpop.eup %3950  ;;  %3168 = vst [vmem:[%s5205_s18 + $0x290] sm:$0xff] %v3949_v44 }
 0x3c2   : > { %3169 = vst [vmem:[%s5205_s18 + $0x298] sm:$0xff] %v3951_v60 }
 0x3c6   : > { %v3704_v38 = vpop.add.s32.mrf.mxu0.mxu1 }
 0x3c7   : > { %v2361_v6 = vcvt.s32.f32 %v3704_v38  ;;  %v3705_v13 = vpop.add.s32.mrf.mxu0.mxu1 }
 0x3c8   : > { %v2362_v3 = vcvt.s32.f32 %v3705_v13  ;;  %v3706_v50 = vpop.add.s32.mrf.mxu0.mxu1  ;;  %v2833_v13 = vrot.slane %v5410_v4, %v4705_v10 }
 0x3c9   : > { %v2684_v24 = vmul.f32 %v5800_v52, %v2361_v6  ;;  %v2385_v29 = vcvt.s32.f32 %v3706_v50  ;;  %v3707_v47 = vpop.add.s32.mrf.mxu0.mxu1  ;;  %v2837_v50 = vrot.slane %v5410_v4, %v4709_v12 }
 0x3ca   : > { %v2685_v39 = vmul.f32 %v5801_v2, %v2362_v3  ;;  %v2386_v1 = vcvt.s32.f32 %v3707_v47  ;;  %v3708_v30 = vpop.add.s32.mrf.mxu0.mxu1 }
 0x3cb   : > { %v2906_v41 = vadd.f32 %v2825_v20, %v2684_v24  ;;  %v2708_v16 = vmul.f32 %v5802_v58, %v2385_v29  ;;  %v2409_v61 = vcvt.s32.f32 %v3708_v30  ;;  %v3709_v46 = vpop.add.s32.mrf.mxu0.mxu1  ;;  %v5808_v29 = vld [vmem:[#allocation32_spill] sm:$0xff] }
 0x3cc   : > { %v2907_v8 = vadd.f32 %v2829_v31, %v2685_v39  ;;  %v2709_v43 = vmul.f32 %v5803_v42, %v2386_v1  ;;  %v2410_v33 = vcvt.s32.f32 %v3709_v46  ;;  %v3710_v35 = vpop.add.s32.mrf.mxu0.mxu1  ;;  %v5809_v1 = vld [vmem:[#allocation33_spill] sm:$0xff] }
 0x3cd   : > { %3952 = vtanh.f32 %v2906_v41  ;;  %v2930_v59 = vadd.f32 %v2825_v20, %v2708_v16  ;;  %v2732_v23 = vmul.f32 %v5804_v51, %v2409_v61  ;;  %v2433_v62 = vcvt.s32.f32 %v3710_v35  ;;  %v3711_v48 = vpop.add.s32.mrf.mxu0.mxu1  ;;  %v5810_v61 = vld [vmem:[#allocation34_spill] sm:$0xff] }
 0x3ce   : > { %3954 = vtanh.f32 %v2907_v8  ;;  %v2931_v37 = vadd.f32 %v2829_v31, %v2709_v43  ;;  %v2733_v22 = vmul.f32 %v5805_v26, %v2410_v33  ;;  %v2434_v55 = vcvt.s32.f32 %v3711_v48  ;;  %v5811_v33 = vld [vmem:[#allocation35_spill] sm:$0xff] }
 0x3cf   : > { %3956 = vtanh.f32 %v2930_v59  ;;  %v2954_v9 = vadd.f32 %v2825_v20, %v2732_v23  ;;  %v2756_v19 = vmul.f32 %v5806_v45, %v2433_v62  ;;  %v5812_v23 = vld [vmem:[#allocation36_spill] sm:$0xff] }
 0x3d0   : > { %3958 = vtanh.f32 %v2931_v37  ;;  %v2955_v49 = vadd.f32 %v2829_v31, %v2733_v22  ;;  %v2757_v21 = vmul.f32 %v5807_v57, %v2434_v55  ;;  %v5813_v22 = vld [vmem:[#allocation37_spill] sm:$0xff] }
 0x3d1   : > { %3960 = vtanh.f32 %v2954_v9  ;;  %v2978_v32 = vadd.f32 %v2825_v20, %v2756_v19  ;;  %v5814_v19 = vld [vmem:[#allocation38_spill] sm:$0xff] }
 0x3d2   : > { %3962 = vtanh.f32 %v2955_v49  ;;  %v2979_v54 = vadd.f32 %v2829_v31, %v2757_v21 }
 0x3d3   : > { %3964 = vtanh.f32 %v2978_v32 }
 0x3d4   : > { %3966 = vtanh.f32 %v2979_v54 }
 0x3da   : > { %v3953_v28 = vpop.eup %3952 }
 0x3db   : > { %v3955_v27 = vpop.eup %3954  ;;  %3098 = vst [vmem:[%s5205_s18 + $0x60] sm:$0xff] %v3953_v28 }
 0x3dc   : > { %v3957_v0 = vpop.eup %3956  ;;  %3099 = vst [vmem:[%s5205_s18 + $0x68] sm:$0xff] %v3955_v27 }
 0x3dd   : > { %v3959_v53 = vpop.eup %3958  ;;  %3122 = vst [vmem:[%s5205_s18 + $0x120] sm:$0xff] %v3957_v0 }
 0x3de   : > { %v3961_v44 = vpop.eup %3960  ;;  %3123 = vst [vmem:[%s5205_s18 + $0x128] sm:$0xff] %v3959_v53 }
 0x3df   : > { %v3963_v60 = vpop.eup %3962  ;;  %3146 = vst [vmem:[%s5205_s18 + $0x1e0] sm:$0xff] %v3961_v44 }
 0x3e0   : > { %v3965_v38 = vpop.eup %3964  ;;  %3147 = vst [vmem:[%s5205_s18 + $0x1e8] sm:$0xff] %v3963_v60 }
 0x3e1   : > { %v3967_v20 = vpop.eup %3966  ;;  %3170 = vst [vmem:[%s5205_s18 + $0x2a0] sm:$0xff] %v3965_v38 }
 0x3e2   : > { %3171 = vst [vmem:[%s5205_s18 + $0x2a8] sm:$0xff] %v3967_v20  ;;  %v5555_v20 = vld [vmem:[%s4557_s20 + $0x10] sm:$0xff] }
 0x3e6   : > { %v3712_v6 = vpop.add.s32.mrf.mxu0.mxu1 }
 0x3e7   : > { %v2363_v31 = vcvt.s32.f32 %v3712_v6  ;;  %v3713_v3 = vpop.add.s32.mrf.mxu0.mxu1  ;;  %v2523_v6 = vrot.slane %v5555_v20, %v4569_v14 }
 0x3e8   : > { %v2364_v52 = vcvt.s32.f32 %v3713_v3  ;;  %v3714_v24 = vpop.add.s32.mrf.mxu0.mxu1 }
 0x3e9   : > { %v2686_v47 = vmul.f32 %v5808_v29, %v2363_v31  ;;  %v2387_v2 = vcvt.s32.f32 %v3714_v24  ;;  %v3715_v39 = vpop.add.s32.mrf.mxu0.mxu1  ;;  %v2527_v31 = vrot.slane %v5555_v20, %v4575_v17 }
 0x3ea   : > { %v2687_v30 = vmul.f32 %v5809_v1, %v2364_v52  ;;  %v2388_v41 = vcvt.s32.f32 %v3715_v39  ;;  %v3716_v58 = vpop.add.s32.mrf.mxu0.mxu1 }
 0x3eb   : > { %v2908_v16 = vadd.f32 %v2833_v13, %v2686_v47  ;;  %v2710_v46 = vmul.f32 %v5810_v61, %v2387_v2  ;;  %v2411_v8 = vcvt.s32.f32 %v3716_v58  ;;  %v3717_v42 = vpop.add.s32.mrf.mxu0.mxu1  ;;  %v2593_v47 = vmul.f32 %v2527_v31, %v4717_v40 }
 0x3ec   : > { %v2909_v43 = vadd.f32 %v2837_v50, %v2687_v30  ;;  %v2711_v35 = vmul.f32 %v5811_v33, %v2388_v41  ;;  %v2412_v59 = vcvt.s32.f32 %v3717_v42  ;;  %v3718_v4 = vpop.add.s32.mrf.mxu0.mxu1  ;;  %v2616_v41 = vmul.f32 %v2523_v6, %v4731_v56 }
 0x3ed   : > { %3968 = vtanh.f32 %v2908_v16  ;;  %v2932_v51 = vadd.f32 %v2833_v13, %v2710_v46  ;;  %v2734_v62 = vmul.f32 %v5812_v23, %v2411_v8  ;;  %v2435_v48 = vcvt.s32.f32 %v3718_v4  ;;  %v3719_v37 = vpop.add.s32.mrf.mxu0.mxu1 }
 0x3ee   : > { %3970 = vtanh.f32 %v2909_v43  ;;  %v2933_v26 = vadd.f32 %v2837_v50, %v2711_v35  ;;  %v2735_v55 = vmul.f32 %v5813_v22, %v2412_v59  ;;  %v2436_v9 = vcvt.s32.f32 %v3719_v37 }
 0x3ef   : > { %3972 = vtanh.f32 %v2932_v51  ;;  %v2956_v45 = vadd.f32 %v2833_v13, %v2734_v62  ;;  %v2758_v49 = vmul.f32 %v5814_v19, %v2435_v48  ;;  %v2617_v16 = vmul.f32 %v2527_v31, %v4731_v56 }
 0x3f0   : > { %3974 = vtanh.f32 %v2933_v26  ;;  %v2957_v57 = vadd.f32 %v2837_v50, %v2735_v55  ;;  %v2759_v21 = vmul.f32 %v4871_v25, %v2436_v9  ;;  %v2641_v43 = vmul.f32 %v2527_v31, %v4750_v11 }
 0x3f1   : > { %3976 = vtanh.f32 %v2956_v45  ;;  %v2980_v32 = vadd.f32 %v2833_v13, %v2758_v49  ;;  %v5560_v13 = vld [vmem:[%s4560_s27 + $0x10] sm:$0xff]  ;;  %v2664_v4 = vmul.f32 %v2523_v6, %v4767_v34  ;;  %v2665_v37 = vmul.f32 %v2527_v31, %v4767_v34 }
 0x3f2   : > { %3978 = vtanh.f32 %v2957_v57  ;;  %v2981_v54 = vadd.f32 %v2837_v50, %v2759_v21  ;;  %v2592_v50 = vmul.f32 %v2523_v6, %v4717_v40  ;;  %v2841_v52 = vrot.slane %v5560_v13, %v4569_v14 }
 0x3f3   : > { %3980 = vtanh.f32 %v2980_v32  ;;  %v2845_v2 = vrot.slane %v5560_v13, %v4575_v17  ;;  %v2640_v14 = vmul.f32 %v2523_v6, %v4750_v11 }
 0x3f4   : > { %3982 = vtanh.f32 %v2981_v54 }
 0x3fa   : > { %v3969_v28 = vpop.eup %3968 }
 0x3fb   : > { %v3971_v27 = vpop.eup %3970  ;;  %3100 = vst [vmem:[%s5205_s18 + $0x70] sm:$0xff] %v3969_v28 }
 0x3fc   : > { %v3973_v0 = vpop.eup %3972  ;;  %3101 = vst [vmem:[%s5205_s18 + $0x78] sm:$0xff] %v3971_v27 }
 0x3fd   : > { %v3975_v53 = vpop.eup %3974  ;;  %3124 = vst [vmem:[%s5205_s18 + $0x130] sm:$0xff] %v3973_v0 }
 0x3fe   : > { %v3977_v25 = vpop.eup %3976  ;;  %3125 = vst [vmem:[%s5205_s18 + $0x138] sm:$0xff] %v3975_v53 }
 0x3ff   : > { %v3979_v44 = vpop.eup %3978  ;;  %3148 = vst [vmem:[%s5205_s18 + $0x1f0] sm:$0xff] %v3977_v25 }
 0x400   : > { %v3981_v60 = vpop.eup %3980  ;;  %3149 = vst [vmem:[%s5205_s18 + $0x1f8] sm:$0xff] %v3979_v44 }
 0x401   : > { %v3983_v38 = vpop.eup %3982  ;;  %3172 = vst [vmem:[%s5205_s18 + $0x2b0] sm:$0xff] %v3981_v60 }
 0x402   : > { %3173 = vst [vmem:[%s5205_s18 + $0x2b8] sm:$0xff] %v3983_v38 }
 0x406   : > { %v3720_v3 = vpop.add.s32.mrf.mxu0.mxu1 }
 0x407   : > { %v2365_v24 = vcvt.s32.f32 %v3720_v3  ;;  %v3721_v29 = vpop.add.s32.mrf.mxu0.mxu1  ;;  %v2531_v3 = vrot.slane %v5555_v20, %v4572_v15 }
 0x408   : > { %v2366_v39 = vcvt.s32.f32 %v3721_v29  ;;  %v3722_v1 = vpop.add.s32.mrf.mxu0.mxu1  ;;  %v2849_v29 = vrot.slane %v5560_v13, %v4572_v15 }
 0x409   : > { %v2688_v30 = vmul.f32 %v2592_v50, %v2365_v24  ;;  %v2389_v58 = vcvt.s32.f32 %v3722_v1  ;;  %v3723_v61 = vpop.add.s32.mrf.mxu0.mxu1  ;;  %v2535_v50 = vrot.slane %v5555_v20, %v4578_v18  ;;  %v2594_v24 = vmul.f32 %v2531_v3, %v4717_v40 }
 0x40a   : > { %v2689_v46 = vmul.f32 %v2593_v47, %v2366_v39  ;;  %v2390_v8 = vcvt.s32.f32 %v3723_v61  ;;  %v3724_v42 = vpop.add.s32.mrf.mxu0.mxu1  ;;  %v2853_v1 = vrot.slane %v5560_v13, %v4578_v18  ;;  %v2642_v15 = vmul.f32 %v2531_v3, %v4750_v11 }
 0x40b   : > { %v2910_v33 = vadd.f32 %v2841_v52, %v2688_v30  ;;  %v2712_v35 = vmul.f32 %v2616_v41, %v2389_v58  ;;  %v2413_v59 = vcvt.s32.f32 %v3724_v42  ;;  %v3725_v17 = vpop.add.s32.mrf.mxu0.mxu1  ;;  %v2595_v39 = vmul.f32 %v2535_v50, %v4717_v40 }
 0x40c   : > { %v2911_v51 = vadd.f32 %v2845_v2, %v2689_v46  ;;  %v2713_v23 = vmul.f32 %v2617_v16, %v2390_v8  ;;  %v2414_v62 = vcvt.s32.f32 %v3725_v17  ;;  %v3726_v48 = vpop.add.s32.mrf.mxu0.mxu1  ;;  %v2618_v16 = vmul.f32 %v2531_v3, %v4731_v56 }
 0x40d   : > { %3984 = vtanh.f32 %v2910_v33  ;;  %v2934_v26 = vadd.f32 %v2841_v52, %v2712_v35  ;;  %v2736_v22 = vmul.f32 %v2640_v14, %v2413_v59  ;;  %v2437_v55 = vcvt.s32.f32 %v3726_v48  ;;  %v3727_v9 = vpop.add.s32.mrf.mxu0.mxu1 }
 0x40e   : > { %3986 = vtanh.f32 %v2911_v51  ;;  %v2935_v45 = vadd.f32 %v2845_v2, %v2713_v23  ;;  %v2737_v19 = vmul.f32 %v2641_v43, %v2414_v62  ;;  %v2438_v49 = vcvt.s32.f32 %v3727_v9 }
 0x40f   : > { %3988 = vtanh.f32 %v2934_v26  ;;  %v2958_v57 = vadd.f32 %v2841_v52, %v2736_v22  ;;  %v2760_v21 = vmul.f32 %v2664_v4, %v2437_v55  ;;  %v2619_v20 = vmul.f32 %v2535_v50, %v4731_v56 }
 0x410   : > { %3990 = vtanh.f32 %v2935_v45  ;;  %v2959_v32 = vadd.f32 %v2845_v2, %v2737_v19  ;;  %v2761_v54 = vmul.f32 %v2665_v37, %v2438_v49  ;;  %v2643_v43 = vmul.f32 %v2535_v50, %v4750_v11 }
 0x411   : > { %3992 = vtanh.f32 %v2958_v57  ;;  %v2982_v28 = vadd.f32 %v2841_v52, %v2760_v21  ;;  %v2666_v59 = vmul.f32 %v2531_v3, %v4767_v34  ;;  %v2667_v56 = vmul.f32 %v2535_v50, %v4767_v34 }
 0x412   : > { %3994 = vtanh.f32 %v2959_v32  ;;  %v2983_v27 = vadd.f32 %v2845_v2, %v2761_v54 }
 0x413   : > { %3996 = vtanh.f32 %v2982_v28 }
 0x414   : > { %3998 = vtanh.f32 %v2983_v27 }
 0x41a   : > { %v3985_v0 = vpop.eup %3984 }
 0x41b   : > { %v3987_v53 = vpop.eup %3986  ;;  %3102 = vst [vmem:[%s5205_s18 + $0x80] sm:$0xff] %v3985_v0 }
 0x41c   : > { %v3989_v25 = vpop.eup %3988  ;;  %3103 = vst [vmem:[%s5205_s18 + $0x88] sm:$0xff] %v3987_v53 }
 0x41d   : > { %v3991_v44 = vpop.eup %3990  ;;  %3126 = vst [vmem:[%s5205_s18 + $0x140] sm:$0xff] %v3989_v25 }
 0x41e   : > { %v3993_v60 = vpop.eup %3992  ;;  %3127 = vst [vmem:[%s5205_s18 + $0x148] sm:$0xff] %v3991_v44 }
 0x41f   : > { %v3995_v38 = vpop.eup %3994  ;;  %3150 = vst [vmem:[%s5205_s18 + $0x200] sm:$0xff] %v3993_v60  ;;  %v2857_v60 = vrot.slane %v5560_v13, %v4699_v5 }
 0x420   : > { %v3997_v6 = vpop.eup %3996  ;;  %3151 = vst [vmem:[%s5205_s18 + $0x208] sm:$0xff] %v3995_v38 }
 0x421   : > { %v3999_v31 = vpop.eup %3998  ;;  %3174 = vst [vmem:[%s5205_s18 + $0x2c0] sm:$0xff] %v3997_v6 }
 0x422   : > { %3175 = vst [vmem:[%s5205_s18 + $0x2c8] sm:$0xff] %v3999_v31  ;;  %v2861_v31 = vrot.slane %v5560_v13, %v4702_v7 }
 0x426   : > { %v3728_v52 = vpop.add.s32.mrf.mxu0.mxu1 }
 0x427   : > { %v2367_v47 = vcvt.s32.f32 %v3728_v52  ;;  %v3729_v2 = vpop.add.s32.mrf.mxu0.mxu1 }
 0x428   : > { %v2368_v30 = vcvt.s32.f32 %v3729_v2  ;;  %v3730_v41 = vpop.add.s32.mrf.mxu0.mxu1 }
 0x429   : > { %v2690_v58 = vmul.f32 %v2594_v24, %v2367_v47  ;;  %v2391_v61 = vcvt.s32.f32 %v3730_v41  ;;  %v3731_v46 = vpop.add.s32.mrf.mxu0.mxu1 }
 0x42a   : > { %v2691_v8 = vmul.f32 %v2595_v39, %v2368_v30  ;;  %v2392_v14 = vcvt.s32.f32 %v3731_v46  ;;  %v3732_v42 = vpop.add.s32.mrf.mxu0.mxu1  ;;  %v5815_v30 = vld [vmem:[#allocation39_spill] sm:$0xff] }
 0x42b   : > { %v2912_v40 = vadd.f32 %v2849_v29, %v2690_v58  ;;  %v2714_v33 = vmul.f32 %v2618_v16, %v2391_v61  ;;  %v2415_v35 = vcvt.s32.f32 %v3732_v42  ;;  %v3733_v18 = vpop.add.s32.mrf.mxu0.mxu1  ;;  %v5816_v61 = vld [vmem:[#allocation40_spill] sm:$0xff] }
 0x42c   : > { %v2913_v17 = vadd.f32 %v2853_v1, %v2691_v8  ;;  %v2715_v4 = vmul.f32 %v2619_v20, %v2392_v14  ;;  %v2416_v51 = vcvt.s32.f32 %v3733_v18  ;;  %v3734_v23 = vpop.add.s32.mrf.mxu0.mxu1  ;;  %v5817_v14 = vld [vmem:[#allocation41_spill] sm:$0xff]  ;;  %v5819_v18 = vld [vmem:[#allocation43_spill] sm:$0xff] }
 0x42d   : > { %4000 = vtanh.f32 %v2912_v40  ;;  %v2936_v62 = vadd.f32 %v2849_v29, %v2714_v33  ;;  %v2738_v48 = vmul.f32 %v2642_v15, %v2415_v35  ;;  %v2439_v37 = vcvt.s32.f32 %v3734_v23  ;;  %v3735_v26 = vpop.add.s32.mrf.mxu0.mxu1 }
 0x42e   : > { %4002 = vtanh.f32 %v2913_v17  ;;  %v2937_v22 = vadd.f32 %v2853_v1, %v2715_v4  ;;  %v2739_v11 = vmul.f32 %v2643_v43, %v2416_v51  ;;  %v2440_v55 = vcvt.s32.f32 %v3735_v26  ;;  %v5818_v43 = vld [vmem:[#allocation42_spill] sm:$0xff]  ;;  %v5820_v4 = vld [vmem:[#allocation44_spill] sm:$0xff] }
 0x42f   : > { %4004 = vtanh.f32 %v2936_v62  ;;  %v2960_v9 = vadd.f32 %v2849_v29, %v2738_v48  ;;  %v2762_v45 = vmul.f32 %v2666_v59, %v2439_v37 }
 0x430   : > { %4006 = vtanh.f32 %v2937_v22  ;;  %v2961_v19 = vadd.f32 %v2853_v1, %v2739_v11  ;;  %v2763_v49 = vmul.f32 %v2667_v56, %v2440_v55 }
 0x431   : > { %4008 = vtanh.f32 %v2960_v9  ;;  %v2984_v34 = vadd.f32 %v2849_v29, %v2762_v45 }
 0x432   : > { %4010 = vtanh.f32 %v2961_v19  ;;  %v2985_v57 = vadd.f32 %v2853_v1, %v2763_v49  ;;  %v2865_v19 = vrot.slane %v5560_v13, %v4705_v10 }
 0x433   : > { %4012 = vtanh.f32 %v2984_v34 }
 0x434   : > { %4014 = vtanh.f32 %v2985_v57  ;;  %v2869_v57 = vrot.slane %v5560_v13, %v4709_v12 }
 0x43a   : > { %v4001_v21 = vpop.eup %4000 }
 0x43b   : > { %v4003_v32 = vpop.eup %4002  ;;  %3104 = vst [vmem:[%s5205_s18 + $0x90] sm:$0xff] %v4001_v21 }
 0x43c   : > { %v4005_v54 = vpop.eup %4004  ;;  %3105 = vst [vmem:[%s5205_s18 + $0x98] sm:$0xff] %v4003_v32 }
 0x43d   : > { %v4007_v28 = vpop.eup %4006  ;;  %3128 = vst [vmem:[%s5205_s18 + $0x150] sm:$0xff] %v4005_v54  ;;  %v5821_v54 = vld [vmem:[#allocation45_spill] sm:$0xff] }
 0x43e   : > { %v4009_v27 = vpop.eup %4008  ;;  %3129 = vst [vmem:[%s5205_s18 + $0x158] sm:$0xff] %v4007_v28 }
 0x43f   : > { %v4011_v0 = vpop.eup %4010  ;;  %3152 = vst [vmem:[%s5205_s18 + $0x210] sm:$0xff] %v4009_v27 }
 0x440   : > { %v4013_v53 = vpop.eup %4012  ;;  %3153 = vst [vmem:[%s5205_s18 + $0x218] sm:$0xff] %v4011_v0 }
 0x441   : > { %v4015_v25 = vpop.eup %4014  ;;  %3176 = vst [vmem:[%s5205_s18 + $0x2d0] sm:$0xff] %v4013_v53  ;;  %v5822_v53 = vld [vmem:[#allocation46_spill] sm:$0xff] }
 0x442   : > { %3177 = vst [vmem:[%s5205_s18 + $0x2d8] sm:$0xff] %v4015_v25 }
 0x446   : > { %v3736_v44 = vpop.add.s32.mrf.mxu0.mxu1 }
 0x447   : > { %v2369_v38 = vcvt.s32.f32 %v3736_v44  ;;  %v3737_v6 = vpop.add.s32.mrf.mxu0.mxu1 }
 0x448   : > { %v2370_v3 = vcvt.s32.f32 %v3737_v6  ;;  %v3738_v50 = vpop.add.s32.mrf.mxu0.mxu1  ;;  %v5823_v6 = vld [vmem:[#allocation47_spill] sm:$0xff] }
 0x449   : > { %v2692_v52 = vmul.f32 %v4889_v36, %v2369_v38  ;;  %v2393_v24 = vcvt.s32.f32 %v3738_v50  ;;  %v3739_v29 = vpop.add.s32.mrf.mxu0.mxu1 }
 0x44a   : > { %v2693_v47 = vmul.f32 %v4893_v63, %v2370_v3  ;;  %v2394_v2 = vcvt.s32.f32 %v3739_v29  ;;  %v3740_v39 = vpop.add.s32.mrf.mxu0.mxu1 }
 0x44b   : > { %v2914_v1 = vadd.f32 %v2857_v60, %v2692_v52  ;;  %v2716_v41 = vmul.f32 %v5815_v30, %v2393_v24  ;;  %v2417_v58 = vcvt.s32.f32 %v3740_v39  ;;  %v3741_v5 = vpop.add.s32.mrf.mxu0.mxu1  ;;  %v5824_v52 = vld [vmem:[#allocation48_spill] sm:$0xff] }
 0x44c   : > { %v2915_v16 = vadd.f32 %v2861_v31, %v2693_v47  ;;  %v2717_v20 = vmul.f32 %v5816_v61, %v2394_v2  ;;  %v2418_v46 = vcvt.s32.f32 %v3741_v5  ;;  %v3742_v7 = vpop.add.s32.mrf.mxu0.mxu1  ;;  %v5825_v47 = vld [vmem:[#allocation49_spill] sm:$0xff]  ;;  %v5827_v61 = vld [vmem:[#allocation51_spill] sm:$0xff] }
 0x44d   : > { %4016 = vtanh.f32 %v2914_v1  ;;  %v2938_v8 = vadd.f32 %v2857_v60, %v2716_v41  ;;  %v2740_v36 = vmul.f32 %v5817_v14, %v2417_v58  ;;  %v2441_v15 = vcvt.s32.f32 %v3742_v7  ;;  %v3743_v42 = vpop.add.s32.mrf.mxu0.mxu1  ;;  %v5826_v41 = vld [vmem:[#allocation50_spill] sm:$0xff]  ;;  %v5828_v7 = vld [vmem:[#allocation52_spill] sm:$0xff] }
 0x44e   : > { %4018 = vtanh.f32 %v2915_v16  ;;  %v2939_v63 = vadd.f32 %v2861_v31, %v2717_v20  ;;  %v2741_v40 = vmul.f32 %v5818_v43, %v2418_v46  ;;  %v2442_v33 = vcvt.s32.f32 %v3743_v42 }
 0x44f   : > { %4020 = vtanh.f32 %v2938_v8  ;;  %v2962_v35 = vadd.f32 %v2857_v60, %v2740_v36  ;;  %v2764_v59 = vmul.f32 %v5819_v18, %v2441_v15 }
 0x450   : > { %4022 = vtanh.f32 %v2939_v63  ;;  %v2963_v17 = vadd.f32 %v2861_v31, %v2741_v40  ;;  %v2765_v51 = vmul.f32 %v5820_v4, %v2442_v33 }
 0x451   : > { %4024 = vtanh.f32 %v2962_v35  ;;  %v2986_v23 = vadd.f32 %v2857_v60, %v2764_v59 }
 0x452   : > { %4026 = vtanh.f32 %v2963_v17  ;;  %v2987_v56 = vadd.f32 %v2861_v31, %v2765_v51 }
 0x453   : > { %4028 = vtanh.f32 %v2986_v23 }
 0x454   : > { %4030 = vtanh.f32 %v2987_v56 }
 0x45a   : > { %v4017_v62 = vpop.eup %4016 }
 0x45b   : > { %v4019_v48 = vpop.eup %4018  ;;  %3106 = vst [vmem:[%s5205_s18 + $0xa0] sm:$0xff] %v4017_v62 }
 0x45c   : > { %v4021_v37 = vpop.eup %4020  ;;  %3107 = vst [vmem:[%s5205_s18 + $0xa8] sm:$0xff] %v4019_v48 }
 0x45d   : > { %v4023_v26 = vpop.eup %4022  ;;  %3130 = vst [vmem:[%s5205_s18 + $0x160] sm:$0xff] %v4021_v37 }
 0x45e   : > { %v4025_v22 = vpop.eup %4024  ;;  %3131 = vst [vmem:[%s5205_s18 + $0x168] sm:$0xff] %v4023_v26 }
 0x45f   : > { %v4027_v11 = vpop.eup %4026  ;;  %3154 = vst [vmem:[%s5205_s18 + $0x220] sm:$0xff] %v4025_v22 }
 0x460   : > { %v4029_v55 = vpop.eup %4028  ;;  %3155 = vst [vmem:[%s5205_s18 + $0x228] sm:$0xff] %v4027_v11 }
 0x461   : > { %v4031_v9 = vpop.eup %4030  ;;  %3178 = vst [vmem:[%s5205_s18 + $0x2e0] sm:$0xff] %v4029_v55 }
 0x462   : > { %3179 = vst [vmem:[%s5205_s18 + $0x2e8] sm:$0xff] %v4031_v9 }
 0x466   : > { %v3744_v45 = vpop.add.s32.mrf.mxu0.mxu1 }
 0x467   : > { %v2371_v49 = vcvt.s32.f32 %v3744_v45  ;;  %v3745_v34 = vpop.add.s32.mrf.mxu0.mxu1 }
 0x468   : > { %v2372_v21 = vcvt.s32.f32 %v3745_v34  ;;  %v3746_v32 = vpop.add.s32.mrf.mxu0.mxu1 }
 0x469   : > { %v2694_v28 = vmul.f32 %v5821_v54, %v2371_v49  ;;  %v2395_v27 = vcvt.s32.f32 %v3746_v32  ;;  %v3747_v0 = vpop.add.s32.mrf.mxu0.mxu1 }
 0x46a   : > { %v2695_v25 = vmul.f32 %v5822_v53, %v2372_v21  ;;  %v2396_v44 = vcvt.s32.f32 %v3747_v0  ;;  %v3748_v60 = vpop.add.s32.mrf.mxu0.mxu1 }
 0x46b   : > { %v2916_v38 = vadd.f32 %v2865_v19, %v2694_v28  ;;  %v2718_v31 = vmul.f32 %v5823_v6, %v2395_v27  ;;  %v2419_v3 = vcvt.s32.f32 %v3748_v60  ;;  %v3749_v10 = vpop.add.s32.mrf.mxu0.mxu1 }
 0x46c   : > { %v2917_v50 = vadd.f32 %v2869_v57, %v2695_v25  ;;  %v2719_v24 = vmul.f32 %v5824_v52, %v2396_v44  ;;  %v2420_v29 = vcvt.s32.f32 %v3749_v10  ;;  %v3750_v12 = vpop.add.s32.mrf.mxu0.mxu1 }
 0x46d   : > { %4032 = vtanh.f32 %v2916_v38  ;;  %v2940_v13 = vadd.f32 %v2865_v19, %v2718_v31  ;;  %v2742_v2 = vmul.f32 %v5825_v47, %v2419_v3  ;;  %v2443_v39 = vcvt.s32.f32 %v3750_v12  ;;  %v3751_v1 = vpop.add.s32.mrf.mxu0.mxu1 }
 0x46e   : > { %4034 = vtanh.f32 %v2917_v50  ;;  %v2941_v30 = vadd.f32 %v2869_v57, %v2719_v24  ;;  %v2743_v58 = vmul.f32 %v5826_v41, %v2420_v29  ;;  %v2444_v5 = vcvt.s32.f32 %v3751_v1 }
 0x46f   : > { %4036 = vtanh.f32 %v2940_v13  ;;  %v2964_v16 = vadd.f32 %v2865_v19, %v2742_v2  ;;  %v2766_v20 = vmul.f32 %v5827_v61, %v2443_v39 }
 0x470   : > { %4038 = vtanh.f32 %v2941_v30  ;;  %v2965_v46 = vadd.f32 %v2869_v57, %v2743_v58  ;;  %v2767_v8 = vmul.f32 %v5828_v7, %v2444_v5 }
 0x471   : > { %4040 = vtanh.f32 %v2964_v16  ;;  %v2988_v14 = vadd.f32 %v2865_v19, %v2766_v20 }
 0x472   : > { %4042 = vtanh.f32 %v2965_v46  ;;  %v2989_v36 = vadd.f32 %v2869_v57, %v2767_v8 }
 0x473   : > { %4044 = vtanh.f32 %v2988_v14 }
 0x474   : > { %4046 = vtanh.f32 %v2989_v36 }
 0x47a   : > { %v4033_v15 = vpop.eup %4032 }
 0x47b   : > { %v4035_v42 = vpop.eup %4034  ;;  %3108 = vst [vmem:[%s5205_s18 + $0xb0] sm:$0xff] %v4033_v15 }
 0x47c   : > { %v4037_v63 = vpop.eup %4036  ;;  %3109 = vst [vmem:[%s5205_s18 + $0xb8] sm:$0xff] %v4035_v42 }
 0x47d   : > { %v4039_v43 = vpop.eup %4038  ;;  %3132 = vst [vmem:[%s5205_s18 + $0x170] sm:$0xff] %v4037_v63 }
 0x47e   : > { %v4041_v40 = vpop.eup %4040  ;;  %3133 = vst [vmem:[%s5205_s18 + $0x178] sm:$0xff] %v4039_v43 }
 0x47f   : > { %v4043_v33 = vpop.eup %4042  ;;  %3156 = vst [vmem:[%s5205_s18 + $0x230] sm:$0xff] %v4041_v40 }
 0x480   : > { %v4045_v35 = vpop.eup %4044  ;;  %3157 = vst [vmem:[%s5205_s18 + $0x238] sm:$0xff] %v4043_v33 }
 0x481   : > { %v4047_v18 = vpop.eup %4046  ;;  %3180 = vst [vmem:[%s5205_s18 + $0x2f0] sm:$0xff] %v4045_v35 }
 0x482   : > { %3181 = vst [vmem:[%s5205_s18 + $0x2f8] sm:$0xff] %v4047_v18 }
 0x483   : > { %4226 = shalt.err (!%p4223_p1)
}
 0x484   : > { %s4227_s6 = scalar_lea.hbm %s5650_s9, 12288  ;;  %s4231_s20 = scalar_lea.hbm %s5829_s13, 24576 }
 0x485   : > { %p4228_p8 = scmp.ne.s32.totalorder %s5650_s9, %s4227_s6  ;;  %p4232_p3 = scmp.lt.s32.totalorder %s5650_s9, %s5829_s13 }
 0x486   : > { %p4233_p9 = scmp.lt.s32.totalorder %s4231_s20, %s4227_s6 }
 0x487   : > { %p4229_p4 = pnand %p4228_p8, %p5830_p12 }
 0x488   : > { %p4234_p5 = por %p4233_p9, %p4232_p3 }
 0x489   : > { %p4230_p0 = pneg %p4229_p4 }
 0x48b   : > { %p4235_p7 = pnand %p4234_p5, %p4230_p0 }
 0x48d   : > { %4238 = shalt.err (!%p4235_p7)
}
 0x48e   : > { %s4318_s7 = smov 3072   ;;  %s4319_s18 = smov 6144  }
 0x48f   : > { %s4320_s16 = smov 192  }
 0x490   : > { %3564 = dma.vmem_to_hbm [thread:$0]  (%p5830_p12), %s5652_s1, 12288, %s5650_s9, %s3183_s24, %s4318_s7, %s4319_s18, %s4320_s16  }
 0x491 PF: > { %s5831_s19 = sld [smem:[#allocation19_spill]]  ;;  %p5834_p2 = scmp.ge.s32.totalorder %s4305_s26, 2 }
 0x492   : > { %s5832_s28 = sld [smem:[#allocation20_spill]] }
 0x497   : > { %s3214_s15 = sand.u32 1, %s5831_s19  }
 0x498   : > { %p5833_p13 = scmp.ne.s32.totalorder %s5832_s28, 0  ;;  %s3215_s17 = scalar_lea.sflag [#allocation4], %s3214_s15 }
 0x49a   : > { %p3587_p11 = pnand %p5834_p2, %p5833_p13 }
 0x49c   : > { %p3588_p6 = pneg %p3587_p11 }
 0x49e   : > { %4280 = dma.done.wait (%p3588_p6), %s3215_s17, 12288  }
 0x49f   : > { %4282 = vsyncadd (%p3588_p6), %s3215_s17, 4294955008  ;;  %s27_s26 = sadd.s32 1, %s4305_s26   ;;  %s5835_s8 = sld [smem:[#allocation21_spill]] }
 0x4a0   : > { %p24_p10 = scmp.ge.s32.totalorder %s27_s26, 4   ;;  %s5836_s21 = smov %s4289_s22 }
 0x4a1   : > { %s5837_s22 = smov %s4293_s23  ;;  %s5838_s23 = smov %s4473_s12 }
 0x4a2   : > { %s5839_s24 = smov %s4301_s25  ;;  %26 = sbr.rel (!%p24_p10) target bundleno = 13 (0xd), region = 127 }
 0x4a5   : > { %s5840_s25 = smov %s5835_s8 }
 0x4a7   :  { %3220 = vsyncpa [#allocation3], 1 }
 0x4a8   :  { %3222 = vsyncpa [#allocation3 + $0x1], 1 }
 0x4a9   :  { %3223 = vsyncpa [#allocation6], 1 }
 0x4aa   :  { %3224 = vsyncpa [#allocation9], 1 }
 0x4ab   :  { %3226 = vsyncpa [#allocation9 + $0x1], 1 }
 0x4ac   :  { %3227 = vsyncpa [#allocation12], 1 }
 0x4ad   :  { %3229 = vsyncpa [#allocation12 + $0x1], 1 }
 0x4ae   :  { %3230 = vsyncpa [#allocation4], 1 }
 0x4af   :  { %3232 = vsyncpa [#allocation4 + $0x1], 1 }

</bundles_post_ra>
